<compile_context>
chip_gen: v6e
topology: v6e:2x2x1
jax: 0.10.0
libtpu: 0.0.40
codegen_flags: <defaults>
</compile_context>

<pallas_src>
import math

import jax
import jax.numpy as jnp
from jax import lax
from jax.experimental import pallas as pl
from jax.experimental.pallas import tpu as pltpu


# ---------------------------------------------------------------------------
# Kernel builder: whole LSTM + TCN + MLP head, everything resident in VMEM.
# ---------------------------------------------------------------------------
def make_kernel(*, T, Bp, Inp, H, K, channels, dilations, has_ds, OutP, Lf):
    n_levels = len(channels)

    def kernel(*refs):
        it = iter(refs)
        x_ref = next(it)                       # (T*Bp, Inp) f32, pre-flattened
        wih_ref = next(it)                     # (Inp, 4H)   f32, pre-transposed
        whh_ref = next(it)                     # (H, 4H)     f32, pre-transposed
        bl_ref = next(it)                      # (1, 4H)     f32, b_ih + b_hh folded
        blocks = []
        for lvl in range(n_levels):
            blk = [next(it),                   # wc1 (K*Cin, Cout)   taps fused
                   next(it),                   # bc1 (1, Cout)       f32
                   next(it),                   # wc2 (K*Cout, Cout)  taps fused
                   next(it)]                   # bc2 (1, Cout)       f32
            if has_ds[lvl]:
                blk += [next(it), next(it)]    # wd (Cin, Cout), bd (1, Cout)
            blocks.append(blk)
        w1_ref = next(it)                      # (C_last, C_half)
        b1_ref = next(it)                      # (1, C_half) f32
        w2_ref = next(it)                      # (C_half, OutP)  lane-padded
        b2_ref = next(it)                      # (1, OutP)   f32
        out_ref = next(it)                     # (Lf*Bp, OutP) f32
        gi_scr = next(it)                      # scratch (T, Bp, 4H) f32
        hseq_scr = next(it)                    # scratch (T, Bp, H)  f32

        # ----------------- LSTM (single layer, PyTorch gate order i,f,g,o) --
        # Hoisted input projection: one big MXU matmul + folded biases, stored once.
        gi2 = jnp.dot(x_ref[...], wih_ref[...],
                      preferred_element_type=jnp.float32) + bl_ref[...]
        gi_scr[...] = gi2.reshape(T, Bp, 4 * H)        # tile-aligned view (Bp = 8k)

        whh_t = whh_ref[...]                           # read recurrence weights once

        def step(t, carry):
            # Strictly serial: gates_{t+1} depends on h_t.  The unroll below only
            # removes loop overhead and hides the hseq store / gi load.
            h, c = carry
            gates = gi_scr[t] + jnp.dot(h, whh_t, preferred_element_type=jnp.float32)
            # Two full-vreg EUP pushes over the whole (Bp, 4H) tile, then slice.
            sig = jax.nn.sigmoid(gates)
            tnh = jnp.tanh(gates)
            i_g = sig[:, 0:H]
            f_g = sig[:, H:2 * H]
            g_g = tnh[:, 2 * H:3 * H]
            o_g = sig[:, 3 * H:4 * H]
            c_new = f_g * c + i_g * g_g
            h_new = o_g * jnp.tanh(c_new)
            # 32-of-128-lane masked store; accepted (cost vanishes once H >= 128).
            hseq_scr[t] = h_new
            return h_new, c_new

        h0 = jnp.zeros((Bp, H), jnp.float32)
        lax.fori_loop(0, T, step, (h0, h0), unroll=True)

        # ----------------- TCN (dilated causal blocks, no padding convs) ----
        act = hseq_scr[...]                    # (L, Bp, C) time-major, f32
        L = T
        in_ch = H
        for lvl in range(n_levels):
            out_ch = channels[lvl]
            d = dilations[lvl]
            p = (K - 1) * d
            blk = blocks[lvl]
            wc1 = blk[0][...]
            bc1 = blk[1][...]
            wc2 = blk[2][...]
            bc2 = blk[3][...]
            wdt = wc1.dtype                    # f32 or bf16 (MXU operand dtype)

            # conv1 (dilation d, padding 0) + ReLU: K taps fused into ONE matmul.
            L1 = L - p
            if K > 1:
                cat1 = jnp.concatenate([act[k * d:k * d + L1] for k in range(K)],
                                       axis=-1)                 # (L1, Bp, K*Cin)
            else:
                cat1 = act[0:L1]
            h1 = jnp.maximum(
                jnp.dot(cat1.reshape(L1 * Bp, K * in_ch).astype(wdt), wc1,
                        preferred_element_type=jnp.float32) + bc1,
                0.0).reshape(L1, Bp, out_ch)

            # conv2 (dilation d, padding 0) + ReLU: same tap fusion.
            L2 = L1 - p
            if K > 1:
                cat2 = jnp.concatenate([h1[k * d:k * d + L2] for k in range(K)],
                                       axis=-1)                 # (L2, Bp, K*Cout)
            else:
                cat2 = h1[0:L2]
            h2 = jnp.maximum(
                jnp.dot(cat2.reshape(L2 * Bp, K * out_ch).astype(wdt), wc2,
                        preferred_element_type=jnp.float32) + bc2,
                0.0)                                            # (L2*Bp, Cout)

            # residual: x[:, :, p:-p], optionally through a 1x1 downsample conv
            xs = act[p:L - p].reshape(L2 * Bp, in_ch)
            if has_ds[lvl]:
                res = jnp.dot(xs.astype(wdt), blk[4][...],
                              preferred_element_type=jnp.float32) + blk[5][...]
            else:
                res = xs
            act = jnp.maximum(h2 + res, 0.0).reshape(L2, Bp, out_ch)
            L = L2
            in_ch = out_ch
            # TODO(synk): dropout1/dropout2 are identity in eval mode (inference kernel).

        # ----------------- MLP head: relu(fc1) -> fc2 (lane-dense output) ---
        w1 = w1_ref[...]
        w2 = w2_ref[...]
        a2 = act.reshape(Lf * Bp, in_ch)
        y1 = jnp.maximum(
            jnp.dot(a2.astype(w1.dtype), w1,
                    preferred_element_type=jnp.float32) + b1_ref[...],
            0.0)
        y2 = jnp.dot(y1.astype(w2.dtype), w2,
                     preferred_element_type=jnp.float32) + b2_ref[...]
        out_ref[...] = y2                      # (Lf*Bp, OutP) unmasked stores

    return kernel


# ---------------------------------------------------------------------------
# Wrapper: layout transposes, batch/lane padding, parameter pre-transposition.
# ---------------------------------------------------------------------------
def lstm_tcn_forward(x, params, *, kernel_size, channels,
                     compute_dtype=jnp.float32):
    """x: (B, T, In) float32 -> (B, Lf, Out) float32, matching LSTMTCN.forward (eval).

    compute_dtype: dtype of the TCN/MLP MXU operands (weights + activations at the
    dot boundary).  Use jnp.bfloat16 on v6e/v7x for ~2x matmul throughput; all
    accumulation and the LSTM recurrence stay f32.
    """
    B, T, In = x.shape
    H = params["lstm_whh"].shape[1]
    Out = params["fc2_w"].shape[0]
    K = kernel_size
    n_levels = len(channels)
    dilations = [2 ** i for i in range(n_levels)]

    Lf = T
    for d in dilations:
        Lf -= 2 * (K - 1) * d
    assert Lf > 0, "sequence too short for this TCN configuration"
    # Layout assumptions of the kernel (gate slices & (T,Bp,4H) reshapes).
    assert (4 * H) % 128 == 0, "kernel assumes 4*hidden_size is a multiple of 128 lanes"
    assert H % 8 == 0, "kernel assumes hidden_size is a multiple of 8"

    Bp = max(8, ((B + 7) // 8) * 8)              # sublane-pad the batch
    Inp = ((In + 7) // 8) * 8                    # sublane-pad input features
    OutP = ((Out + 127) // 128) * 128            # lane-pad the output
    cdt = compute_dtype

    # ---- flat argument list (weights pre-transposed for (row, K)@(K, col)) ----
    xt = jnp.transpose(x, (1, 0, 2)).astype(jnp.float32)              # (T, B, In)
    xt = jnp.pad(xt, ((0, 0), (0, Bp - B), (0, Inp - In)))            # (T, Bp, Inp)
    args = [
        xt.reshape(T * Bp, Inp),                                      # pre-flattened
        jnp.pad(params["lstm_wih"].T.astype(jnp.float32),
                ((0, Inp - In), (0, 0))),                             # (Inp, 4H)
        params["lstm_whh"].T.astype(jnp.float32),                     # (H, 4H)
        (params["lstm_bih"] + params["lstm_bhh"]).reshape(1, -1)
        .astype(jnp.float32),                                         # folded bias
    ]
    has_ds = []
    in_ch = H
    for lvl in range(n_levels):
        out_ch = channels[lvl]
        blk = params["blocks"][lvl]
        # conv weights (Cout, Cin, K) -> (K, Cin, Cout) -> (K*Cin, Cout): tap-fused.
        args += [
            jnp.transpose(blk["conv1_w"], (2, 1, 0)).reshape(K * in_ch, out_ch).astype(cdt),
            blk["conv1_b"].reshape(1, -1).astype(jnp.float32),
            jnp.transpose(blk["conv2_w"], (2, 1, 0)).reshape(K * out_ch, out_ch).astype(cdt),
            blk["conv2_b"].reshape(1, -1).astype(jnp.float32),
        ]
        ds = in_ch != out_ch
        has_ds.append(ds)
        if ds:
            args += [blk["down_w"][:, :, 0].T.astype(cdt),            # (Cin, Cout)
                     blk["down_b"].reshape(1, -1).astype(jnp.float32)]
        in_ch = out_ch

    C_last = channels[-1]
    C_half = C_last // 2
    w2p = jnp.zeros((C_half, OutP), cdt).at[:, :Out].set(params["fc2_w"].T.astype(cdt))
    b2p = jnp.zeros((1, OutP), jnp.float32).at[0, :Out].set(params["fc2_b"])
    args += [params["fc1_w"].T.astype(cdt),
             params["fc1_b"].reshape(1, -1).astype(jnp.float32),
             w2p, b2p]

    kernel = make_kernel(T=T, Bp=Bp, Inp=Inp, H=H, K=K,
                         channels=tuple(channels), dilations=tuple(dilations),
                         has_ds=tuple(has_ds), OutP=OutP, Lf=Lf)

    # ---- VMEM limit from the actual footprint (+ headroom), not a blanket 32 MiB ----
    def nbytes(a):
        return a.size * a.dtype.itemsize

    lane_pad = lambda c: ((c + 127) // 128) * 128
    out_bytes = Lf * Bp * OutP * 4
    scratch_bytes = T * Bp * (4 * H) * 4 + T * Bp * lane_pad(H) * 4
    footprint = sum(nbytes(a) for a in args) + out_bytes + scratch_bytes
    vmem_limit = int(min(64 * 2 ** 20, max(8 * 2 ** 20, 6 * footprint)))

    # ---- advisory cost estimate for the XLA scheduler ----
    flops = 2 * T * Bp * Inp * 4 * H + 2 * T * Bp * H * 4 * H
    trans = 2 * T * Bp * 4 * H + T * Bp * H
    Lc, cin = T, H
    for lvl, out_ch in enumerate(channels):
        d = dilations[lvl]
        p = (K - 1) * d
        L1, L2 = Lc - p, Lc - 2 * p
        flops += 2 * L1 * Bp * (K * cin) * out_ch
        flops += 2 * L2 * Bp * (K * out_ch) * out_ch
        if has_ds[lvl]:
            flops += 2 * L2 * Bp * cin * out_ch
        Lc, cin = L2, out_ch
    flops += 2 * Lf * Bp * (C_last * C_half + C_half * OutP)
    cost = pl.CostEstimate(flops=int(flops), transcendentals=int(trans),
                           bytes_accessed=int(sum(nbytes(a) for a in args) + out_bytes))

    # NOTE(v7x): gridless single program (Bp = 8 here -> one sublane group).  For
    # production batch sizes add a batch-chunk grid axis with
    # dimension_semantics=("parallel",) so both TensorCores are used and the weight
    # DMAs pipeline behind compute; also re-derive tiling for the 64 MiB VMEM budget.
    vmem = pl.BlockSpec(memory_space=pltpu.MemorySpace.VMEM)
    out2d = pl.pallas_call(
        kernel,
        out_shape=jax.ShapeDtypeStruct((Lf * Bp, OutP), jnp.float32),
        in_specs=[vmem] * len(args),
        out_specs=vmem,
        scratch_shapes=[pltpu.VMEM((T, Bp, 4 * H), jnp.float32),   # hoisted gate proj
                        pltpu.VMEM((T, Bp, H), jnp.float32)],      # LSTM output seq
        compiler_params=pltpu.CompilerParams(vmem_limit_bytes=vmem_limit),
        cost_estimate=cost,
    )(*args)

    out = out2d.reshape(Lf, Bp, OutP)[:, :B, :Out]                 # drop padding
    return jnp.transpose(out, (1, 0, 2))                           # (B, Lf, Out)


# ---------------------------------------------------------------------------
# Deterministic parameter init (PyTorch-style defaults; conv weights ~N(0, 0.01))
# ---------------------------------------------------------------------------
def init_params(key, input_size, hidden_size, output_size, channels, kernel_size):
    keys = iter(jax.random.split(key, 64))
    H = hidden_size
    kl = 1.0 / math.sqrt(H)
    p = {
        "lstm_wih": jax.random.uniform(next(keys), (4 * H, input_size), jnp.float32, -kl, kl),
        "lstm_whh": jax.random.uniform(next(keys), (4 * H, H), jnp.float32, -kl, kl),
        "lstm_bih": jax.random.uniform(next(keys), (4 * H,), jnp.float32, -kl, kl),
        "lstm_bhh": jax.random.uniform(next(keys), (4 * H,), jnp.float32, -kl, kl),
    }
    blocks = []
    in_ch = H
    for out_ch in channels:
        kc1 = 1.0 / math.sqrt(in_ch * kernel_size)
        kc2 = 1.0 / math.sqrt(out_ch * kernel_size)
        blk = {
            "conv1_w": 0.01 * jax.random.normal(next(keys), (out_ch, in_ch, kernel_size), jnp.float32),
            "conv1_b": jax.random.uniform(next(keys), (out_ch,), jnp.float32, -kc1, kc1),
            "conv2_w": 0.01 * jax.random.normal(next(keys), (out_ch, out_ch, kernel_size), jnp.float32),
            "conv2_b": jax.random.uniform(next(keys), (out_ch,), jnp.float32, -kc2, kc2),
        }
        if in_ch != out_ch:
            kd = 1.0 / math.sqrt(in_ch)
            blk["down_w"] = 0.01 * jax.random.normal(next(keys), (out_ch, in_ch, 1), jnp.float32)
            blk["down_b"] = jax.random.uniform(next(keys), (out_ch,), jnp.float32, -kd, kd)
        blocks.append(blk)
        in_ch = out_ch
    p["blocks"] = blocks
    C_last = channels[-1]
    C_half = C_last // 2
    k1 = 1.0 / math.sqrt(C_last)
    k2 = 1.0 / math.sqrt(C_half)
    p["fc1_w"] = jax.random.uniform(next(keys), (C_half, C_last), jnp.float32, -k1, k1)
    p["fc1_b"] = jax.random.uniform(next(keys), (C_half,), jnp.float32, -k1, k1)
    p["fc2_w"] = jax.random.uniform(next(keys), (output_size, C_half), jnp.float32, -k2, k2)
    p["fc2_b"] = jax.random.uniform(next(keys), (output_size,), jnp.float32, -k2, k2)
    return p


# ---------------------------------------------------------------------------
# Pure-JAX reference (PyTorch semantics, eval mode) for correctness checking.
# ---------------------------------------------------------------------------
def ref_forward(x, p, *, kernel_size, channels):
    B, T, _ = x.shape
    H = p["lstm_whh"].shape[1]
    wih, whh, bih, bhh = p["lstm_wih"], p["lstm_whh"], p["lstm_bih"], p["lstm_bhh"]

    h = jnp.zeros((B, H), jnp.float32)
    c = jnp.zeros((B, H), jnp.float32)
    outs = []
    for t in range(T):
        g = x[:, t] @ wih.T + bih + h @ whh.T + bhh
        i = jax.nn.sigmoid(g[:, :H])
        f = jax.nn.sigmoid(g[:, H:2 * H])
        gg = jnp.tanh(g[:, 2 * H:3 * H])
        o = jax.nn.sigmoid(g[:, 3 * H:])
        c = f * c + i * gg
        h = o * jnp.tanh(c)
        outs.append(h)
    y = jnp.stack(outs, axis=1)                       # (B, T, H)

    def conv1d(z, w, b, dil):                         # z (B,C,L), w (Cout,Cin,K)
        Kk = w.shape[2]
        Lout = z.shape[2] - (Kk - 1) * dil
        acc = jnp.zeros((z.shape[0], w.shape[0], Lout), jnp.float32)
        for k in range(Kk):
            acc = acc + jnp.einsum('bcl,oc->bol', z[:, :, k * dil:k * dil + Lout], w[:, :, k])
        return acc + b[None, :, None]

    z = jnp.transpose(y, (0, 2, 1))                   # (B, H, T)
    in_ch = H
    for lvl, out_ch in enumerate(channels):
        blk = p["blocks"][lvl]
        dil = 2 ** lvl
        pad = (kernel_size - 1) * dil
        o1 = jax.nn.relu(conv1d(z, blk["conv1_w"], blk["conv1_b"], dil))
        o2 = jax.nn.relu(conv1d(o1, blk["conv2_w"], blk["conv2_b"], dil))
        zs = z[:, :, pad:-pad]
        res = conv1d(zs, blk["down_w"], blk["down_b"], 1) if in_ch != out_ch else zs
        z = jax.nn.relu(o2 + res)
        in_ch = out_ch

    y = jnp.transpose(z, (0, 2, 1))                   # (B, Lf, C_last)
    y = jax.nn.relu(y @ p["fc1_w"].T + p["fc1_b"])
    return y @ p["fc2_w"].T + p["fc2_b"]


if __name__ == "__main__":
    B, T = 2, 20
    INPUT_SIZE, HIDDEN_SIZE, OUTPUT_SIZE = 8, 32, 10
    CHANNELS = (64, 64, 32)        # levels 0 & 2 exercise the 1x1 downsample path
    KERNEL_SIZE = 2

    key = jax.random.PRNGKey(0)
    kp, kx = jax.random.split(key)
    params = init_params(kp, INPUT_SIZE, HIDDEN_SIZE, OUTPUT_SIZE, CHANNELS, KERNEL_SIZE)
    x = jax.random.normal(kx, (B, T, INPUT_SIZE), jnp.float32)

    ref = ref_forward(x, params, kernel_size=KERNEL_SIZE, channels=CHANNELS)
    Lf = T - sum(2 * (KERNEL_SIZE - 1) * (2 ** i) for i in range(len(CHANNELS)))

    # f32 path (reference check)
    out = lstm_tcn_forward(x, params, kernel_size=KERNEL_SIZE, channels=CHANNELS)
    out = jax.block_until_ready(out)
    assert out.shape == (B, Lf, OUTPUT_SIZE), out.shape
    err = jnp.max(jnp.abs(out - ref))
    assert jnp.allclose(out, ref, atol=2e-3, rtol=2e-3), f"f32 max abs err {err}"

    # bf16 MXU-operand path (v6e/v7x-friendly); LSTM recurrence & accumulation stay f32.
    out_bf16 = lstm_tcn_forward(x, params, kernel_size=KERNEL_SIZE, channels=CHANNELS,
                                compute_dtype=jnp.bfloat16)
    out_bf16 = jax.block_until_ready(out_bf16)
    assert out_bf16.shape == (B, Lf, OUTPUT_SIZE), out_bf16.shape
    err_bf16 = jnp.max(jnp.abs(out_bf16 - ref))
    assert jnp.allclose(out_bf16, ref, atol=5e-2, rtol=5e-2), f"bf16 max abs err {err_bf16}"

    print("KERNEL_OK")
</pallas_src>

<mosaic_0001>
module attributes {stable_mosaic.version = 11 : i64} {
  func.func @kernel(%arg0: memref<160x8xf32, #tpu.memory_space<vmem>>, %arg1: memref<8x128xf32, #tpu.memory_space<vmem>>, %arg2: memref<32x128xf32, #tpu.memory_space<vmem>>, %arg3: memref<1x128xf32, #tpu.memory_space<vmem>>, %arg4: memref<64x64xf32, #tpu.memory_space<vmem>>, %arg5: memref<1x64xf32, #tpu.memory_space<vmem>>, %arg6: memref<128x64xf32, #tpu.memory_space<vmem>>, %arg7: memref<1x64xf32, #tpu.memory_space<vmem>>, %arg8: memref<32x64xf32, #tpu.memory_space<vmem>>, %arg9: memref<1x64xf32, #tpu.memory_space<vmem>>, %arg10: memref<128x64xf32, #tpu.memory_space<vmem>>, %arg11: memref<1x64xf32, #tpu.memory_space<vmem>>, %arg12: memref<128x64xf32, #tpu.memory_space<vmem>>, %arg13: memref<1x64xf32, #tpu.memory_space<vmem>>, %arg14: memref<128x32xf32, #tpu.memory_space<vmem>>, %arg15: memref<1x32xf32, #tpu.memory_space<vmem>>, %arg16: memref<64x32xf32, #tpu.memory_space<vmem>>, %arg17: memref<1x32xf32, #tpu.memory_space<vmem>>, %arg18: memref<64x32xf32, #tpu.memory_space<vmem>>, %arg19: memref<1x32xf32, #tpu.memory_space<vmem>>, %arg20: memref<32x16xf32, #tpu.memory_space<vmem>>, %arg21: memref<1x16xf32, #tpu.memory_space<vmem>>, %arg22: memref<16x128xf32, #tpu.memory_space<vmem>>, %arg23: memref<1x128xf32, #tpu.memory_space<vmem>>, %arg24: memref<48x128xf32, #tpu.memory_space<vmem>>, %arg25: memref<20x8x128xf32, #tpu.memory_space<vmem>>, %arg26: memref<20x8x32xf32, #tpu.memory_space<vmem>>) attributes {dimension_semantics = [], scalar_prefetch = 0 : i64, scratch_operands = 2 : i64, tpu.core_type = #tpu.core_type<tc>} {
    %c0 = arith.constant 0 : index
    %c0_0 = arith.constant 0 : index
    %0 = vector.load %arg0[%c0, %c0_0] : memref<160x8xf32, #tpu.memory_space<vmem>>, vector<160x8xf32>
    %c0_1 = arith.constant 0 : index
    %c0_2 = arith.constant 0 : index
    %1 = vector.load %arg1[%c0_1, %c0_2] : memref<8x128xf32, #tpu.memory_space<vmem>>, vector<8x128xf32>
    %cst = arith.constant dense<0.000000e+00> : vector<160x128xf32>
    %2 = tpu.matmul %0, %1, %cst {dimension_numbers = #tpu.dot_dimension_numbers<[1], [0], [0], [1], [0, 0, 1, 1], [], []>} : vector<160x8xf32>, vector<8x128xf32>, vector<160x128xf32> -> vector<160x128xf32>
    %c0_3 = arith.constant 0 : index
    %c0_4 = arith.constant 0 : index
    %3 = vector.load %arg3[%c0_3, %c0_4] : memref<1x128xf32, #tpu.memory_space<vmem>>, vector<1x128xf32>
    %4 = vector.broadcast %3 : vector<1x128xf32> to vector<160x128xf32>
    %5 = arith.addf %2, %4 : vector<160x128xf32>
    %6 = vector.shape_cast %5 : vector<160x128xf32> to vector<20x8x128xf32>
    %c0_5 = arith.constant 0 : index
    %c0_6 = arith.constant 0 : index
    %c0_7 = arith.constant 0 : index
    %7 = vector.load %arg25[%c0_5, %c0_6, %c0_7] : memref<20x8x128xf32, #tpu.memory_space<vmem>>, vector<20x8x128xf32>
    tpu.vector_store %arg25[%c0_5, %c0_6, %c0_7], %6 {strides = array<i32>} : memref<20x8x128xf32, #tpu.memory_space<vmem>>, vector<20x8x128xf32>,
    %c0_8 = arith.constant 0 : index
    %c0_9 = arith.constant 0 : index
    %8 = vector.load %arg2[%c0_8, %c0_9] : memref<32x128xf32, #tpu.memory_space<vmem>>, vector<32x128xf32>
    %cst_10 = arith.constant 0.000000e+00 : f32
    %9 = vector.broadcast %cst_10 : f32 to vector<8x32xf32>
    %c0_i32 = arith.constant 0 : i32
    %10 = arith.index_cast %c0_i32 : i32 to index
    %c0_11 = arith.constant 0 : index
    %c0_12 = arith.constant 0 : index
    %11 = vector.load %arg25[%10, %c0_11, %c0_12] : memref<20x8x128xf32, #tpu.memory_space<vmem>>, vector<1x8x128xf32>
    %12 = vector.shape_cast %11 : vector<1x8x128xf32> to vector<8x128xf32>
    %cst_13 = arith.constant dense<0.000000e+00> : vector<8x128xf32>
    %13 = tpu.matmul %9, %8, %cst_13 {dimension_numbers = #tpu.dot_dimension_numbers<[1], [0], [0], [1], [0, 0, 1, 1], [], []>} : vector<8x32xf32>, vector<32x128xf32>, vector<8x128xf32> -> vector<8x128xf32>
    %14 = arith.addf %12, %13 : vector<8x128xf32>
    %15 = arith.negf %14 : vector<8x128xf32>
    %16 = math.exp %15 : vector<8x128xf32>
    %cst_14 = arith.constant 1.000000e+00 : f32
    %17 = vector.broadcast %cst_14 : f32 to vector<8x128xf32>
    %18 = arith.addf %17, %16 : vector<8x128xf32>
    %19 = arith.divf %17, %18 : vector<8x128xf32>
    %20 = math.tanh %14 : vector<8x128xf32>
    %21 = vector.extract_strided_slice %19 {offsets = [0, 0], sizes = [8, 32], strides = [1, 1]} : vector<8x128xf32> to vector<8x32xf32>
    %22 = vector.extract_strided_slice %19 {offsets = [0, 32], sizes = [8, 32], strides = [1, 1]} : vector<8x128xf32> to vector<8x32xf32>
    %23 = vector.extract_strided_slice %20 {offsets = [0, 64], sizes = [8, 32], strides = [1, 1]} : vector<8x128xf32> to vector<8x32xf32>
    %24 = vector.extract_strided_slice %19 {offsets = [0, 96], sizes = [8, 32], strides = [1, 1]} : vector<8x128xf32> to vector<8x32xf32>
    %25 = arith.mulf %22, %9 : vector<8x32xf32>
    %26 = arith.mulf %21, %23 : vector<8x32xf32>
    %27 = arith.addf %25, %26 : vector<8x32xf32>
    %28 = math.tanh %27 : vector<8x32xf32>
    %29 = arith.mulf %24, %28 : vector<8x32xf32>
    %30 = arith.index_cast %c0_i32 : i32 to index
    %c0_15 = arith.constant 0 : index
    %c0_16 = arith.constant 0 : index
    %31 = vector.load %arg26[%30, %c0_15, %c0_16] : memref<20x8x32xf32, #tpu.memory_space<vmem>>, vector<1x8x32xf32>
    %32 = vector.shape_cast %31 : vector<1x8x32xf32> to vector<8x32xf32>
    %33 = vector.shape_cast %29 : vector<8x32xf32> to vector<1x8x32xf32>
    tpu.vector_store %arg26[%30, %c0_15, %c0_16], %33 {strides = array<i32>} : memref<20x8x32xf32, #tpu.memory_space<vmem>>, vector<1x8x32xf32>,
    %c1_i32 = arith.constant 1 : i32
    %34 = arith.index_cast %c1_i32 : i32 to index
    %c0_17 = arith.constant 0 : index
    %c0_18 = arith.constant 0 : index
    %35 = vector.load %arg25[%34, %c0_17, %c0_18] : memref<20x8x128xf32, #tpu.memory_space<vmem>>, vector<1x8x128xf32>
    %36 = vector.shape_cast %35 : vector<1x8x128xf32> to vector<8x128xf32>
    %cst_19 = arith.constant dense<0.000000e+00> : vector<8x128xf32>
    %37 = tpu.matmul %29, %8, %cst_19 {dimension_numbers = #tpu.dot_dimension_numbers<[1], [0], [0], [1], [0, 0, 1, 1], [], []>} : vector<8x32xf32>, vector<32x128xf32>, vector<8x128xf32> -> vector<8x128xf32>
    %38 = arith.addf %36, %37 : vector<8x128xf32>
    %39 = arith.negf %38 : vector<8x128xf32>
    %40 = math.exp %39 : vector<8x128xf32>
    %cst_20 = arith.constant 1.000000e+00 : f32
    %41 = vector.broadcast %cst_20 : f32 to vector<8x128xf32>
    %42 = arith.addf %41, %40 : vector<8x128xf32>
    %43 = arith.divf %41, %42 : vector<8x128xf32>
    %44 = math.tanh %38 : vector<8x128xf32>
    %45 = vector.extract_strided_slice %43 {offsets = [0, 0], sizes = [8, 32], strides = [1, 1]} : vector<8x128xf32> to vector<8x32xf32>
    %46 = vector.extract_strided_slice %43 {offsets = [0, 32], sizes = [8, 32], strides = [1, 1]} : vector<8x128xf32> to vector<8x32xf32>
    %47 = vector.extract_strided_slice %44 {offsets = [0, 64], sizes = [8, 32], strides = [1, 1]} : vector<8x128xf32> to vector<8x32xf32>
    %48 = vector.extract_strided_slice %43 {offsets = [0, 96], sizes = [8, 32], strides = [1, 1]} : vector<8x128xf32> to vector<8x32xf32>
    %49 = arith.mulf %46, %27 : vector<8x32xf32>
    %50 = arith.mulf %45, %47 : vector<8x32xf32>
    %51 = arith.addf %49, %50 : vector<8x32xf32>
    %52 = math.tanh %51 : vector<8x32xf32>
    %53 = arith.mulf %48, %52 : vector<8x32xf32>
    %54 = arith.index_cast %c1_i32 : i32 to index
    %c0_21 = arith.constant 0 : index
    %c0_22 = arith.constant 0 : index
    %55 = vector.load %arg26[%54, %c0_21, %c0_22] : memref<20x8x32xf32, #tpu.memory_space<vmem>>, vector<1x8x32xf32>
    %56 = vector.shape_cast %55 : vector<1x8x32xf32> to vector<8x32xf32>
    %57 = vector.shape_cast %53 : vector<8x32xf32> to vector<1x8x32xf32>
    tpu.vector_store %arg26[%54, %c0_21, %c0_22], %57 {strides = array<i32>} : memref<20x8x32xf32, #tpu.memory_space<vmem>>, vector<1x8x32xf32>,
    %c2_i32 = arith.constant 2 : i32
    %58 = arith.index_cast %c2_i32 : i32 to index
    %c0_23 = arith.constant 0 : index
    %c0_24 = arith.constant 0 : index
    %59 = vector.load %arg25[%58, %c0_23, %c0_24] : memref<20x8x128xf32, #tpu.memory_space<vmem>>, vector<1x8x128xf32>
    %60 = vector.shape_cast %59 : vector<1x8x128xf32> to vector<8x128xf32>
    %cst_25 = arith.constant dense<0.000000e+00> : vector<8x128xf32>
    %61 = tpu.matmul %53, %8, %cst_25 {dimension_numbers = #tpu.dot_dimension_numbers<[1], [0], [0], [1], [0, 0, 1, 1], [], []>} : vector<8x32xf32>, vector<32x128xf32>, vector<8x128xf32> -> vector<8x128xf32>
    %62 = arith.addf %60, %61 : vector<8x128xf32>
    %63 = arith.negf %62 : vector<8x128xf32>
    %64 = math.exp %63 : vector<8x128xf32>
    %cst_26 = arith.constant 1.000000e+00 : f32
    %65 = vector.broadcast %cst_26 : f32 to vector<8x128xf32>
    %66 = arith.addf %65, %64 : vector<8x128xf32>
    %67 = arith.divf %65, %66 : vector<8x128xf32>
    %68 = math.tanh %62 : vector<8x128xf32>
    %69 = vector.extract_strided_slice %67 {offsets = [0, 0], sizes = [8, 32], strides = [1, 1]} : vector<8x128xf32> to vector<8x32xf32>
    %70 = vector.extract_strided_slice %67 {offsets = [0, 32], sizes = [8, 32], strides = [1, 1]} : vector<8x128xf32> to vector<8x32xf32>
    %71 = vector.extract_strided_slice %68 {offsets = [0, 64], sizes = [8, 32], strides = [1, 1]} : vector<8x128xf32> to vector<8x32xf32>
    %72 = vector.extract_strided_slice %67 {offsets = [0, 96], sizes = [8, 32], strides = [1, 1]} : vector<8x128xf32> to vector<8x32xf32>
    %73 = arith.mulf %70, %51 : vector<8x32xf32>
    %74 = arith.mulf %69, %71 : vector<8x32xf32>
    %75 = arith.addf %73, %74 : vector<8x32xf32>
    %76 = math.tanh %75 : vector<8x32xf32>
    %77 = arith.mulf %72, %76 : vector<8x32xf32>
    %78 = arith.index_cast %c2_i32 : i32 to index
    %c0_27 = arith.constant 0 : index
    %c0_28 = arith.constant 0 : index
    %79 = vector.load %arg26[%78, %c0_27, %c0_28] : memref<20x8x32xf32, #tpu.memory_space<vmem>>, vector<1x8x32xf32>
    %80 = vector.shape_cast %79 : vector<1x8x32xf32> to vector<8x32xf32>
    %81 = vector.shape_cast %77 : vector<8x32xf32> to vector<1x8x32xf32>
    tpu.vector_store %arg26[%78, %c0_27, %c0_28], %81 {strides = array<i32>} : memref<20x8x32xf32, #tpu.memory_space<vmem>>, vector<1x8x32xf32>,
    %c3_i32 = arith.constant 3 : i32
    %82 = arith.index_cast %c3_i32 : i32 to index
    %c0_29 = arith.constant 0 : index
    %c0_30 = arith.constant 0 : index
    %83 = vector.load %arg25[%82, %c0_29, %c0_30] : memref<20x8x128xf32, #tpu.memory_space<vmem>>, vector<1x8x128xf32>
    %84 = vector.shape_cast %83 : vector<1x8x128xf32> to vector<8x128xf32>
    %cst_31 = arith.constant dense<0.000000e+00> : vector<8x128xf32>
    %85 = tpu.matmul %77, %8, %cst_31 {dimension_numbers = #tpu.dot_dimension_numbers<[1], [0], [0], [1], [0, 0, 1, 1], [], []>} : vector<8x32xf32>, vector<32x128xf32>, vector<8x128xf32> -> vector<8x128xf32>
    %86 = arith.addf %84, %85 : vector<8x128xf32>
    %87 = arith.negf %86 : vector<8x128xf32>
    %88 = math.exp %87 : vector<8x128xf32>
    %cst_32 = arith.constant 1.000000e+00 : f32
    %89 = vector.broadcast %cst_32 : f32 to vector<8x128xf32>
    %90 = arith.addf %89, %88 : vector<8x128xf32>
    %91 = arith.divf %89, %90 : vector<8x128xf32>
    %92 = math.tanh %86 : vector<8x128xf32>
    %93 = vector.extract_strided_slice %91 {offsets = [0, 0], sizes = [8, 32], strides = [1, 1]} : vector<8x128xf32> to vector<8x32xf32>
    %94 = vector.extract_strided_slice %91 {offsets = [0, 32], sizes = [8, 32], strides = [1, 1]} : vector<8x128xf32> to vector<8x32xf32>
    %95 = vector.extract_strided_slice %92 {offsets = [0, 64], sizes = [8, 32], strides = [1, 1]} : vector<8x128xf32> to vector<8x32xf32>
    %96 = vector.extract_strided_slice %91 {offsets = [0, 96], sizes = [8, 32], strides = [1, 1]} : vector<8x128xf32> to vector<8x32xf32>
    %97 = arith.mulf %94, %75 : vector<8x32xf32>
    %98 = arith.mulf %93, %95 : vector<8x32xf32>
    %99 = arith.addf %97, %98 : vector<8x32xf32>
    %100 = math.tanh %99 : vector<8x32xf32>
    %101 = arith.mulf %96, %100 : vector<8x32xf32>
    %102 = arith.index_cast %c3_i32 : i32 to index
    %c0_33 = arith.constant 0 : index
    %c0_34 = arith.constant 0 : index
    %103 = vector.load %arg26[%102, %c0_33, %c0_34] : memref<20x8x32xf32, #tpu.memory_space<vmem>>, vector<1x8x32xf32>
    %104 = vector.shape_cast %103 : vector<1x8x32xf32> to vector<8x32xf32>
    %105 = vector.shape_cast %101 : vector<8x32xf32> to vector<1x8x32xf32>
    tpu.vector_store %arg26[%102, %c0_33, %c0_34], %105 {strides = array<i32>} : memref<20x8x32xf32, #tpu.memory_space<vmem>>, vector<1x8x32xf32>,
    %c4_i32 = arith.constant 4 : i32
    %106 = arith.index_cast %c4_i32 : i32 to index
    %c0_35 = arith.constant 0 : index
    %c0_36 = arith.constant 0 : index
    %107 = vector.load %arg25[%106, %c0_35, %c0_36] : memref<20x8x128xf32, #tpu.memory_space<vmem>>, vector<1x8x128xf32>
    %108 = vector.shape_cast %107 : vector<1x8x128xf32> to vector<8x128xf32>
    %cst_37 = arith.constant dense<0.000000e+00> : vector<8x128xf32>
    %109 = tpu.matmul %101, %8, %cst_37 {dimension_numbers = #tpu.dot_dimension_numbers<[1], [0], [0], [1], [0, 0, 1, 1], [], []>} : vector<8x32xf32>, vector<32x128xf32>, vector<8x128xf32> -> vector<8x128xf32>
    %110 = arith.addf %108, %109 : vector<8x128xf32>
    %111 = arith.negf %110 : vector<8x128xf32>
    %112 = math.exp %111 : vector<8x128xf32>
    %cst_38 = arith.constant 1.000000e+00 : f32
    %113 = vector.broadcast %cst_38 : f32 to vector<8x128xf32>
    %114 = arith.addf %113, %112 : vector<8x128xf32>
    %115 = arith.divf %113, %114 : vector<8x128xf32>
    %116 = math.tanh %110 : vector<8x128xf32>
    %117 = vector.extract_strided_slice %115 {offsets = [0, 0], sizes = [8, 32], strides = [1, 1]} : vector<8x128xf32> to vector<8x32xf32>
    %118 = vector.extract_strided_slice %115 {offsets = [0, 32], sizes = [8, 32], strides = [1, 1]} : vector<8x128xf32> to vector<8x32xf32>
    %119 = vector.extract_strided_slice %116 {offsets = [0, 64], sizes = [8, 32], strides = [1, 1]} : vector<8x128xf32> to vector<8x32xf32>
    %120 = vector.extract_strided_slice %115 {offsets = [0, 96], sizes = [8, 32], strides = [1, 1]} : vector<8x128xf32> to vector<8x32xf32>
    %121 = arith.mulf %118, %99 : vector<8x32xf32>
    %122 = arith.mulf %117, %119 : vector<8x32xf32>
    %123 = arith.addf %121, %122 : vector<8x32xf32>
    %124 = math.tanh %123 : vector<8x32xf32>
    %125 = arith.mulf %120, %124 : vector<8x32xf32>
    %126 = arith.index_cast %c4_i32 : i32 to index
    %c0_39 = arith.constant 0 : index
    %c0_40 = arith.constant 0 : index
    %127 = vector.load %arg26[%126, %c0_39, %c0_40] : memref<20x8x32xf32, #tpu.memory_space<vmem>>, vector<1x8x32xf32>
    %128 = vector.shape_cast %127 : vector<1x8x32xf32> to vector<8x32xf32>
    %129 = vector.shape_cast %125 : vector<8x32xf32> to vector<1x8x32xf32>
    tpu.vector_store %arg26[%126, %c0_39, %c0_40], %129 {strides = array<i32>} : memref<20x8x32xf32, #tpu.memory_space<vmem>>, vector<1x8x32xf32>,
    %c5_i32 = arith.constant 5 : i32
    %130 = arith.index_cast %c5_i32 : i32 to index
    %c0_41 = arith.constant 0 : index
    %c0_42 = arith.constant 0 : index
    %131 = vector.load %arg25[%130, %c0_41, %c0_42] : memref<20x8x128xf32, #tpu.memory_space<vmem>>, vector<1x8x128xf32>
    %132 = vector.shape_cast %131 : vector<1x8x128xf32> to vector<8x128xf32>
    %cst_43 = arith.constant dense<0.000000e+00> : vector<8x128xf32>
    %133 = tpu.matmul %125, %8, %cst_43 {dimension_numbers = #tpu.dot_dimension_numbers<[1], [0], [0], [1], [0, 0, 1, 1], [], []>} : vector<8x32xf32>, vector<32x128xf32>, vector<8x128xf32> -> vector<8x128xf32>
    %134 = arith.addf %132, %133 : vector<8x128xf32>
    %135 = arith.negf %134 : vector<8x128xf32>
    %136 = math.exp %135 : vector<8x128xf32>
    %cst_44 = arith.constant 1.000000e+00 : f32
    %137 = vector.broadcast %cst_44 : f32 to vector<8x128xf32>
    %138 = arith.addf %137, %136 : vector<8x128xf32>
    %139 = arith.divf %137, %138 : vector<8x128xf32>
    %140 = math.tanh %134 : vector<8x128xf32>
    %141 = vector.extract_strided_slice %139 {offsets = [0, 0], sizes = [8, 32], strides = [1, 1]} : vector<8x128xf32> to vector<8x32xf32>
    %142 = vector.extract_strided_slice %139 {offsets = [0, 32], sizes = [8, 32], strides = [1, 1]} : vector<8x128xf32> to vector<8x32xf32>
    %143 = vector.extract_strided_slice %140 {offsets = [0, 64], sizes = [8, 32], strides = [1, 1]} : vector<8x128xf32> to vector<8x32xf32>
    %144 = vector.extract_strided_slice %139 {offsets = [0, 96], sizes = [8, 32], strides = [1, 1]} : vector<8x128xf32> to vector<8x32xf32>
    %145 = arith.mulf %142, %123 : vector<8x32xf32>
    %146 = arith.mulf %141, %143 : vector<8x32xf32>
    %147 = arith.addf %145, %146 : vector<8x32xf32>
    %148 = math.tanh %147 : vector<8x32xf32>
    %149 = arith.mulf %144, %148 : vector<8x32xf32>
    %150 = arith.index_cast %c5_i32 : i32 to index
    %c0_45 = arith.constant 0 : index
    %c0_46 = arith.constant 0 : index
    %151 = vector.load %arg26[%150, %c0_45, %c0_46] : memref<20x8x32xf32, #tpu.memory_space<vmem>>, vector<1x8x32xf32>
    %152 = vector.shape_cast %151 : vector<1x8x32xf32> to vector<8x32xf32>
    %153 = vector.shape_cast %149 : vector<8x32xf32> to vector<1x8x32xf32>
    tpu.vector_store %arg26[%150, %c0_45, %c0_46], %153 {strides = array<i32>} : memref<20x8x32xf32, #tpu.memory_space<vmem>>, vector<1x8x32xf32>,
    %c6_i32 = arith.constant 6 : i32
    %154 = arith.index_cast %c6_i32 : i32 to index
    %c0_47 = arith.constant 0 : index
    %c0_48 = arith.constant 0 : index
    %155 = vector.load %arg25[%154, %c0_47, %c0_48] : memref<20x8x128xf32, #tpu.memory_space<vmem>>, vector<1x8x128xf32>
    %156 = vector.shape_cast %155 : vector<1x8x128xf32> to vector<8x128xf32>
    %cst_49 = arith.constant dense<0.000000e+00> : vector<8x128xf32>
    %157 = tpu.matmul %149, %8, %cst_49 {dimension_numbers = #tpu.dot_dimension_numbers<[1], [0], [0], [1], [0, 0, 1, 1], [], []>} : vector<8x32xf32>, vector<32x128xf32>, vector<8x128xf32> -> vector<8x128xf32>
    %158 = arith.addf %156, %157 : vector<8x128xf32>
    %159 = arith.negf %158 : vector<8x128xf32>
    %160 = math.exp %159 : vector<8x128xf32>
    %cst_50 = arith.constant 1.000000e+00 : f32
    %161 = vector.broadcast %cst_50 : f32 to vector<8x128xf32>
    %162 = arith.addf %161, %160 : vector<8x128xf32>
    %163 = arith.divf %161, %162 : vector<8x128xf32>
    %164 = math.tanh %158 : vector<8x128xf32>
    %165 = vector.extract_strided_slice %163 {offsets = [0, 0], sizes = [8, 32], strides = [1, 1]} : vector<8x128xf32> to vector<8x32xf32>
    %166 = vector.extract_strided_slice %163 {offsets = [0, 32], sizes = [8, 32], strides = [1, 1]} : vector<8x128xf32> to vector<8x32xf32>
    %167 = vector.extract_strided_slice %164 {offsets = [0, 64], sizes = [8, 32], strides = [1, 1]} : vector<8x128xf32> to vector<8x32xf32>
    %168 = vector.extract_strided_slice %163 {offsets = [0, 96], sizes = [8, 32], strides = [1, 1]} : vector<8x128xf32> to vector<8x32xf32>
    %169 = arith.mulf %166, %147 : vector<8x32xf32>
    %170 = arith.mulf %165, %167 : vector<8x32xf32>
    %171 = arith.addf %169, %170 : vector<8x32xf32>
    %172 = math.tanh %171 : vector<8x32xf32>
    %173 = arith.mulf %168, %172 : vector<8x32xf32>
    %174 = arith.index_cast %c6_i32 : i32 to index
    %c0_51 = arith.constant 0 : index
    %c0_52 = arith.constant 0 : index
    %175 = vector.load %arg26[%174, %c0_51, %c0_52] : memref<20x8x32xf32, #tpu.memory_space<vmem>>, vector<1x8x32xf32>
    %176 = vector.shape_cast %175 : vector<1x8x32xf32> to vector<8x32xf32>
    %177 = vector.shape_cast %173 : vector<8x32xf32> to vector<1x8x32xf32>
    tpu.vector_store %arg26[%174, %c0_51, %c0_52], %177 {strides = array<i32>} : memref<20x8x32xf32, #tpu.memory_space<vmem>>, vector<1x8x32xf32>,
    %c7_i32 = arith.constant 7 : i32
    %178 = arith.index_cast %c7_i32 : i32 to index
    %c0_53 = arith.constant 0 : index
    %c0_54 = arith.constant 0 : index
    %179 = vector.load %arg25[%178, %c0_53, %c0_54] : memref<20x8x128xf32, #tpu.memory_space<vmem>>, vector<1x8x128xf32>
    %180 = vector.shape_cast %179 : vector<1x8x128xf32> to vector<8x128xf32>
    %cst_55 = arith.constant dense<0.000000e+00> : vector<8x128xf32>
    %181 = tpu.matmul %173, %8, %cst_55 {dimension_numbers = #tpu.dot_dimension_numbers<[1], [0], [0], [1], [0, 0, 1, 1], [], []>} : vector<8x32xf32>, vector<32x128xf32>, vector<8x128xf32> -> vector<8x128xf32>
    %182 = arith.addf %180, %181 : vector<8x128xf32>
    %183 = arith.negf %182 : vector<8x128xf32>
    %184 = math.exp %183 : vector<8x128xf32>
    %cst_56 = arith.constant 1.000000e+00 : f32
    %185 = vector.broadcast %cst_56 : f32 to vector<8x128xf32>
    %186 = arith.addf %185, %184 : vector<8x128xf32>
    %187 = arith.divf %185, %186 : vector<8x128xf32>
    %188 = math.tanh %182 : vector<8x128xf32>
    %189 = vector.extract_strided_slice %187 {offsets = [0, 0], sizes = [8, 32], strides = [1, 1]} : vector<8x128xf32> to vector<8x32xf32>
    %190 = vector.extract_strided_slice %187 {offsets = [0, 32], sizes = [8, 32], strides = [1, 1]} : vector<8x128xf32> to vector<8x32xf32>
    %191 = vector.extract_strided_slice %188 {offsets = [0, 64], sizes = [8, 32], strides = [1, 1]} : vector<8x128xf32> to vector<8x32xf32>
    %192 = vector.extract_strided_slice %187 {offsets = [0, 96], sizes = [8, 32], strides = [1, 1]} : vector<8x128xf32> to vector<8x32xf32>
    %193 = arith.mulf %190, %171 : vector<8x32xf32>
    %194 = arith.mulf %189, %191 : vector<8x32xf32>
    %195 = arith.addf %193, %194 : vector<8x32xf32>
    %196 = math.tanh %195 : vector<8x32xf32>
    %197 = arith.mulf %192, %196 : vector<8x32xf32>
    %198 = arith.index_cast %c7_i32 : i32 to index
    %c0_57 = arith.constant 0 : index
    %c0_58 = arith.constant 0 : index
    %199 = vector.load %arg26[%198, %c0_57, %c0_58] : memref<20x8x32xf32, #tpu.memory_space<vmem>>, vector<1x8x32xf32>
    %200 = vector.shape_cast %199 : vector<1x8x32xf32> to vector<8x32xf32>
    %201 = vector.shape_cast %197 : vector<8x32xf32> to vector<1x8x32xf32>
    tpu.vector_store %arg26[%198, %c0_57, %c0_58], %201 {strides = array<i32>} : memref<20x8x32xf32, #tpu.memory_space<vmem>>, vector<1x8x32xf32>,
    %c8_i32 = arith.constant 8 : i32
    %202 = arith.index_cast %c8_i32 : i32 to index
    %c0_59 = arith.constant 0 : index
    %c0_60 = arith.constant 0 : index
    %203 = vector.load %arg25[%202, %c0_59, %c0_60] : memref<20x8x128xf32, #tpu.memory_space<vmem>>, vector<1x8x128xf32>
    %204 = vector.shape_cast %203 : vector<1x8x128xf32> to vector<8x128xf32>
    %cst_61 = arith.constant dense<0.000000e+00> : vector<8x128xf32>
    %205 = tpu.matmul %197, %8, %cst_61 {dimension_numbers = #tpu.dot_dimension_numbers<[1], [0], [0], [1], [0, 0, 1, 1], [], []>} : vector<8x32xf32>, vector<32x128xf32>, vector<8x128xf32> -> vector<8x128xf32>
    %206 = arith.addf %204, %205 : vector<8x128xf32>
    %207 = arith.negf %206 : vector<8x128xf32>
    %208 = math.exp %207 : vector<8x128xf32>
    %cst_62 = arith.constant 1.000000e+00 : f32
    %209 = vector.broadcast %cst_62 : f32 to vector<8x128xf32>
    %210 = arith.addf %209, %208 : vector<8x128xf32>
    %211 = arith.divf %209, %210 : vector<8x128xf32>
    %212 = math.tanh %206 : vector<8x128xf32>
    %213 = vector.extract_strided_slice %211 {offsets = [0, 0], sizes = [8, 32], strides = [1, 1]} : vector<8x128xf32> to vector<8x32xf32>
    %214 = vector.extract_strided_slice %211 {offsets = [0, 32], sizes = [8, 32], strides = [1, 1]} : vector<8x128xf32> to vector<8x32xf32>
    %215 = vector.extract_strided_slice %212 {offsets = [0, 64], sizes = [8, 32], strides = [1, 1]} : vector<8x128xf32> to vector<8x32xf32>
    %216 = vector.extract_strided_slice %211 {offsets = [0, 96], sizes = [8, 32], strides = [1, 1]} : vector<8x128xf32> to vector<8x32xf32>
    %217 = arith.mulf %214, %195 : vector<8x32xf32>
    %218 = arith.mulf %213, %215 : vector<8x32xf32>
    %219 = arith.addf %217, %218 : vector<8x32xf32>
    %220 = math.tanh %219 : vector<8x32xf32>
    %221 = arith.mulf %216, %220 : vector<8x32xf32>
    %222 = arith.index_cast %c8_i32 : i32 to index
    %c0_63 = arith.constant 0 : index
    %c0_64 = arith.constant 0 : index
    %223 = vector.load %arg26[%222, %c0_63, %c0_64] : memref<20x8x32xf32, #tpu.memory_space<vmem>>, vector<1x8x32xf32>
    %224 = vector.shape_cast %223 : vector<1x8x32xf32> to vector<8x32xf32>
    %225 = vector.shape_cast %221 : vector<8x32xf32> to vector<1x8x32xf32>
    tpu.vector_store %arg26[%222, %c0_63, %c0_64], %225 {strides = array<i32>} : memref<20x8x32xf32, #tpu.memory_space<vmem>>, vector<1x8x32xf32>,
    %c9_i32 = arith.constant 9 : i32
    %226 = arith.index_cast %c9_i32 : i32 to index
    %c0_65 = arith.constant 0 : index
    %c0_66 = arith.constant 0 : index
    %227 = vector.load %arg25[%226, %c0_65, %c0_66] : memref<20x8x128xf32, #tpu.memory_space<vmem>>, vector<1x8x128xf32>
    %228 = vector.shape_cast %227 : vector<1x8x128xf32> to vector<8x128xf32>
    %cst_67 = arith.constant dense<0.000000e+00> : vector<8x128xf32>
    %229 = tpu.matmul %221, %8, %cst_67 {dimension_numbers = #tpu.dot_dimension_numbers<[1], [0], [0], [1], [0, 0, 1, 1], [], []>} : vector<8x32xf32>, vector<32x128xf32>, vector<8x128xf32> -> vector<8x128xf32>
    %230 = arith.addf %228, %229 : vector<8x128xf32>
    %231 = arith.negf %230 : vector<8x128xf32>
    %232 = math.exp %231 : vector<8x128xf32>
    %cst_68 = arith.constant 1.000000e+00 : f32
    %233 = vector.broadcast %cst_68 : f32 to vector<8x128xf32>
    %234 = arith.addf %233, %232 : vector<8x128xf32>
    %235 = arith.divf %233, %234 : vector<8x128xf32>
    %236 = math.tanh %230 : vector<8x128xf32>
    %237 = vector.extract_strided_slice %235 {offsets = [0, 0], sizes = [8, 32], strides = [1, 1]} : vector<8x128xf32> to vector<8x32xf32>
    %238 = vector.extract_strided_slice %235 {offsets = [0, 32], sizes = [8, 32], strides = [1, 1]} : vector<8x128xf32> to vector<8x32xf32>
    %239 = vector.extract_strided_slice %236 {offsets = [0, 64], sizes = [8, 32], strides = [1, 1]} : vector<8x128xf32> to vector<8x32xf32>
    %240 = vector.extract_strided_slice %235 {offsets = [0, 96], sizes = [8, 32], strides = [1, 1]} : vector<8x128xf32> to vector<8x32xf32>
    %241 = arith.mulf %238, %219 : vector<8x32xf32>
    %242 = arith.mulf %237, %239 : vector<8x32xf32>
    %243 = arith.addf %241, %242 : vector<8x32xf32>
    %244 = math.tanh %243 : vector<8x32xf32>
    %245 = arith.mulf %240, %244 : vector<8x32xf32>
    %246 = arith.index_cast %c9_i32 : i32 to index
    %c0_69 = arith.constant 0 : index
    %c0_70 = arith.constant 0 : index
    %247 = vector.load %arg26[%246, %c0_69, %c0_70] : memref<20x8x32xf32, #tpu.memory_space<vmem>>, vector<1x8x32xf32>
    %248 = vector.shape_cast %247 : vector<1x8x32xf32> to vector<8x32xf32>
    %249 = vector.shape_cast %245 : vector<8x32xf32> to vector<1x8x32xf32>
    tpu.vector_store %arg26[%246, %c0_69, %c0_70], %249 {strides = array<i32>} : memref<20x8x32xf32, #tpu.memory_space<vmem>>, vector<1x8x32xf32>,
    %c10_i32 = arith.constant 10 : i32
    %250 = arith.index_cast %c10_i32 : i32 to index
    %c0_71 = arith.constant 0 : index
    %c0_72 = arith.constant 0 : index
    %251 = vector.load %arg25[%250, %c0_71, %c0_72] : memref<20x8x128xf32, #tpu.memory_space<vmem>>, vector<1x8x128xf32>
    %252 = vector.shape_cast %251 : vector<1x8x128xf32> to vector<8x128xf32>
    %cst_73 = arith.constant dense<0.000000e+00> : vector<8x128xf32>
    %253 = tpu.matmul %245, %8, %cst_73 {dimension_numbers = #tpu.dot_dimension_numbers<[1], [0], [0], [1], [0, 0, 1, 1], [], []>} : vector<8x32xf32>, vector<32x128xf32>, vector<8x128xf32> -> vector<8x128xf32>
    %254 = arith.addf %252, %253 : vector<8x128xf32>
    %255 = arith.negf %254 : vector<8x128xf32>
    %256 = math.exp %255 : vector<8x128xf32>
    %cst_74 = arith.constant 1.000000e+00 : f32
    %257 = vector.broadcast %cst_74 : f32 to vector<8x128xf32>
    %258 = arith.addf %257, %256 : vector<8x128xf32>
    %259 = arith.divf %257, %258 : vector<8x128xf32>
    %260 = math.tanh %254 : vector<8x128xf32>
    %261 = vector.extract_strided_slice %259 {offsets = [0, 0], sizes = [8, 32], strides = [1, 1]} : vector<8x128xf32> to vector<8x32xf32>
    %262 = vector.extract_strided_slice %259 {offsets = [0, 32], sizes = [8, 32], strides = [1, 1]} : vector<8x128xf32> to vector<8x32xf32>
    %263 = vector.extract_strided_slice %260 {offsets = [0, 64], sizes = [8, 32], strides = [1, 1]} : vector<8x128xf32> to vector<8x32xf32>
    %264 = vector.extract_strided_slice %259 {offsets = [0, 96], sizes = [8, 32], strides = [1, 1]} : vector<8x128xf32> to vector<8x32xf32>
    %265 = arith.mulf %262, %243 : vector<8x32xf32>
    %266 = arith.mulf %261, %263 : vector<8x32xf32>
    %267 = arith.addf %265, %266 : vector<8x32xf32>
    %268 = math.tanh %267 : vector<8x32xf32>
    %269 = arith.mulf %264, %268 : vector<8x32xf32>
    %270 = arith.index_cast %c10_i32 : i32 to index
    %c0_75 = arith.constant 0 : index
    %c0_76 = arith.constant 0 : index
    %271 = vector.load %arg26[%270, %c0_75, %c0_76] : memref<20x8x32xf32, #tpu.memory_space<vmem>>, vector<1x8x32xf32>
    %272 = vector.shape_cast %271 : vector<1x8x32xf32> to vector<8x32xf32>
    %273 = vector.shape_cast %269 : vector<8x32xf32> to vector<1x8x32xf32>
    tpu.vector_store %arg26[%270, %c0_75, %c0_76], %273 {strides = array<i32>} : memref<20x8x32xf32, #tpu.memory_space<vmem>>, vector<1x8x32xf32>,
    %c11_i32 = arith.constant 11 : i32
    %274 = arith.index_cast %c11_i32 : i32 to index
    %c0_77 = arith.constant 0 : index
    %c0_78 = arith.constant 0 : index
    %275 = vector.load %arg25[%274, %c0_77, %c0_78] : memref<20x8x128xf32, #tpu.memory_space<vmem>>, vector<1x8x128xf32>
    %276 = vector.shape_cast %275 : vector<1x8x128xf32> to vector<8x128xf32>
    %cst_79 = arith.constant dense<0.000000e+00> : vector<8x128xf32>
    %277 = tpu.matmul %269, %8, %cst_79 {dimension_numbers = #tpu.dot_dimension_numbers<[1], [0], [0], [1], [0, 0, 1, 1], [], []>} : vector<8x32xf32>, vector<32x128xf32>, vector<8x128xf32> -> vector<8x128xf32>
    %278 = arith.addf %276, %277 : vector<8x128xf32>
    %279 = arith.negf %278 : vector<8x128xf32>
    %280 = math.exp %279 : vector<8x128xf32>
    %cst_80 = arith.constant 1.000000e+00 : f32
    %281 = vector.broadcast %cst_80 : f32 to vector<8x128xf32>
    %282 = arith.addf %281, %280 : vector<8x128xf32>
    %283 = arith.divf %281, %282 : vector<8x128xf32>
    %284 = math.tanh %278 : vector<8x128xf32>
    %285 = vector.extract_strided_slice %283 {offsets = [0, 0], sizes = [8, 32], strides = [1, 1]} : vector<8x128xf32> to vector<8x32xf32>
    %286 = vector.extract_strided_slice %283 {offsets = [0, 32], sizes = [8, 32], strides = [1, 1]} : vector<8x128xf32> to vector<8x32xf32>
    %287 = vector.extract_strided_slice %284 {offsets = [0, 64], sizes = [8, 32], strides = [1, 1]} : vector<8x128xf32> to vector<8x32xf32>
    %288 = vector.extract_strided_slice %283 {offsets = [0, 96], sizes = [8, 32], strides = [1, 1]} : vector<8x128xf32> to vector<8x32xf32>
    %289 = arith.mulf %286, %267 : vector<8x32xf32>
    %290 = arith.mulf %285, %287 : vector<8x32xf32>
    %291 = arith.addf %289, %290 : vector<8x32xf32>
    %292 = math.tanh %291 : vector<8x32xf32>
    %293 = arith.mulf %288, %292 : vector<8x32xf32>
    %294 = arith.index_cast %c11_i32 : i32 to index
    %c0_81 = arith.constant 0 : index
    %c0_82 = arith.constant 0 : index
    %295 = vector.load %arg26[%294, %c0_81, %c0_82] : memref<20x8x32xf32, #tpu.memory_space<vmem>>, vector<1x8x32xf32>
    %296 = vector.shape_cast %295 : vector<1x8x32xf32> to vector<8x32xf32>
    %297 = vector.shape_cast %293 : vector<8x32xf32> to vector<1x8x32xf32>
    tpu.vector_store %arg26[%294, %c0_81, %c0_82], %297 {strides = array<i32>} : memref<20x8x32xf32, #tpu.memory_space<vmem>>, vector<1x8x32xf32>,
    %c12_i32 = arith.constant 12 : i32
    %298 = arith.index_cast %c12_i32 : i32 to index
    %c0_83 = arith.constant 0 : index
    %c0_84 = arith.constant 0 : index
    %299 = vector.load %arg25[%298, %c0_83, %c0_84] : memref<20x8x128xf32, #tpu.memory_space<vmem>>, vector<1x8x128xf32>
    %300 = vector.shape_cast %299 : vector<1x8x128xf32> to vector<8x128xf32>
    %cst_85 = arith.constant dense<0.000000e+00> : vector<8x128xf32>
    %301 = tpu.matmul %293, %8, %cst_85 {dimension_numbers = #tpu.dot_dimension_numbers<[1], [0], [0], [1], [0, 0, 1, 1], [], []>} : vector<8x32xf32>, vector<32x128xf32>, vector<8x128xf32> -> vector<8x128xf32>
    %302 = arith.addf %300, %301 : vector<8x128xf32>
    %303 = arith.negf %302 : vector<8x128xf32>
    %304 = math.exp %303 : vector<8x128xf32>
    %cst_86 = arith.constant 1.000000e+00 : f32
    %305 = vector.broadcast %cst_86 : f32 to vector<8x128xf32>
    %306 = arith.addf %305, %304 : vector<8x128xf32>
    %307 = arith.divf %305, %306 : vector<8x128xf32>
    %308 = math.tanh %302 : vector<8x128xf32>
    %309 = vector.extract_strided_slice %307 {offsets = [0, 0], sizes = [8, 32], strides = [1, 1]} : vector<8x128xf32> to vector<8x32xf32>
    %310 = vector.extract_strided_slice %307 {offsets = [0, 32], sizes = [8, 32], strides = [1, 1]} : vector<8x128xf32> to vector<8x32xf32>
    %311 = vector.extract_strided_slice %308 {offsets = [0, 64], sizes = [8, 32], strides = [1, 1]} : vector<8x128xf32> to vector<8x32xf32>
    %312 = vector.extract_strided_slice %307 {offsets = [0, 96], sizes = [8, 32], strides = [1, 1]} : vector<8x128xf32> to vector<8x32xf32>
    %313 = arith.mulf %310, %291 : vector<8x32xf32>
    %314 = arith.mulf %309, %311 : vector<8x32xf32>
    %315 = arith.addf %313, %314 : vector<8x32xf32>
    %316 = math.tanh %315 : vector<8x32xf32>
    %317 = arith.mulf %312, %316 : vector<8x32xf32>
    %318 = arith.index_cast %c12_i32 : i32 to index
    %c0_87 = arith.constant 0 : index
    %c0_88 = arith.constant 0 : index
    %319 = vector.load %arg26[%318, %c0_87, %c0_88] : memref<20x8x32xf32, #tpu.memory_space<vmem>>, vector<1x8x32xf32>
    %320 = vector.shape_cast %319 : vector<1x8x32xf32> to vector<8x32xf32>
    %321 = vector.shape_cast %317 : vector<8x32xf32> to vector<1x8x32xf32>
    tpu.vector_store %arg26[%318, %c0_87, %c0_88], %321 {strides = array<i32>} : memref<20x8x32xf32, #tpu.memory_space<vmem>>, vector<1x8x32xf32>,
    %c13_i32 = arith.constant 13 : i32
    %322 = arith.index_cast %c13_i32 : i32 to index
    %c0_89 = arith.constant 0 : index
    %c0_90 = arith.constant 0 : index
    %323 = vector.load %arg25[%322, %c0_89, %c0_90] : memref<20x8x128xf32, #tpu.memory_space<vmem>>, vector<1x8x128xf32>
    %324 = vector.shape_cast %323 : vector<1x8x128xf32> to vector<8x128xf32>
    %cst_91 = arith.constant dense<0.000000e+00> : vector<8x128xf32>
    %325 = tpu.matmul %317, %8, %cst_91 {dimension_numbers = #tpu.dot_dimension_numbers<[1], [0], [0], [1], [0, 0, 1, 1], [], []>} : vector<8x32xf32>, vector<32x128xf32>, vector<8x128xf32> -> vector<8x128xf32>
    %326 = arith.addf %324, %325 : vector<8x128xf32>
    %327 = arith.negf %326 : vector<8x128xf32>
    %328 = math.exp %327 : vector<8x128xf32>
    %cst_92 = arith.constant 1.000000e+00 : f32
    %329 = vector.broadcast %cst_92 : f32 to vector<8x128xf32>
    %330 = arith.addf %329, %328 : vector<8x128xf32>
    %331 = arith.divf %329, %330 : vector<8x128xf32>
    %332 = math.tanh %326 : vector<8x128xf32>
    %333 = vector.extract_strided_slice %331 {offsets = [0, 0], sizes = [8, 32], strides = [1, 1]} : vector<8x128xf32> to vector<8x32xf32>
    %334 = vector.extract_strided_slice %331 {offsets = [0, 32], sizes = [8, 32], strides = [1, 1]} : vector<8x128xf32> to vector<8x32xf32>
    %335 = vector.extract_strided_slice %332 {offsets = [0, 64], sizes = [8, 32], strides = [1, 1]} : vector<8x128xf32> to vector<8x32xf32>
    %336 = vector.extract_strided_slice %331 {offsets = [0, 96], sizes = [8, 32], strides = [1, 1]} : vector<8x128xf32> to vector<8x32xf32>
    %337 = arith.mulf %334, %315 : vector<8x32xf32>
    %338 = arith.mulf %333, %335 : vector<8x32xf32>
    %339 = arith.addf %337, %338 : vector<8x32xf32>
    %340 = math.tanh %339 : vector<8x32xf32>
    %341 = arith.mulf %336, %340 : vector<8x32xf32>
    %342 = arith.index_cast %c13_i32 : i32 to index
    %c0_93 = arith.constant 0 : index
    %c0_94 = arith.constant 0 : index
    %343 = vector.load %arg26[%342, %c0_93, %c0_94] : memref<20x8x32xf32, #tpu.memory_space<vmem>>, vector<1x8x32xf32>
    %344 = vector.shape_cast %343 : vector<1x8x32xf32> to vector<8x32xf32>
    %345 = vector.shape_cast %341 : vector<8x32xf32> to vector<1x8x32xf32>
    tpu.vector_store %arg26[%342, %c0_93, %c0_94], %345 {strides = array<i32>} : memref<20x8x32xf32, #tpu.memory_space<vmem>>, vector<1x8x32xf32>,
    %c14_i32 = arith.constant 14 : i32
    %346 = arith.index_cast %c14_i32 : i32 to index
    %c0_95 = arith.constant 0 : index
    %c0_96 = arith.constant 0 : index
    %347 = vector.load %arg25[%346, %c0_95, %c0_96] : memref<20x8x128xf32, #tpu.memory_space<vmem>>, vector<1x8x128xf32>
    %348 = vector.shape_cast %347 : vector<1x8x128xf32> to vector<8x128xf32>
    %cst_97 = arith.constant dense<0.000000e+00> : vector<8x128xf32>
    %349 = tpu.matmul %341, %8, %cst_97 {dimension_numbers = #tpu.dot_dimension_numbers<[1], [0], [0], [1], [0, 0, 1, 1], [], []>} : vector<8x32xf32>, vector<32x128xf32>, vector<8x128xf32> -> vector<8x128xf32>
    %350 = arith.addf %348, %349 : vector<8x128xf32>
    %351 = arith.negf %350 : vector<8x128xf32>
    %352 = math.exp %351 : vector<8x128xf32>
    %cst_98 = arith.constant 1.000000e+00 : f32
    %353 = vector.broadcast %cst_98 : f32 to vector<8x128xf32>
    %354 = arith.addf %353, %352 : vector<8x128xf32>
    %355 = arith.divf %353, %354 : vector<8x128xf32>
    %356 = math.tanh %350 : vector<8x128xf32>
    %357 = vector.extract_strided_slice %355 {offsets = [0, 0], sizes = [8, 32], strides = [1, 1]} : vector<8x128xf32> to vector<8x32xf32>
    %358 = vector.extract_strided_slice %355 {offsets = [0, 32], sizes = [8, 32], strides = [1, 1]} : vector<8x128xf32> to vector<8x32xf32>
    %359 = vector.extract_strided_slice %356 {offsets = [0, 64], sizes = [8, 32], strides = [1, 1]} : vector<8x128xf32> to vector<8x32xf32>
    %360 = vector.extract_strided_slice %355 {offsets = [0, 96], sizes = [8, 32], strides = [1, 1]} : vector<8x128xf32> to vector<8x32xf32>
    %361 = arith.mulf %358, %339 : vector<8x32xf32>
    %362 = arith.mulf %357, %359 : vector<8x32xf32>
    %363 = arith.addf %361, %362 : vector<8x32xf32>
    %364 = math.tanh %363 : vector<8x32xf32>
    %365 = arith.mulf %360, %364 : vector<8x32xf32>
    %366 = arith.index_cast %c14_i32 : i32 to index
    %c0_99 = arith.constant 0 : index
    %c0_100 = arith.constant 0 : index
    %367 = vector.load %arg26[%366, %c0_99, %c0_100] : memref<20x8x32xf32, #tpu.memory_space<vmem>>, vector<1x8x32xf32>
    %368 = vector.shape_cast %367 : vector<1x8x32xf32> to vector<8x32xf32>
    %369 = vector.shape_cast %365 : vector<8x32xf32> to vector<1x8x32xf32>
    tpu.vector_store %arg26[%366, %c0_99, %c0_100], %369 {strides = array<i32>} : memref<20x8x32xf32, #tpu.memory_space<vmem>>, vector<1x8x32xf32>,
    %c15_i32 = arith.constant 15 : i32
    %370 = arith.index_cast %c15_i32 : i32 to index
    %c0_101 = arith.constant 0 : index
    %c0_102 = arith.constant 0 : index
    %371 = vector.load %arg25[%370, %c0_101, %c0_102] : memref<20x8x128xf32, #tpu.memory_space<vmem>>, vector<1x8x128xf32>
    %372 = vector.shape_cast %371 : vector<1x8x128xf32> to vector<8x128xf32>
    %cst_103 = arith.constant dense<0.000000e+00> : vector<8x128xf32>
    %373 = tpu.matmul %365, %8, %cst_103 {dimension_numbers = #tpu.dot_dimension_numbers<[1], [0], [0], [1], [0, 0, 1, 1], [], []>} : vector<8x32xf32>, vector<32x128xf32>, vector<8x128xf32> -> vector<8x128xf32>
    %374 = arith.addf %372, %373 : vector<8x128xf32>
    %375 = arith.negf %374 : vector<8x128xf32>
    %376 = math.exp %375 : vector<8x128xf32>
    %cst_104 = arith.constant 1.000000e+00 : f32
    %377 = vector.broadcast %cst_104 : f32 to vector<8x128xf32>
    %378 = arith.addf %377, %376 : vector<8x128xf32>
    %379 = arith.divf %377, %378 : vector<8x128xf32>
    %380 = math.tanh %374 : vector<8x128xf32>
    %381 = vector.extract_strided_slice %379 {offsets = [0, 0], sizes = [8, 32], strides = [1, 1]} : vector<8x128xf32> to vector<8x32xf32>
    %382 = vector.extract_strided_slice %379 {offsets = [0, 32], sizes = [8, 32], strides = [1, 1]} : vector<8x128xf32> to vector<8x32xf32>
    %383 = vector.extract_strided_slice %380 {offsets = [0, 64], sizes = [8, 32], strides = [1, 1]} : vector<8x128xf32> to vector<8x32xf32>
    %384 = vector.extract_strided_slice %379 {offsets = [0, 96], sizes = [8, 32], strides = [1, 1]} : vector<8x128xf32> to vector<8x32xf32>
    %385 = arith.mulf %382, %363 : vector<8x32xf32>
    %386 = arith.mulf %381, %383 : vector<8x32xf32>
    %387 = arith.addf %385, %386 : vector<8x32xf32>
    %388 = math.tanh %387 : vector<8x32xf32>
    %389 = arith.mulf %384, %388 : vector<8x32xf32>
    %390 = arith.index_cast %c15_i32 : i32 to index
    %c0_105 = arith.constant 0 : index
    %c0_106 = arith.constant 0 : index
    %391 = vector.load %arg26[%390, %c0_105, %c0_106] : memref<20x8x32xf32, #tpu.memory_space<vmem>>, vector<1x8x32xf32>
    %392 = vector.shape_cast %391 : vector<1x8x32xf32> to vector<8x32xf32>
    %393 = vector.shape_cast %389 : vector<8x32xf32> to vector<1x8x32xf32>
    tpu.vector_store %arg26[%390, %c0_105, %c0_106], %393 {strides = array<i32>} : memref<20x8x32xf32, #tpu.memory_space<vmem>>, vector<1x8x32xf32>,
    %c16_i32 = arith.constant 16 : i32
    %394 = arith.index_cast %c16_i32 : i32 to index
    %c0_107 = arith.constant 0 : index
    %c0_108 = arith.constant 0 : index
    %395 = vector.load %arg25[%394, %c0_107, %c0_108] : memref<20x8x128xf32, #tpu.memory_space<vmem>>, vector<1x8x128xf32>
    %396 = vector.shape_cast %395 : vector<1x8x128xf32> to vector<8x128xf32>
    %cst_109 = arith.constant dense<0.000000e+00> : vector<8x128xf32>
    %397 = tpu.matmul %389, %8, %cst_109 {dimension_numbers = #tpu.dot_dimension_numbers<[1], [0], [0], [1], [0, 0, 1, 1], [], []>} : vector<8x32xf32>, vector<32x128xf32>, vector<8x128xf32> -> vector<8x128xf32>
    %398 = arith.addf %396, %397 : vector<8x128xf32>
    %399 = arith.negf %398 : vector<8x128xf32>
    %400 = math.exp %399 : vector<8x128xf32>
    %cst_110 = arith.constant 1.000000e+00 : f32
    %401 = vector.broadcast %cst_110 : f32 to vector<8x128xf32>
    %402 = arith.addf %401, %400 : vector<8x128xf32>
    %403 = arith.divf %401, %402 : vector<8x128xf32>
    %404 = math.tanh %398 : vector<8x128xf32>
    %405 = vector.extract_strided_slice %403 {offsets = [0, 0], sizes = [8, 32], strides = [1, 1]} : vector<8x128xf32> to vector<8x32xf32>
    %406 = vector.extract_strided_slice %403 {offsets = [0, 32], sizes = [8, 32], strides = [1, 1]} : vector<8x128xf32> to vector<8x32xf32>
    %407 = vector.extract_strided_slice %404 {offsets = [0, 64], sizes = [8, 32], strides = [1, 1]} : vector<8x128xf32> to vector<8x32xf32>
    %408 = vector.extract_strided_slice %403 {offsets = [0, 96], sizes = [8, 32], strides = [1, 1]} : vector<8x128xf32> to vector<8x32xf32>
    %409 = arith.mulf %406, %387 : vector<8x32xf32>
    %410 = arith.mulf %405, %407 : vector<8x32xf32>
    %411 = arith.addf %409, %410 : vector<8x32xf32>
    %412 = math.tanh %411 : vector<8x32xf32>
    %413 = arith.mulf %408, %412 : vector<8x32xf32>
    %414 = arith.index_cast %c16_i32 : i32 to index
    %c0_111 = arith.constant 0 : index
    %c0_112 = arith.constant 0 : index
    %415 = vector.load %arg26[%414, %c0_111, %c0_112] : memref<20x8x32xf32, #tpu.memory_space<vmem>>, vector<1x8x32xf32>
    %416 = vector.shape_cast %415 : vector<1x8x32xf32> to vector<8x32xf32>
    %417 = vector.shape_cast %413 : vector<8x32xf32> to vector<1x8x32xf32>
    tpu.vector_store %arg26[%414, %c0_111, %c0_112], %417 {strides = array<i32>} : memref<20x8x32xf32, #tpu.memory_space<vmem>>, vector<1x8x32xf32>,
    %c17_i32 = arith.constant 17 : i32
    %418 = arith.index_cast %c17_i32 : i32 to index
    %c0_113 = arith.constant 0 : index
    %c0_114 = arith.constant 0 : index
    %419 = vector.load %arg25[%418, %c0_113, %c0_114] : memref<20x8x128xf32, #tpu.memory_space<vmem>>, vector<1x8x128xf32>
    %420 = vector.shape_cast %419 : vector<1x8x128xf32> to vector<8x128xf32>
    %cst_115 = arith.constant dense<0.000000e+00> : vector<8x128xf32>
    %421 = tpu.matmul %413, %8, %cst_115 {dimension_numbers = #tpu.dot_dimension_numbers<[1], [0], [0], [1], [0, 0, 1, 1], [], []>} : vector<8x32xf32>, vector<32x128xf32>, vector<8x128xf32> -> vector<8x128xf32>
    %422 = arith.addf %420, %421 : vector<8x128xf32>
    %423 = arith.negf %422 : vector<8x128xf32>
    %424 = math.exp %423 : vector<8x128xf32>
    %cst_116 = arith.constant 1.000000e+00 : f32
    %425 = vector.broadcast %cst_116 : f32 to vector<8x128xf32>
    %426 = arith.addf %425, %424 : vector<8x128xf32>
    %427 = arith.divf %425, %426 : vector<8x128xf32>
    %428 = math.tanh %422 : vector<8x128xf32>
    %429 = vector.extract_strided_slice %427 {offsets = [0, 0], sizes = [8, 32], strides = [1, 1]} : vector<8x128xf32> to vector<8x32xf32>
    %430 = vector.extract_strided_slice %427 {offsets = [0, 32], sizes = [8, 32], strides = [1, 1]} : vector<8x128xf32> to vector<8x32xf32>
    %431 = vector.extract_strided_slice %428 {offsets = [0, 64], sizes = [8, 32], strides = [1, 1]} : vector<8x128xf32> to vector<8x32xf32>
    %432 = vector.extract_strided_slice %427 {offsets = [0, 96], sizes = [8, 32], strides = [1, 1]} : vector<8x128xf32> to vector<8x32xf32>
    %433 = arith.mulf %430, %411 : vector<8x32xf32>
    %434 = arith.mulf %429, %431 : vector<8x32xf32>
    %435 = arith.addf %433, %434 : vector<8x32xf32>
    %436 = math.tanh %435 : vector<8x32xf32>
    %437 = arith.mulf %432, %436 : vector<8x32xf32>
    %438 = arith.index_cast %c17_i32 : i32 to index
    %c0_117 = arith.constant 0 : index
    %c0_118 = arith.constant 0 : index
    %439 = vector.load %arg26[%438, %c0_117, %c0_118] : memref<20x8x32xf32, #tpu.memory_space<vmem>>, vector<1x8x32xf32>
    %440 = vector.shape_cast %439 : vector<1x8x32xf32> to vector<8x32xf32>
    %441 = vector.shape_cast %437 : vector<8x32xf32> to vector<1x8x32xf32>
    tpu.vector_store %arg26[%438, %c0_117, %c0_118], %441 {strides = array<i32>} : memref<20x8x32xf32, #tpu.memory_space<vmem>>, vector<1x8x32xf32>,
    %c18_i32 = arith.constant 18 : i32
    %442 = arith.index_cast %c18_i32 : i32 to index
    %c0_119 = arith.constant 0 : index
    %c0_120 = arith.constant 0 : index
    %443 = vector.load %arg25[%442, %c0_119, %c0_120] : memref<20x8x128xf32, #tpu.memory_space<vmem>>, vector<1x8x128xf32>
    %444 = vector.shape_cast %443 : vector<1x8x128xf32> to vector<8x128xf32>
    %cst_121 = arith.constant dense<0.000000e+00> : vector<8x128xf32>
    %445 = tpu.matmul %437, %8, %cst_121 {dimension_numbers = #tpu.dot_dimension_numbers<[1], [0], [0], [1], [0, 0, 1, 1], [], []>} : vector<8x32xf32>, vector<32x128xf32>, vector<8x128xf32> -> vector<8x128xf32>
    %446 = arith.addf %444, %445 : vector<8x128xf32>
    %447 = arith.negf %446 : vector<8x128xf32>
    %448 = math.exp %447 : vector<8x128xf32>
    %cst_122 = arith.constant 1.000000e+00 : f32
    %449 = vector.broadcast %cst_122 : f32 to vector<8x128xf32>
    %450 = arith.addf %449, %448 : vector<8x128xf32>
    %451 = arith.divf %449, %450 : vector<8x128xf32>
    %452 = math.tanh %446 : vector<8x128xf32>
    %453 = vector.extract_strided_slice %451 {offsets = [0, 0], sizes = [8, 32], strides = [1, 1]} : vector<8x128xf32> to vector<8x32xf32>
    %454 = vector.extract_strided_slice %451 {offsets = [0, 32], sizes = [8, 32], strides = [1, 1]} : vector<8x128xf32> to vector<8x32xf32>
    %455 = vector.extract_strided_slice %452 {offsets = [0, 64], sizes = [8, 32], strides = [1, 1]} : vector<8x128xf32> to vector<8x32xf32>
    %456 = vector.extract_strided_slice %451 {offsets = [0, 96], sizes = [8, 32], strides = [1, 1]} : vector<8x128xf32> to vector<8x32xf32>
    %457 = arith.mulf %454, %435 : vector<8x32xf32>
    %458 = arith.mulf %453, %455 : vector<8x32xf32>
    %459 = arith.addf %457, %458 : vector<8x32xf32>
    %460 = math.tanh %459 : vector<8x32xf32>
    %461 = arith.mulf %456, %460 : vector<8x32xf32>
    %462 = arith.index_cast %c18_i32 : i32 to index
    %c0_123 = arith.constant 0 : index
    %c0_124 = arith.constant 0 : index
    %463 = vector.load %arg26[%462, %c0_123, %c0_124] : memref<20x8x32xf32, #tpu.memory_space<vmem>>, vector<1x8x32xf32>
    %464 = vector.shape_cast %463 : vector<1x8x32xf32> to vector<8x32xf32>
    %465 = vector.shape_cast %461 : vector<8x32xf32> to vector<1x8x32xf32>
    tpu.vector_store %arg26[%462, %c0_123, %c0_124], %465 {strides = array<i32>} : memref<20x8x32xf32, #tpu.memory_space<vmem>>, vector<1x8x32xf32>,
    %c19_i32 = arith.constant 19 : i32
    %466 = arith.index_cast %c19_i32 : i32 to index
    %c0_125 = arith.constant 0 : index
    %c0_126 = arith.constant 0 : index
    %467 = vector.load %arg25[%466, %c0_125, %c0_126] : memref<20x8x128xf32, #tpu.memory_space<vmem>>, vector<1x8x128xf32>
    %468 = vector.shape_cast %467 : vector<1x8x128xf32> to vector<8x128xf32>
    %cst_127 = arith.constant dense<0.000000e+00> : vector<8x128xf32>
    %469 = tpu.matmul %461, %8, %cst_127 {dimension_numbers = #tpu.dot_dimension_numbers<[1], [0], [0], [1], [0, 0, 1, 1], [], []>} : vector<8x32xf32>, vector<32x128xf32>, vector<8x128xf32> -> vector<8x128xf32>
    %470 = arith.addf %468, %469 : vector<8x128xf32>
    %471 = arith.negf %470 : vector<8x128xf32>
    %472 = math.exp %471 : vector<8x128xf32>
    %cst_128 = arith.constant 1.000000e+00 : f32
    %473 = vector.broadcast %cst_128 : f32 to vector<8x128xf32>
    %474 = arith.addf %473, %472 : vector<8x128xf32>
    %475 = arith.divf %473, %474 : vector<8x128xf32>
    %476 = math.tanh %470 : vector<8x128xf32>
    %477 = vector.extract_strided_slice %475 {offsets = [0, 0], sizes = [8, 32], strides = [1, 1]} : vector<8x128xf32> to vector<8x32xf32>
    %478 = vector.extract_strided_slice %475 {offsets = [0, 32], sizes = [8, 32], strides = [1, 1]} : vector<8x128xf32> to vector<8x32xf32>
    %479 = vector.extract_strided_slice %476 {offsets = [0, 64], sizes = [8, 32], strides = [1, 1]} : vector<8x128xf32> to vector<8x32xf32>
    %480 = vector.extract_strided_slice %475 {offsets = [0, 96], sizes = [8, 32], strides = [1, 1]} : vector<8x128xf32> to vector<8x32xf32>
    %481 = arith.mulf %478, %459 : vector<8x32xf32>
    %482 = arith.mulf %477, %479 : vector<8x32xf32>
    %483 = arith.addf %481, %482 : vector<8x32xf32>
    %484 = math.tanh %483 : vector<8x32xf32>
    %485 = arith.mulf %480, %484 : vector<8x32xf32>
    %486 = arith.index_cast %c19_i32 : i32 to index
    %c0_129 = arith.constant 0 : index
    %c0_130 = arith.constant 0 : index
    %487 = vector.load %arg26[%486, %c0_129, %c0_130] : memref<20x8x32xf32, #tpu.memory_space<vmem>>, vector<1x8x32xf32>
    %488 = vector.shape_cast %487 : vector<1x8x32xf32> to vector<8x32xf32>
    %489 = vector.shape_cast %485 : vector<8x32xf32> to vector<1x8x32xf32>
    tpu.vector_store %arg26[%486, %c0_129, %c0_130], %489 {strides = array<i32>} : memref<20x8x32xf32, #tpu.memory_space<vmem>>, vector<1x8x32xf32>,
    %c20_i32 = arith.constant 20 : i32
    %c0_131 = arith.constant 0 : index
    %c0_132 = arith.constant 0 : index
    %c0_133 = arith.constant 0 : index
    %490 = vector.load %arg26[%c0_131, %c0_132, %c0_133] : memref<20x8x32xf32, #tpu.memory_space<vmem>>, vector<20x8x32xf32>
    %c0_134 = arith.constant 0 : index
    %c0_135 = arith.constant 0 : index
    %491 = vector.load %arg4[%c0_134, %c0_135] : memref<64x64xf32, #tpu.memory_space<vmem>>, vector<64x64xf32>
    %c0_136 = arith.constant 0 : index
    %c0_137 = arith.constant 0 : index
    %492 = vector.load %arg5[%c0_136, %c0_137] : memref<1x64xf32, #tpu.memory_space<vmem>>, vector<1x64xf32>
    %c0_138 = arith.constant 0 : index
    %c0_139 = arith.constant 0 : index
    %493 = vector.load %arg6[%c0_138, %c0_139] : memref<128x64xf32, #tpu.memory_space<vmem>>, vector<128x64xf32>
    %c0_140 = arith.constant 0 : index
    %c0_141 = arith.constant 0 : index
    %494 = vector.load %arg7[%c0_140, %c0_141] : memref<1x64xf32, #tpu.memory_space<vmem>>, vector<1x64xf32>
    %495 = vector.extract_strided_slice %490 {offsets = [0, 0, 0], sizes = [19, 8, 32], strides = [1, 1, 1]} : vector<20x8x32xf32> to vector<19x8x32xf32>
    %496 = vector.extract_strided_slice %490 {offsets = [1, 0, 0], sizes = [19, 8, 32], strides = [1, 1, 1]} : vector<20x8x32xf32> to vector<19x8x32xf32>
    %497 = tpu.concatenate %495, %496 in 2 : vector<19x8x32xf32>, vector<19x8x32xf32> -> vector<19x8x64xf32>
    %498 = vector.shape_cast %497 : vector<19x8x64xf32> to vector<152x64xf32>
    %cst_142 = arith.constant dense<0.000000e+00> : vector<152x64xf32>
    %499 = tpu.matmul %498, %491, %cst_142 {dimension_numbers = #tpu.dot_dimension_numbers<[1], [0], [0], [1], [0, 0, 1, 1], [], []>} : vector<152x64xf32>, vector<64x64xf32>, vector<152x64xf32> -> vector<152x64xf32>
    %500 = vector.broadcast %492 : vector<1x64xf32> to vector<152x64xf32>
    %501 = arith.addf %499, %500 : vector<152x64xf32>
    %cst_143 = arith.constant 0.000000e+00 : f32
    %502 = vector.broadcast %cst_143 : f32 to vector<152x64xf32>
    %503 = arith.maximumf %501, %502 : vector<152x64xf32>
    %504 = vector.shape_cast %503 : vector<152x64xf32> to vector<19x8x64xf32>
    %505 = vector.extract_strided_slice %504 {offsets = [0, 0, 0], sizes = [18, 8, 64], strides = [1, 1, 1]} : vector<19x8x64xf32> to vector<18x8x64xf32>
    %506 = vector.extract_strided_slice %504 {offsets = [1, 0, 0], sizes = [18, 8, 64], strides = [1, 1, 1]} : vector<19x8x64xf32> to vector<18x8x64xf32>
    %507 = tpu.concatenate %505, %506 in 2 : vector<18x8x64xf32>, vector<18x8x64xf32> -> vector<18x8x128xf32>
    %508 = vector.shape_cast %507 : vector<18x8x128xf32> to vector<144x128xf32>
    %cst_144 = arith.constant dense<0.000000e+00> : vector<144x64xf32>
    %509 = tpu.matmul %508, %493, %cst_144 {dimension_numbers = #tpu.dot_dimension_numbers<[1], [0], [0], [1], [0, 0, 1, 1], [], []>} : vector<144x128xf32>, vector<128x64xf32>, vector<144x64xf32> -> vector<144x64xf32>
    %510 = vector.broadcast %494 : vector<1x64xf32> to vector<144x64xf32>
    %511 = arith.addf %509, %510 : vector<144x64xf32>
    %cst_145 = arith.constant 0.000000e+00 : f32
    %512 = vector.broadcast %cst_145 : f32 to vector<144x64xf32>
    %513 = arith.maximumf %511, %512 : vector<144x64xf32>
    %514 = vector.extract_strided_slice %490 {offsets = [1, 0, 0], sizes = [18, 8, 32], strides = [1, 1, 1]} : vector<20x8x32xf32> to vector<18x8x32xf32>
    %515 = vector.shape_cast %514 : vector<18x8x32xf32> to vector<144x32xf32>
    %c0_146 = arith.constant 0 : index
    %c0_147 = arith.constant 0 : index
    %516 = vector.load %arg8[%c0_146, %c0_147] : memref<32x64xf32, #tpu.memory_space<vmem>>, vector<32x64xf32>
    %cst_148 = arith.constant dense<0.000000e+00> : vector<144x64xf32>
    %517 = tpu.matmul %515, %516, %cst_148 {dimension_numbers = #tpu.dot_dimension_numbers<[1], [0], [0], [1], [0, 0, 1, 1], [], []>} : vector<144x32xf32>, vector<32x64xf32>, vector<144x64xf32> -> vector<144x64xf32>
    %c0_149 = arith.constant 0 : index
    %c0_150 = arith.constant 0 : index
    %518 = vector.load %arg9[%c0_149, %c0_150] : memref<1x64xf32, #tpu.memory_space<vmem>>, vector<1x64xf32>
    %519 = vector.broadcast %518 : vector<1x64xf32> to vector<144x64xf32>
    %520 = arith.addf %517, %519 : vector<144x64xf32>
    %521 = arith.addf %513, %520 : vector<144x64xf32>
    %cst_151 = arith.constant 0.000000e+00 : f32
    %522 = vector.broadcast %cst_151 : f32 to vector<144x64xf32>
    %523 = arith.maximumf %521, %522 : vector<144x64xf32>
    %524 = vector.shape_cast %523 : vector<144x64xf32> to vector<18x8x64xf32>
    %c0_152 = arith.constant 0 : index
    %c0_153 = arith.constant 0 : index
    %525 = vector.load %arg10[%c0_152, %c0_153] : memref<128x64xf32, #tpu.memory_space<vmem>>, vector<128x64xf32>
    %c0_154 = arith.constant 0 : index
    %c0_155 = arith.constant 0 : index
    %526 = vector.load %arg11[%c0_154, %c0_155] : memref<1x64xf32, #tpu.memory_space<vmem>>, vector<1x64xf32>
    %c0_156 = arith.constant 0 : index
    %c0_157 = arith.constant 0 : index
    %527 = vector.load %arg12[%c0_156, %c0_157] : memref<128x64xf32, #tpu.memory_space<vmem>>, vector<128x64xf32>
    %c0_158 = arith.constant 0 : index
    %c0_159 = arith.constant 0 : index
    %528 = vector.load %arg13[%c0_158, %c0_159] : memref<1x64xf32, #tpu.memory_space<vmem>>, vector<1x64xf32>
    %529 = vector.extract_strided_slice %524 {offsets = [0, 0, 0], sizes = [16, 8, 64], strides = [1, 1, 1]} : vector<18x8x64xf32> to vector<16x8x64xf32>
    %530 = vector.extract_strided_slice %524 {offsets = [2, 0, 0], sizes = [16, 8, 64], strides = [1, 1, 1]} : vector<18x8x64xf32> to vector<16x8x64xf32>
    %531 = tpu.concatenate %529, %530 in 2 : vector<16x8x64xf32>, vector<16x8x64xf32> -> vector<16x8x128xf32>
    %532 = vector.shape_cast %531 : vector<16x8x128xf32> to vector<128x128xf32>
    %cst_160 = arith.constant dense<0.000000e+00> : vector<128x64xf32>
    %533 = tpu.matmul %532, %525, %cst_160 {dimension_numbers = #tpu.dot_dimension_numbers<[1], [0], [0], [1], [0, 0, 1, 1], [], []>} : vector<128x128xf32>, vector<128x64xf32>, vector<128x64xf32> -> vector<128x64xf32>
    %534 = vector.broadcast %526 : vector<1x64xf32> to vector<128x64xf32>
    %535 = arith.addf %533, %534 : vector<128x64xf32>
    %cst_161 = arith.constant 0.000000e+00 : f32
    %536 = vector.broadcast %cst_161 : f32 to vector<128x64xf32>
    %537 = arith.maximumf %535, %536 : vector<128x64xf32>
    %538 = vector.shape_cast %537 : vector<128x64xf32> to vector<16x8x64xf32>
    %539 = vector.extract_strided_slice %538 {offsets = [0, 0, 0], sizes = [14, 8, 64], strides = [1, 1, 1]} : vector<16x8x64xf32> to vector<14x8x64xf32>
    %540 = vector.extract_strided_slice %538 {offsets = [2, 0, 0], sizes = [14, 8, 64], strides = [1, 1, 1]} : vector<16x8x64xf32> to vector<14x8x64xf32>
    %541 = tpu.concatenate %539, %540 in 2 : vector<14x8x64xf32>, vector<14x8x64xf32> -> vector<14x8x128xf32>
    %542 = vector.shape_cast %541 : vector<14x8x128xf32> to vector<112x128xf32>
    %cst_162 = arith.constant dense<0.000000e+00> : vector<112x64xf32>
    %543 = tpu.matmul %542, %527, %cst_162 {dimension_numbers = #tpu.dot_dimension_numbers<[1], [0], [0], [1], [0, 0, 1, 1], [], []>} : vector<112x128xf32>, vector<128x64xf32>, vector<112x64xf32> -> vector<112x64xf32>
    %544 = vector.broadcast %528 : vector<1x64xf32> to vector<112x64xf32>
    %545 = arith.addf %543, %544 : vector<112x64xf32>
    %cst_163 = arith.constant 0.000000e+00 : f32
    %546 = vector.broadcast %cst_163 : f32 to vector<112x64xf32>
    %547 = arith.maximumf %545, %546 : vector<112x64xf32>
    %548 = vector.extract_strided_slice %524 {offsets = [2, 0, 0], sizes = [14, 8, 64], strides = [1, 1, 1]} : vector<18x8x64xf32> to vector<14x8x64xf32>
    %549 = vector.shape_cast %548 : vector<14x8x64xf32> to vector<112x64xf32>
    %550 = arith.addf %547, %549 : vector<112x64xf32>
    %cst_164 = arith.constant 0.000000e+00 : f32
    %551 = vector.broadcast %cst_164 : f32 to vector<112x64xf32>
    %552 = arith.maximumf %550, %551 : vector<112x64xf32>
    %553 = vector.shape_cast %552 : vector<112x64xf32> to vector<14x8x64xf32>
    %c0_165 = arith.constant 0 : index
    %c0_166 = arith.constant 0 : index
    %554 = vector.load %arg14[%c0_165, %c0_166] : memref<128x32xf32, #tpu.memory_space<vmem>>, vector<128x32xf32>
    %c0_167 = arith.constant 0 : index
    %c0_168 = arith.constant 0 : index
    %555 = vector.load %arg15[%c0_167, %c0_168] : memref<1x32xf32, #tpu.memory_space<vmem>>, vector<1x32xf32>
    %c0_169 = arith.constant 0 : index
    %c0_170 = arith.constant 0 : index
    %556 = vector.load %arg16[%c0_169, %c0_170] : memref<64x32xf32, #tpu.memory_space<vmem>>, vector<64x32xf32>
    %c0_171 = arith.constant 0 : index
    %c0_172 = arith.constant 0 : index
    %557 = vector.load %arg17[%c0_171, %c0_172] : memref<1x32xf32, #tpu.memory_space<vmem>>, vector<1x32xf32>
    %558 = vector.extract_strided_slice %553 {offsets = [0, 0, 0], sizes = [10, 8, 64], strides = [1, 1, 1]} : vector<14x8x64xf32> to vector<10x8x64xf32>
    %559 = vector.extract_strided_slice %553 {offsets = [4, 0, 0], sizes = [10, 8, 64], strides = [1, 1, 1]} : vector<14x8x64xf32> to vector<10x8x64xf32>
    %560 = tpu.concatenate %558, %559 in 2 : vector<10x8x64xf32>, vector<10x8x64xf32> -> vector<10x8x128xf32>
    %561 = vector.shape_cast %560 : vector<10x8x128xf32> to vector<80x128xf32>
    %cst_173 = arith.constant dense<0.000000e+00> : vector<80x32xf32>
    %562 = tpu.matmul %561, %554, %cst_173 {dimension_numbers = #tpu.dot_dimension_numbers<[1], [0], [0], [1], [0, 0, 1, 1], [], []>} : vector<80x128xf32>, vector<128x32xf32>, vector<80x32xf32> -> vector<80x32xf32>
    %563 = vector.broadcast %555 : vector<1x32xf32> to vector<80x32xf32>
    %564 = arith.addf %562, %563 : vector<80x32xf32>
    %cst_174 = arith.constant 0.000000e+00 : f32
    %565 = vector.broadcast %cst_174 : f32 to vector<80x32xf32>
    %566 = arith.maximumf %564, %565 : vector<80x32xf32>
    %567 = vector.shape_cast %566 : vector<80x32xf32> to vector<10x8x32xf32>
    %568 = vector.extract_strided_slice %567 {offsets = [0, 0, 0], sizes = [6, 8, 32], strides = [1, 1, 1]} : vector<10x8x32xf32> to vector<6x8x32xf32>
    %569 = vector.extract_strided_slice %567 {offsets = [4, 0, 0], sizes = [6, 8, 32], strides = [1, 1, 1]} : vector<10x8x32xf32> to vector<6x8x32xf32>
    %570 = tpu.concatenate %568, %569 in 2 : vector<6x8x32xf32>, vector<6x8x32xf32> -> vector<6x8x64xf32>
    %571 = vector.shape_cast %570 : vector<6x8x64xf32> to vector<48x64xf32>
    %cst_175 = arith.constant dense<0.000000e+00> : vector<48x32xf32>
    %572 = tpu.matmul %571, %556, %cst_175 {dimension_numbers = #tpu.dot_dimension_numbers<[1], [0], [0], [1], [0, 0, 1, 1], [], []>} : vector<48x64xf32>, vector<64x32xf32>, vector<48x32xf32> -> vector<48x32xf32>
    %573 = vector.broadcast %557 : vector<1x32xf32> to vector<48x32xf32>
    %574 = arith.addf %572, %573 : vector<48x32xf32>
    %cst_176 = arith.constant 0.000000e+00 : f32
    %575 = vector.broadcast %cst_176 : f32 to vector<48x32xf32>
    %576 = arith.maximumf %574, %575 : vector<48x32xf32>
    %577 = vector.extract_strided_slice %553 {offsets = [4, 0, 0], sizes = [6, 8, 64], strides = [1, 1, 1]} : vector<14x8x64xf32> to vector<6x8x64xf32>
    %578 = vector.shape_cast %577 : vector<6x8x64xf32> to vector<48x64xf32>
    %c0_177 = arith.constant 0 : index
    %c0_178 = arith.constant 0 : index
    %579 = vector.load %arg18[%c0_177, %c0_178] : memref<64x32xf32, #tpu.memory_space<vmem>>, vector<64x32xf32>
    %cst_179 = arith.constant dense<0.000000e+00> : vector<48x32xf32>
    %580 = tpu.matmul %578, %579, %cst_179 {dimension_numbers = #tpu.dot_dimension_numbers<[1], [0], [0], [1], [0, 0, 1, 1], [], []>} : vector<48x64xf32>, vector<64x32xf32>, vector<48x32xf32> -> vector<48x32xf32>
    %c0_180 = arith.constant 0 : index
    %c0_181 = arith.constant 0 : index
    %581 = vector.load %arg19[%c0_180, %c0_181] : memref<1x32xf32, #tpu.memory_space<vmem>>, vector<1x32xf32>
    %582 = vector.broadcast %581 : vector<1x32xf32> to vector<48x32xf32>
    %583 = arith.addf %580, %582 : vector<48x32xf32>
    %584 = arith.addf %576, %583 : vector<48x32xf32>
    %cst_182 = arith.constant 0.000000e+00 : f32
    %585 = vector.broadcast %cst_182 : f32 to vector<48x32xf32>
    %586 = arith.maximumf %584, %585 : vector<48x32xf32>
    %587 = vector.shape_cast %586 : vector<48x32xf32> to vector<6x8x32xf32>
    %c0_183 = arith.constant 0 : index
    %c0_184 = arith.constant 0 : index
    %588 = vector.load %arg20[%c0_183, %c0_184] : memref<32x16xf32, #tpu.memory_space<vmem>>, vector<32x16xf32>
    %c0_185 = arith.constant 0 : index
    %c0_186 = arith.constant 0 : index
    %589 = vector.load %arg22[%c0_185, %c0_186] : memref<16x128xf32, #tpu.memory_space<vmem>>, vector<16x128xf32>
    %590 = vector.shape_cast %587 : vector<6x8x32xf32> to vector<48x32xf32>
    %cst_187 = arith.constant dense<0.000000e+00> : vector<48x16xf32>
    %591 = tpu.matmul %590, %588, %cst_187 {dimension_numbers = #tpu.dot_dimension_numbers<[1], [0], [0], [1], [0, 0, 1, 1], [], []>} : vector<48x32xf32>, vector<32x16xf32>, vector<48x16xf32> -> vector<48x16xf32>
    %c0_188 = arith.constant 0 : index
    %c0_189 = arith.constant 0 : index
    %592 = vector.load %arg21[%c0_188, %c0_189] : memref<1x16xf32, #tpu.memory_space<vmem>>, vector<1x16xf32>
    %593 = vector.broadcast %592 : vector<1x16xf32> to vector<48x16xf32>
    %594 = arith.addf %591, %593 : vector<48x16xf32>
    %cst_190 = arith.constant 0.000000e+00 : f32
    %595 = vector.broadcast %cst_190 : f32 to vector<48x16xf32>
    %596 = arith.maximumf %594, %595 : vector<48x16xf32>
    %cst_191 = arith.constant dense<0.000000e+00> : vector<48x128xf32>
    %597 = tpu.matmul %596, %589, %cst_191 {dimension_numbers = #tpu.dot_dimension_numbers<[1], [0], [0], [1], [0, 0, 1, 1], [], []>} : vector<48x16xf32>, vector<16x128xf32>, vector<48x128xf32> -> vector<48x128xf32>
    %c0_192 = arith.constant 0 : index
    %c0_193 = arith.constant 0 : index
    %598 = vector.load %arg23[%c0_192, %c0_193] : memref<1x128xf32, #tpu.memory_space<vmem>>, vector<1x128xf32>
    %599 = vector.broadcast %598 : vector<1x128xf32> to vector<48x128xf32>
    %600 = arith.addf %597, %599 : vector<48x128xf32>
    %c0_194 = arith.constant 0 : index
    %c0_195 = arith.constant 0 : index
    %601 = vector.load %arg24[%c0_194, %c0_195] : memref<48x128xf32, #tpu.memory_space<vmem>>, vector<48x128xf32>
    tpu.vector_store %arg24[%c0_194, %c0_195], %600 {strides = array<i32>} : memref<48x128xf32, #tpu.memory_space<vmem>>, vector<48x128xf32>,
    return
  }
}

</mosaic_0001>

<bundles_post_ra>
// kernel: tpu_custom_call.1
= control target key start
LH: loop header
LB: loop body
LE: loop exit
PB: predicated region body
PF: predicated region fallthrough
CT: control target
= control target key end

     0   :  { %s7812_s0 = inlined_call_operand.vmem [shape: f32[160,8], index: 0, kind: input, shape index: {}]   ;;  %s7813_s1 = inlined_call_operand.vmem [shape: f32[8,128], index: 1, kind: input, shape index: {}]   ;;  %s7814_s2 = inlined_call_operand.vmem [shape: f32[32,128], index: 2, kind: input, shape index: {}]   ;;  %s7815_s3 = inlined_call_operand.vmem [shape: f32[1,128], index: 3, kind: input, shape index: {}]   ;;  %s7816_s4 = inlined_call_operand.vmem [shape: f32[64,64], index: 4, kind: input, shape index: {}]   ;;  %s7817_s5 = inlined_call_operand.vmem [shape: f32[1,64], index: 5, kind: input, shape index: {}]   ;;  %s7818_s6 = inlined_call_operand.vmem [shape: f32[128,64], index: 6, kind: input, shape index: {}]   ;;  %s7819_s7 = inlined_call_operand.vmem [shape: f32[1,64], index: 7, kind: input, shape index: {}]   ;;  %s7820_s8 = inlined_call_operand.vmem [shape: f32[32,64], index: 8, kind: input, shape index: {}]   ;;  %s7821_s9 = inlined_call_operand.vmem [shape: f32[1,64], index: 9, kind: input, shape index: {}]   ;;  %s7822_s10 = inlined_call_operand.vmem [shape: f32[128,64], index: 10, kind: input, shape index: {}]   ;;  %s7823_s11 = inlined_call_operand.vmem [shape: f32[1,64], index: 11, kind: input, shape index: {}]   ;;  %s7824_s12 = inlined_call_operand.vmem [shape: f32[128,64], index: 12, kind: input, shape index: {}]   ;;  %s7825_s13 = inlined_call_operand.vmem [shape: f32[1,64], index: 13, kind: input, shape index: {}]   ;;  %s7826_s14 = inlined_call_operand.vmem [shape: f32[128,32], index: 14, kind: input, shape index: {}]   ;;  %s7827_s15 = inlined_call_operand.vmem [shape: f32[1,32], index: 15, kind: input, shape index: {}]   ;;  %s7828_s16 = inlined_call_operand.vmem [shape: f32[64,32], index: 16, kind: input, shape index: {}]   ;;  %s7829_s17 = inlined_call_operand.vmem [shape: f32[1,32], index: 17, kind: input, shape index: {}]   ;;  %s7830_s18 = inlined_call_operand.vmem [shape: f32[64,32], index: 18, kind: input, shape index: {}]   ;;  %s7831_s19 = inlined_call_operand.vmem [shape: f32[1,32], index: 19, kind: input, shape index: {}]   ;;  %s7832_s20 = inlined_call_operand.vmem [shape: f32[32,16], index: 20, kind: input, shape index: {}]   ;;  %s7833_s21 = inlined_call_operand.vmem [shape: f32[1,16], index: 21, kind: input, shape index: {}]   ;;  %s7834_s22 = inlined_call_operand.vmem [shape: f32[16,128], index: 22, kind: input, shape index: {}]   ;;  %s7835_s23 = inlined_call_operand.vmem [shape: f32[1,128], index: 23, kind: input, shape index: {}]   ;;  %s7836_s24 = inlined_call_operand.hbm [shape: f32[48,128], index: 24, kind: output, shape index: {}]  }
   0x1   :  { %7843 = sst [smem:[#allocation7_spill]] %s7812_s0 }
   0x2   :  { %7844 = sst [smem:[#allocation8_spill]] %s7813_s1 }
   0x3   :  { %7845 = sst [smem:[#allocation9_spill]] %s7814_s2 }
   0x4   :  { %7846 = sst [smem:[#allocation10_spill]] %s7815_s3 }
   0x5   :  { %7847 = sst [smem:[#allocation11_spill]] %s7816_s4 }
   0x6   :  { %7848 = sst [smem:[#allocation12_spill]] %s7817_s5 }
   0x7   :  { %7849 = sst [smem:[#allocation13_spill]] %s7818_s6 }
   0x8   :  { %7850 = sst [smem:[#allocation14_spill]] %s7819_s7 }
   0x9   :  { %7851 = sst [smem:[#allocation15_spill]] %s7820_s8 }
   0xa   :  { %7852 = sst [smem:[#allocation16_spill]] %s7831_s19 }
   0xb   :  { %s7853_s27 = sld [smem:[#allocation8_spill]]  ;;  %vm106_vm0 = vcmask 64512   ;;  %v6119_v3 = vmov 0.0  }
   0xc   :  { %s7854_s19 = sld [smem:[#allocation7_spill]]  ;;  %5153 = vmatprep.subr.mxu1 %v6119_v3 }
   0xd   :  { %s7855_s0 = sld [smem:[#allocation9_spill]] }
  0x11   :  { %v98_v0 = vld [vmem:[%s7853_s27] sm:$0xff] }
  0x12   :  { %v78_v1 = vld [vmem:[%s7854_s19] sm:$0xff]  ;;  %5121 = vmatprep.subr.mxu0 %v98_v0  ;;  %v79_v4 = vld [vmem:[%s7854_s19 + $0x8] sm:$0xff] }
  0x13   :  { %v6260_v2 = vld [vmem:[%s7855_s0 + $0x18] sm:$0xff]  ;;  %5122 = vmatpush3.msra.mxu0 %v98_v0  ;;  %5123 = vmatprep.mubr.msk.f32.mxu0 %vm106_vm0, %v78_v1  ;;  %v6270_v5 = vld [vmem:[%s7855_s0 + $0x10] sm:$0xff] }
  0x14   :  { %29 = vsyncpa [#allocation5], 0  ;;  %5154 = vmatpush3.msra.mxu1 %v6260_v2  ;;  %5124 = vmatmul.mubr.msk.f32.vlgmr.msra.gmra.mxu0 %vm106_vm0, %v79_v4  ;;  %v6278_v6 = vld [vmem:[%s7855_s0 + $0x8] sm:$0xff]  ;;  %vm6120_vm1 = vmmov 0   ;;  %v6288_v7 = vld [vmem:[%s7855_s0] sm:$0xff]  ;;  %s7856_s28 = sld [smem:[#allocation10_spill]] }
  0x15   :  { %5155 = vmatprep.subr.mxu1 %v6119_v3  ;;  %5161 = vmatprep.mubr.msk.f32.mxu1 %vm6120_vm1, %v6119_v3  ;;  %s6121_s6 = smov 64   ;;  %s6122_s2 = smov 32   ;;  %vm357_vm2 = vcmask 261120   ;;  %v80_v43 = vld [vmem:[%s7854_s19 + $0x10] sm:$0xff]  ;;  %v81_v44 = vld [vmem:[%s7854_s19 + $0x18] sm:$0xff]  ;;  %vm2603_vm3 = vcmask 523264  }
  0x16   :  { %5156 = vmatpush3.msra.mxu1 %v6270_v5  ;;  %5208 = vmatprep.subr.mxu0 %v6119_v3  ;;  %s7857_s7 = sld [smem:[#allocation11_spill]]  ;;  %vm4516_vm4 = vcmask 130048   ;;  %s6123_s29 = smov [#allocation4]  }
  0x17   :  { %5157 = vmatprep.subr.mxu1 %v6119_v3  ;;  %5209 = vmatpush3.msra.mxu0 %v6260_v2  ;;  %s7858_s3 = sld [smem:[#allocation13_spill]] }
  0x18   :  { %5158 = vmatpush3.msra.mxu1 %v6278_v6  ;;  %5210 = vmatprep.subr.mxu0 %v6119_v3 }
  0x19   :  { %5159 = vmatprep.subr.mxu1 %v6119_v3  ;;  %5211 = vmatpush3.msra.mxu0 %v6270_v5 }
  0x1a   :  { %5160 = vmatpush3.msra.mxu1 %v6288_v7  ;;  %5212 = vmatprep.subr.mxu0 %v6119_v3  ;;  %v6316_v9 = vld [vmem:[%s7856_s28] ss:$0 sm:$0xff] }
  0x1b   :  { %5162 = vmatmul.mubr.f32.vlgmr.msra.gmra.mxu1 %v6119_v3  ;;  %5164 = vmatprep.subr.mxu1 %v6119_v3 }
  0x1c   :  { %5165 = vmatpush3.msra.mxu1 %v6260_v2  ;;  %5172 = vmatprep.mubr.msk.f32.mxu1 %vm6120_vm1, %v6119_v3 }
  0x1d   :  { %5166 = vmatprep.subr.mxu1 %v6119_v3  ;;  %5213 = vmatpush3.msra.mxu0 %v6278_v6 }
  0x1e   :  { %5167 = vmatpush3.msra.mxu1 %v6270_v5  ;;  %5214 = vmatprep.subr.mxu0 %v6119_v3 }
  0x1f   :  { %5168 = vmatprep.subr.mxu1 %v6119_v3  ;;  %5215 = vmatpush3.msra.mxu0 %v6288_v7 }
  0x20   :  { %5169 = vmatpush3.msra.mxu1 %v6278_v6  ;;  %5230 = vmatprep.subr.mxu0 %v6119_v3 }
  0x21   :  { %5170 = vmatprep.subr.mxu1 %v6119_v3  ;;  %5126 = vmatprep.mubr.msk.f32.mxu0 %vm106_vm0, %v80_v43 }
  0x22   :  { %5171 = vmatpush3.msra.mxu1 %v6288_v7  ;;  %5127 = vmatmul.mubr.msk.f32.gmra.mxu0 %vm106_vm0, %v81_v44 }
  0x23   :  { %5175 = vmatprep.subr.mxu1 %v6119_v3 }
  0xd4   :  { %v5125_v8 = vpop.f32.mrf.mxu0 }
  0xd5   :  { %v239_v29 = vadd.f32 %v5125_v8, %v6316_v9 }
  0xd6   :  { %v233_v10 = vpop.f32.mrf.mxu0 }
  0xd7   :  { %v234_v11 = vadd.f32 %v6316_v9, %v233_v10 }
  0xdb   :  { %v427_v12 = vpop.f32.mrf.mxu1 }
  0xdc   :  { %v431_v13 = vadd.f32 %v427_v12, %v234_v11 }
  0xdd   :  { %v5163_v14 = vpop.f32.mrf.mxu1 }
  0xde   :  { %5932 = vtanh.f32 %v431_v13  ;;  %v4673_v16 = vmul.f32 -1.442695, %v431_v13 }
  0xe0   :  { %5934 = vpow2.f32 %v4673_v16 }
  0xe2   :  { %v5128_v49 = vpop.f32.mrf.mxu0 }
  0xe3   :  { %v249_v11 = vadd.f32 %v5128_v49, %v6316_v9  ;;  %v86_v49 = vld [vmem:[%s7854_s19 + $0x40] sm:$0xff] }
  0xe4   :  { %v243_v50 = vpop.f32.mrf.mxu0 }
  0xe5   :  { %v244_v51 = vadd.f32 %v6316_v9, %v243_v50  ;;  %v87_v50 = vld [vmem:[%s7854_s19 + $0x48] sm:$0xff] }
  0xeb   :  { %v5933_v15 = vpop.eup %5932 }
  0xec   :  { %441 = vrot.lane.b32.xlu0 %v5933_v15, %s6121_s6 }
  0xed   :  { %v5935_v17 = vpop.eup %5934 }
  0xee   :  { %v435_v18 = vadd.f32 1.0, %v5935_v17 }
  0xf0   :  { %5936 = vrcp.f32 %v435_v18 }
  0xfd   :  { %v5937_v19 = vpop.eup %5936 }
  0xfe   :  { %v439_v22 = vmul.f32 0.0, %v5937_v19 }
 0x15e   :  { %v442_v20 = vpop.permute.xlu0 %441 }
 0x15f   :  { %v444_v21 = vmul.f32 %v5937_v19, %v442_v20 }
 0x161   :  { %446 = vrot.lane.b32.xlu0 %v444_v21, %s6122_s2 }
 0x1d3   :  { %v447_v23 = vpop.permute.xlu0 %446 }
 0x1d4   :  { %v449_v24 = vadd.f32 %v447_v23, %v439_v22 }
 0x1d6   :  { %5938 = vtanh.f32 %v449_v24 }
 0x1e3   :  { %v5939_v25 = vpop.eup %5938 }
 0x1e4   :  { %452 = vrot.lane.b32.xlu1 %v5939_v25, %s6121_s6  ;;  %v82_v25 = vld [vmem:[%s7854_s19 + $0x20] sm:$0xff] }
 0x1e5   :  { %5129 = vmatprep.mubr.msk.f32.mxu0 %vm106_vm0, %v82_v25 }
 0x256   :  { %v453_v26 = vpop.permute.xlu1 %452 }
 0x257   :  { %v455_v27 = vmul.f32 %v5937_v19, %v453_v26  ;;  %v83_v26 = vld [vmem:[%s7854_s19 + $0x28] sm:$0xff] }
 0x258   :  { %5130 = vmatmul.mubr.msk.f32.gmra.mxu0 %vm106_vm0, %v83_v26 }
 0x259   :  { %457 = vrot.lane.b32.xlu1 %v455_v27, %s6122_s2 }
 0x2cb   :  { %v458_v28 = vpop.permute.xlu1 %457 }
 0x2cc   :  { %460 = vst.msk [vmem:[#allocation3] sm:$0xff] %vm357_vm2, %v458_v28  ;;  %5173 = vmatmul.mubr.msk.f32.vlgmr.msra.gmra.mxu1 %vm357_vm2, %v458_v28 }
 0x2cd   :  { %5176 = vmatpush3.msra.mxu1 %v6260_v2  ;;  %5183 = vmatprep.mubr.msk.f32.mxu1 %vm6120_vm1, %v6119_v3 }
 0x2ce   :  { %5177 = vmatprep.subr.mxu1 %v6119_v3 }
 0x2cf   :  { %5178 = vmatpush3.msra.mxu1 %v6270_v5 }
 0x2d0   :  { %5179 = vmatprep.subr.mxu1 %v6119_v3 }
 0x2d1   :  { %5180 = vmatpush3.msra.mxu1 %v6278_v6 }
 0x2d2   :  { %5181 = vmatprep.subr.mxu1 %v6119_v3 }
 0x2d3   :  { %5182 = vmatpush3.msra.mxu1 %v6288_v7 }
 0x2d4   :  { %5186 = vmatprep.subr.mxu1 %v6119_v3 }
 0x38c   :  { %v531_v30 = vpop.f32.mrf.mxu1 }
 0x38d   :  { %v535_v31 = vadd.f32 %v531_v30, %v239_v29 }
 0x38e   :  { %v5174_v32 = vpop.f32.mrf.mxu1 }
 0x38f   :  { %5940 = vtanh.f32 %v535_v31  ;;  %v4675_v34 = vmul.f32 -1.442695, %v535_v31  ;;  %v6402_v31 = vpop.f32.mrf.mxu0 }
 0x391   :  { %5942 = vpow2.f32 %v4675_v34  ;;  %v253_v32 = vpop.f32.mrf.mxu0 }
 0x39c   :  { %v5941_v33 = vpop.eup %5940 }
 0x39d   :  { %545 = vrot.lane.b32.xlu0 %v5941_v33, %s6121_s6  ;;  %v254_v33 = vadd.f32 %v6316_v9, %v253_v32 }
 0x39e   :  { %v5943_v35 = vpop.eup %5942 }
 0x39f   :  { %v539_v36 = vadd.f32 1.0, %v5943_v35 }
 0x3a1   :  { %5944 = vrcp.f32 %v539_v36 }
 0x3ae   :  { %v5945_v37 = vpop.eup %5944 }
 0x3af   :  { %v543_v40 = vmul.f32 %v5945_v37, %v449_v24 }
 0x40f   :  { %v546_v38 = vpop.permute.xlu0 %545 }
 0x410   :  { %v548_v39 = vmul.f32 %v5945_v37, %v546_v38 }
 0x412   :  { %550 = vrot.lane.b32.xlu1 %v548_v39, %s6122_s2 }
 0x484   :  { %v551_v41 = vpop.permute.xlu1 %550 }
 0x485   :  { %v553_v42 = vadd.f32 %v551_v41, %v543_v40 }
 0x487   :  { %5946 = vtanh.f32 %v553_v42 }
 0x494   :  { %v5947_v45 = vpop.eup %5946 }
 0x495   :  { %556 = vrot.lane.b32.xlu0 %v5947_v45, %s6121_s6 }
 0x507   :  { %v557_v46 = vpop.permute.xlu0 %556 }
 0x508   :  { %v559_v47 = vmul.f32 %v5945_v37, %v557_v46 }
 0x50a   :  { %561 = vrot.lane.b32.xlu1 %v559_v47, %s6122_s2  ;;  %v84_v47 = vld [vmem:[%s7854_s19 + $0x30] sm:$0xff] }
 0x50b   :  { %5132 = vmatprep.mubr.msk.f32.mxu0 %vm106_vm0, %v84_v47 }
 0x57c   :  { %v562_v48 = vpop.permute.xlu1 %561 }
 0x57d   :  { %565 = vst.msk [vmem:[#allocation3 + $0x8] sm:$0xff] %vm357_vm2, %v562_v48  ;;  %5184 = vmatmul.mubr.msk.f32.vlgmr.msra.gmra.mxu1 %vm357_vm2, %v562_v48  ;;  %v85_v48 = vld [vmem:[%s7854_s19 + $0x38] sm:$0xff] }
 0x57e   :  { %5187 = vmatpush3.msra.mxu1 %v6260_v2  ;;  %5194 = vmatprep.mubr.msk.f32.mxu1 %vm6120_vm1, %v6119_v3 }
 0x57f   :  { %5188 = vmatprep.subr.mxu1 %v6119_v3  ;;  %5133 = vmatmul.mubr.msk.f32.gmra.mxu0 %vm106_vm0, %v85_v48 }
 0x580   :  { %5189 = vmatpush3.msra.mxu1 %v6270_v5  ;;  %5135 = vmatprep.mubr.msk.f32.mxu0 %vm106_vm0, %v86_v49 }
 0x581   :  { %5190 = vmatprep.subr.mxu1 %v6119_v3 }
 0x582   :  { %5191 = vmatpush3.msra.mxu1 %v6278_v6 }
 0x583   :  { %5192 = vmatprep.subr.mxu1 %v6119_v3  ;;  %5136 = vmatmul.mubr.msk.f32.gmra.mxu0 %vm106_vm0, %v87_v50 }
 0x584   :  { %5193 = vmatpush3.msra.mxu1 %v6288_v7 }
 0x585   :  { %5197 = vmatprep.subr.mxu1 %v6119_v3 }
 0x63d   :  { %v636_v52 = vpop.f32.mrf.mxu1 }
 0x63e   :  { %v640_v53 = vadd.f32 %v636_v52, %v244_v51  ;;  %v88_v51 = vld [vmem:[%s7854_s19 + $0x50] sm:$0xff]  ;;  %v89_v52 = vld [vmem:[%s7854_s19 + $0x58] sm:$0xff] }
 0x63f   :  { %v5185_v54 = vpop.f32.mrf.mxu1  ;;  %5138 = vmatprep.mubr.msk.f32.mxu0 %vm106_vm0, %v88_v51 }
 0x640   :  { %5948 = vtanh.f32 %v640_v53  ;;  %v4677_v56 = vmul.f32 -1.442695, %v640_v53  ;;  %v90_v53 = vld [vmem:[%s7854_s19 + $0x60] sm:$0xff]  ;;  %5139 = vmatmul.mubr.msk.f32.gmra.mxu0 %vm106_vm0, %v89_v52 }
 0x641   :  { %5141 = vmatprep.mubr.msk.f32.mxu0 %vm106_vm0, %v90_v53 }
 0x642   :  { %5950 = vpow2.f32 %v4677_v56  ;;  %v92_v56 = vld [vmem:[%s7854_s19 + $0x70] sm:$0xff] }
 0x64d   :  { %v5949_v55 = vpop.eup %5948 }
 0x64e   :  { %650 = vrot.lane.b32.xlu0 %v5949_v55, %s6121_s6  ;;  %v91_v55 = vld [vmem:[%s7854_s19 + $0x68] sm:$0xff] }
 0x64f   :  { %v5951_v57 = vpop.eup %5950  ;;  %5142 = vmatmul.mubr.msk.f32.gmra.mxu0 %vm106_vm0, %v91_v55 }
 0x650   :  { %v644_v58 = vadd.f32 1.0, %v5951_v57  ;;  %5144 = vmatprep.mubr.msk.f32.mxu0 %vm106_vm0, %v92_v56  ;;  %v93_v57 = vld [vmem:[%s7854_s19 + $0x78] sm:$0xff] }
 0x652   :  { %5952 = vrcp.f32 %v644_v58  ;;  %v94_v58 = vld [vmem:[%s7854_s19 + $0x80] sm:$0xff] }
 0x653   :  { %5145 = vmatmul.mubr.msk.f32.gmra.mxu0 %vm106_vm0, %v93_v57 }
 0x654   :  { %5147 = vmatprep.mubr.msk.f32.mxu0 %vm106_vm0, %v94_v58 }
 0x65f   :  { %v5953_v59 = vpop.eup %5952 }
 0x660   :  { %v648_v62 = vmul.f32 %v5953_v59, %v553_v42 }
 0x6c0   :  { %v651_v60 = vpop.permute.xlu0 %650 }
 0x6c1   :  { %v653_v61 = vmul.f32 %v5953_v59, %v651_v60  ;;  %v96_v60 = vld [vmem:[%s7854_s19 + $0x90] sm:$0xff] }
 0x6c3   :  { %655 = vrot.lane.b32.xlu1 %v653_v61, %s6122_s2  ;;  %v97_v61 = vld [vmem:[%s7854_s19 + $0x98] sm:$0xff] }
 0x735   :  { %v656_v63 = vpop.permute.xlu1 %655 }
 0x736   :  { %v658_v0 = vadd.f32 %v656_v63, %v648_v62 }
 0x738   :  { %5954 = vtanh.f32 %v658_v0 }
 0x745   :  { %v5955_v1 = vpop.eup %5954 }
 0x746   :  { %661 = vrot.lane.b32.xlu0 %v5955_v1, %s6121_s6  ;;  %v6482_v1 = vpop.f32.mrf.mxu0 }
 0x747   :  { %v269_v57 = vadd.f32 %v6482_v1, %v6316_v9 }
 0x7b8   :  { %v662_v4 = vpop.permute.xlu0 %661 }
 0x7b9   :  { %v664_v8 = vmul.f32 %v5953_v59, %v662_v4  ;;  %v95_v59 = vld [vmem:[%s7854_s19 + $0x88] sm:$0xff]  ;;  %v263_v4 = vpop.f32.mrf.mxu0 }
 0x7ba   :  { %5148 = vmatmul.mubr.msk.f32.gmra.mxu0 %vm106_vm0, %v95_v59 }
 0x7bb   :  { %666 = vrot.lane.b32.xlu1 %v664_v8, %s6122_s2  ;;  %5150 = vmatprep.mubr.msk.f32.mxu0 %vm106_vm0, %v96_v60  ;;  %v6484_v8 = vpop.f32.mrf.mxu0 }
 0x7be   :  { %5151 = vmatmul.mubr.msk.f32.gmra.mxu0 %vm106_vm0, %v97_v61 }
 0x7bf   :  { %5216 = vmatprep.mubr.msk.f32.mxu0 %vm6120_vm1, %v6119_v3 }
 0x82d   :  { %v667_v10 = vpop.permute.xlu1 %666 }
 0x82e   :  { %670 = vst.msk [vmem:[#allocation3 + $0x10] sm:$0xff] %vm357_vm2, %v667_v10  ;;  %5195 = vmatmul.mubr.msk.f32.vlgmr.msra.gmra.mxu1 %vm357_vm2, %v667_v10  ;;  %v6486_v10 = vpop.f32.mrf.mxu0 }
 0x82f   :  { %5198 = vmatpush3.msra.mxu1 %v6260_v2  ;;  %5205 = vmatprep.mubr.msk.f32.mxu1 %vm6120_vm1, %v6119_v3 }
 0x830   :  { %5199 = vmatprep.subr.mxu1 %v6119_v3 }
 0x831   :  { %5200 = vmatpush3.msra.mxu1 %v6270_v5 }
 0x832   :  { %5201 = vmatprep.subr.mxu1 %v6119_v3 }
 0x833   :  { %5202 = vmatpush3.msra.mxu1 %v6278_v6 }
 0x834   :  { %5203 = vmatprep.subr.mxu1 %v6119_v3 }
 0x835   :  { %5204 = vmatpush3.msra.mxu1 %v6288_v7 }
 0x836   :  { %5219 = vmatprep.subr.mxu1 %v6119_v3 }
 0x8ee   :  { %v741_v12 = vpop.f32.mrf.mxu1 }
 0x8ef   :  { %v745_v13 = vadd.f32 %v741_v12, %v249_v11  ;;  %v6488_v11 = vpop.f32.mrf.mxu0 }
 0x8f0   :  { %v5196_v14 = vpop.f32.mrf.mxu1 }
 0x8f1   :  { %5956 = vtanh.f32 %v745_v13  ;;  %v4679_v16 = vmul.f32 -1.442695, %v745_v13  ;;  %v6490_v12 = vpop.f32.mrf.mxu0 }
 0x8f3   :  { %5958 = vpow2.f32 %v4679_v16  ;;  %v6492_v13 = vpop.f32.mrf.mxu0 }
 0x8f5   :  { %v6494_v14 = vpop.f32.mrf.mxu0 }
 0x8fe   :  { %v5957_v15 = vpop.eup %5956 }
 0x8ff   :  { %755 = vrot.lane.b32.xlu0 %v5957_v15, %s6121_s6  ;;  %v6496_v15 = vpop.f32.mrf.mxu0 }
 0x900   :  { %v5959_v17 = vpop.eup %5958 }
 0x901   :  { %v749_v18 = vadd.f32 1.0, %v5959_v17  ;;  %v6498_v16 = vpop.f32.mrf.mxu0 }
 0x903   :  { %5960 = vrcp.f32 %v749_v18  ;;  %v6500_v17 = vpop.f32.mrf.mxu0 }
 0x905   :  { %v6502_v18 = vpop.f32.mrf.mxu0 }
 0x910   :  { %v5961_v19 = vpop.eup %5960 }
 0x911   :  { %v753_v22 = vmul.f32 %v5961_v19, %v658_v0 }
 0x971   :  { %v756_v20 = vpop.permute.xlu0 %755 }
 0x972   :  { %v758_v21 = vmul.f32 %v5961_v19, %v756_v20 }
 0x974   :  { %760 = vrot.lane.b32.xlu1 %v758_v21, %s6122_s2  ;;  %v259_v21 = vadd.f32 %v6402_v31, %v6316_v9 }
 0x9e6   :  { %v761_v23 = vpop.permute.xlu1 %760 }
 0x9e7   :  { %v763_v24 = vadd.f32 %v761_v23, %v753_v22 }
 0x9e9   :  { %5962 = vtanh.f32 %v763_v24 }
 0x9f6   :  { %v5963_v27 = vpop.eup %5962 }
 0x9f7   :  { %766 = vrot.lane.b32.xlu0 %v5963_v27, %s6121_s6 }
 0xa69   :  { %v767_v28 = vpop.permute.xlu0 %766 }
 0xa6a   :  { %v769_v29 = vmul.f32 %v5961_v19, %v767_v28  ;;  %v6504_v19 = vpop.f32.mrf.mxu0 }
 0xa6c   :  { %771 = vrot.lane.b32.xlu1 %v769_v29, %s6122_s2  ;;  %v6506_v20 = vpop.f32.mrf.mxu0 }
 0xade   :  { %v772_v30 = vpop.permute.xlu1 %771 }
 0xadf   :  { %775 = vst.msk [vmem:[#allocation3 + $0x18] sm:$0xff] %vm357_vm2, %v772_v30  ;;  %5206 = vmatmul.mubr.msk.f32.vlgmr.msra.gmra.mxu1 %vm357_vm2, %v772_v30 }
 0xae0   :  { %5220 = vmatpush3.msra.mxu1 %v6260_v2  ;;  %5227 = vmatprep.mubr.msk.f32.mxu1 %vm6120_vm1, %v6119_v3 }
 0xae1   :  { %5221 = vmatprep.subr.mxu1 %v6119_v3 }
 0xae2   :  { %5222 = vmatpush3.msra.mxu1 %v6270_v5 }
 0xae3   :  { %5223 = vmatprep.subr.mxu1 %v6119_v3 }
 0xae4   :  { %5224 = vmatpush3.msra.mxu1 %v6278_v6 }
 0xae5   :  { %5225 = vmatprep.subr.mxu1 %v6119_v3 }
 0xae6   :  { %5226 = vmatpush3.msra.mxu1 %v6288_v7 }
 0xae7   :  { %5241 = vmatprep.subr.mxu1 %v6119_v3 }
 0xb9f   :  { %v846_v34 = vpop.f32.mrf.mxu1 }
 0xba0   :  { %v850_v35 = vadd.f32 %v846_v34, %v254_v33 }
 0xba1   :  { %v5207_v36 = vpop.f32.mrf.mxu1 }
 0xba2   :  { %5964 = vtanh.f32 %v850_v35  ;;  %v4681_v38 = vmul.f32 -1.442695, %v850_v35 }
 0xba4   :  { %5966 = vpow2.f32 %v4681_v38 }
 0xbaf   :  { %v5965_v37 = vpop.eup %5964 }
 0xbb0   :  { %860 = vrot.lane.b32.xlu0 %v5965_v37, %s6121_s6 }
 0xbb1   :  { %v5967_v39 = vpop.eup %5966 }
 0xbb2   :  { %v854_v40 = vadd.f32 1.0, %v5967_v39  ;;  %v264_v39 = vadd.f32 %v6316_v9, %v263_v4 }
 0xbb4   :  { %5968 = vrcp.f32 %v854_v40 }
 0xbc1   :  { %v5969_v41 = vpop.eup %5968 }
 0xbc2   :  { %v858_v44 = vmul.f32 %v5969_v41, %v763_v24 }
 0xc22   :  { %v861_v42 = vpop.permute.xlu0 %860 }
 0xc23   :  { %v863_v43 = vmul.f32 %v5969_v41, %v861_v42 }
 0xc25   :  { %865 = vrot.lane.b32.xlu1 %v863_v43, %s6122_s2 }
 0xc97   :  { %v866_v45 = vpop.permute.xlu1 %865 }
 0xc98   :  { %v6407_v46 = vadd.f32 %v866_v45, %v858_v44 }
 0xc9a   :  { %5970 = vtanh.f32 %v6407_v46 }
 0xca7   :  { %v5971_v54 = vpop.eup %5970 }
 0xca8   :  { %871 = vrot.lane.b32.xlu0 %v5971_v54, %s6121_s6 }
 0xd1a   :  { %v872_v62 = vpop.permute.xlu0 %871 }
 0xd1b   :  { %v874_v63 = vmul.f32 %v5969_v41, %v872_v62 }
 0xd1d   :  { %876 = vrot.lane.b32.xlu1 %v874_v63, %s6122_s2 }
 0xd8f   :  { %v877_v0 = vpop.permute.xlu1 %876 }
 0xd90   :  { %880 = vst.msk [vmem:[#allocation3 + $0x20] sm:$0xff] %vm357_vm2, %v877_v0  ;;  %5217 = vmatmul.mubr.msk.f32.vlgmr.msra.gmra.mxu0 %vm357_vm2, %v877_v0 }
 0xd91   :  { %5231 = vmatpush3.msra.mxu0 %v6260_v2  ;;  %5238 = vmatprep.mubr.msk.f32.mxu0 %vm6120_vm1, %v6119_v3 }
 0xd92   :  { %5232 = vmatprep.subr.mxu0 %v6119_v3 }
 0xd93   :  { %5233 = vmatpush3.msra.mxu0 %v6270_v5 }
 0xd94   :  { %5234 = vmatprep.subr.mxu0 %v6119_v3 }
 0xd95   :  { %5235 = vmatpush3.msra.mxu0 %v6278_v6 }
 0xd96   :  { %5236 = vmatprep.subr.mxu0 %v6119_v3 }
 0xd97   :  { %5237 = vmatpush3.msra.mxu0 %v6288_v7 }
 0xd98   :  { %5252 = vmatprep.subr.mxu0 %v6119_v3 }
 0xe50   :  { %v951_v22 = vpop.f32.mrf.mxu0 }
 0xe51   :  { %v955_v23 = vadd.f32 %v951_v22, %v259_v21 }
 0xe52   :  { %v5218_v24 = vpop.f32.mrf.mxu0 }
 0xe53   :  { %5972 = vtanh.f32 %v955_v23  ;;  %v4683_v26 = vmul.f32 -1.442695, %v955_v23 }
 0xe55   :  { %5974 = vpow2.f32 %v4683_v26 }
 0xe60   :  { %v5973_v25 = vpop.eup %5972 }
 0xe61   :  { %965 = vrot.lane.b32.xlu0 %v5973_v25, %s6121_s6 }
 0xe62   :  { %v5975_v27 = vpop.eup %5974 }
 0xe63   :  { %v959_v28 = vadd.f32 1.0, %v5975_v27 }
 0xe65   :  { %5976 = vrcp.f32 %v959_v28 }
 0xe72   :  { %v5977_v29 = vpop.eup %5976 }
 0xe73   :  { %v963_v33 = vmul.f32 %v5977_v29, %v6407_v46 }
 0xed3   :  { %v966_v30 = vpop.permute.xlu0 %965 }
 0xed4   :  { %v968_v32 = vmul.f32 %v5977_v29, %v966_v30 }
 0xed6   :  { %970 = vrot.lane.b32.xlu1 %v968_v32, %s6122_s2 }
 0xf48   :  { %v971_v31 = vpop.permute.xlu1 %970 }
 0xf49   :  { %v973_v34 = vadd.f32 %v971_v31, %v963_v33 }
 0xf4b   :  { %5978 = vtanh.f32 %v973_v34 }
 0xf58   :  { %v5979_v35 = vpop.eup %5978 }
 0xf59   :  { %976 = vrot.lane.b32.xlu0 %v5979_v35, %s6121_s6 }
 0xfcb   :  { %v977_v36 = vpop.permute.xlu0 %976 }
 0xfcc   :  { %v979_v37 = vmul.f32 %v5977_v29, %v977_v36  ;;  %v274_v29 = vadd.f32 %v6316_v9, %v6486_v10 }
 0xfce   :  { %981 = vrot.lane.b32.xlu1 %v979_v37, %s6122_s2 }
0x1040   :  { %v982_v38 = vpop.permute.xlu1 %981 }
0x1041   :  { %985 = vst.msk [vmem:[#allocation3 + $0x28] sm:$0xff] %vm357_vm2, %v982_v38  ;;  %5228 = vmatmul.mubr.msk.f32.vlgmr.msra.gmra.mxu1 %vm357_vm2, %v982_v38 }
0x1042   :  { %5242 = vmatpush3.msra.mxu1 %v6260_v2  ;;  %5249 = vmatprep.mubr.msk.f32.mxu1 %vm6120_vm1, %v6119_v3 }
0x1043   :  { %5243 = vmatprep.subr.mxu1 %v6119_v3 }
0x1044   :  { %5244 = vmatpush3.msra.mxu1 %v6270_v5 }
0x1045   :  { %5245 = vmatprep.subr.mxu1 %v6119_v3 }
0x1046   :  { %5246 = vmatpush3.msra.mxu1 %v6278_v6 }
0x1047   :  { %5247 = vmatprep.subr.mxu1 %v6119_v3 }
0x1048   :  { %5248 = vmatpush3.msra.mxu1 %v6288_v7 }
0x1049   :  { %5263 = vmatprep.subr.mxu1 %v6119_v3 }
0x1101   :  { %v1056_v40 = vpop.f32.mrf.mxu1 }
0x1102   :  { %v1060_v41 = vadd.f32 %v1056_v40, %v264_v39 }
0x1103   :  { %v5229_v42 = vpop.f32.mrf.mxu1 }
0x1104   :  { %5980 = vtanh.f32 %v1060_v41  ;;  %v4685_v44 = vmul.f32 -1.442695, %v1060_v41 }
0x1106   :  { %5982 = vpow2.f32 %v4685_v44 }
0x1111   :  { %v5981_v43 = vpop.eup %5980 }
0x1112   :  { %1070 = vrot.lane.b32.xlu0 %v5981_v43, %s6121_s6 }
0x1113   :  { %v5983_v45 = vpop.eup %5982 }
0x1114   :  { %v1064_v46 = vadd.f32 1.0, %v5983_v45 }
0x1116   :  { %5984 = vrcp.f32 %v1064_v46  ;;  %v279_v46 = vadd.f32 %v6484_v8, %v6316_v9 }
0x1123   :  { %v5985_v47 = vpop.eup %5984 }
0x1124   :  { %v1068_v50 = vmul.f32 %v5985_v47, %v973_v34 }
0x1184   :  { %v1071_v48 = vpop.permute.xlu0 %1070 }
0x1185   :  { %v1073_v49 = vmul.f32 %v5985_v47, %v1071_v48 }
0x1187   :  { %1075 = vrot.lane.b32.xlu1 %v1073_v49, %s6122_s2 }
0x11f9   :  { %v1076_v51 = vpop.permute.xlu1 %1075 }
0x11fa   :  { %v1078_v52 = vadd.f32 %v1076_v51, %v1068_v50 }
0x11fc   :  { %5986 = vtanh.f32 %v1078_v52 }
0x1209   :  { %v5987_v53 = vpop.eup %5986 }
0x120a   :  { %1081 = vrot.lane.b32.xlu0 %v5987_v53, %s6121_s6 }
0x127c   :  { %v1082_v54 = vpop.permute.xlu0 %1081 }
0x127d   :  { %v1084_v55 = vmul.f32 %v5985_v47, %v1082_v54 }
0x127f   :  { %1086 = vrot.lane.b32.xlu1 %v1084_v55, %s6122_s2 }
0x12f1   :  { %v1087_v56 = vpop.permute.xlu1 %1086 }
0x12f2   :  { %1090 = vst.msk [vmem:[#allocation3 + $0x30] sm:$0xff] %vm357_vm2, %v1087_v56  ;;  %5239 = vmatmul.mubr.msk.f32.vlgmr.msra.gmra.mxu0 %vm357_vm2, %v1087_v56 }
0x12f3   :  { %5253 = vmatpush3.msra.mxu0 %v6260_v2  ;;  %5260 = vmatprep.mubr.msk.f32.mxu0 %vm6120_vm1, %v6119_v3 }
0x12f4   :  { %5254 = vmatprep.subr.mxu0 %v6119_v3 }
0x12f5   :  { %5255 = vmatpush3.msra.mxu0 %v6270_v5 }
0x12f6   :  { %5256 = vmatprep.subr.mxu0 %v6119_v3 }
0x12f7   :  { %5257 = vmatpush3.msra.mxu0 %v6278_v6 }
0x12f8   :  { %5258 = vmatprep.subr.mxu0 %v6119_v3 }
0x12f9   :  { %5259 = vmatpush3.msra.mxu0 %v6288_v7 }
0x12fa   :  { %5274 = vmatprep.subr.mxu0 %v6119_v3 }
0x13b2   :  { %v1161_v58 = vpop.f32.mrf.mxu0 }
0x13b3   :  { %v1165_v59 = vadd.f32 %v1161_v58, %v269_v57 }
0x13b4   :  { %v5240_v60 = vpop.f32.mrf.mxu0 }
0x13b5   :  { %5988 = vtanh.f32 %v1165_v59  ;;  %v4687_v62 = vmul.f32 -1.442695, %v1165_v59 }
0x13b7   :  { %5990 = vpow2.f32 %v4687_v62 }
0x13c2   :  { %v5989_v61 = vpop.eup %5988 }
0x13c3   :  { %1175 = vrot.lane.b32.xlu0 %v5989_v61, %s6121_s6 }
0x13c4   :  { %v5991_v63 = vpop.eup %5990 }
0x13c5   :  { %v1169_v0 = vadd.f32 1.0, %v5991_v63  ;;  %v284_v63 = vadd.f32 %v6316_v9, %v6490_v12 }
0x13c7   :  { %5992 = vrcp.f32 %v1169_v0 }
0x13d4   :  { %v5993_v4 = vpop.eup %5992 }
0x13d5   :  { %v1173_v23 = vmul.f32 %v5993_v4, %v1078_v52 }
0x1435   :  { %v1176_v21 = vpop.permute.xlu0 %1175 }
0x1436   :  { %v1178_v22 = vmul.f32 %v5993_v4, %v1176_v21 }
0x1438   :  { %1180 = vrot.lane.b32.xlu1 %v1178_v22, %s6122_s2 }
0x14aa   :  { %v1181_v24 = vpop.permute.xlu1 %1180 }
0x14ab   :  { %v1183_v1 = vadd.f32 %v1181_v24, %v1173_v23 }
0x14ad   :  { %5994 = vtanh.f32 %v1183_v1 }
0x14ba   :  { %v5995_v25 = vpop.eup %5994 }
0x14bb   :  { %1186 = vrot.lane.b32.xlu0 %v5995_v25, %s6121_s6 }
0x152d   :  { %v1187_v26 = vpop.permute.xlu0 %1186 }
0x152e   :  { %v1189_v27 = vmul.f32 %v5993_v4, %v1187_v26 }
0x1530   :  { %1191 = vrot.lane.b32.xlu1 %v1189_v27, %s6122_s2 }
0x15a2   :  { %v1192_v28 = vpop.permute.xlu1 %1191 }
0x15a3   :  { %1195 = vst.msk [vmem:[#allocation3 + $0x38] sm:$0xff] %vm357_vm2, %v1192_v28  ;;  %5250 = vmatmul.mubr.msk.f32.vlgmr.msra.gmra.mxu1 %vm357_vm2, %v1192_v28 }
0x15a4   :  { %5264 = vmatpush3.msra.mxu1 %v6260_v2  ;;  %5271 = vmatprep.mubr.msk.f32.mxu1 %vm6120_vm1, %v6119_v3 }
0x15a5   :  { %5265 = vmatprep.subr.mxu1 %v6119_v3 }
0x15a6   :  { %5266 = vmatpush3.msra.mxu1 %v6270_v5 }
0x15a7   :  { %5267 = vmatprep.subr.mxu1 %v6119_v3 }
0x15a8   :  { %5268 = vmatpush3.msra.mxu1 %v6278_v6 }
0x15a9   :  { %5269 = vmatprep.subr.mxu1 %v6119_v3 }
0x15aa   :  { %5270 = vmatpush3.msra.mxu1 %v6288_v7 }
0x15ab   :  { %5285 = vmatprep.subr.mxu1 %v6119_v3 }
0x1663   :  { %v1266_v30 = vpop.f32.mrf.mxu1 }
0x1664   :  { %v1270_v32 = vadd.f32 %v1266_v30, %v274_v29 }
0x1665   :  { %v5251_v33 = vpop.f32.mrf.mxu1 }
0x1666   :  { %5996 = vtanh.f32 %v1270_v32  ;;  %v4689_v34 = vmul.f32 -1.442695, %v1270_v32 }
0x1668   :  { %5998 = vpow2.f32 %v4689_v34 }
0x1673   :  { %v5997_v31 = vpop.eup %5996 }
0x1674   :  { %1280 = vrot.lane.b32.xlu0 %v5997_v31, %s6121_s6 }
0x1675   :  { %v5999_v35 = vpop.eup %5998 }
0x1676   :  { %v1274_v36 = vadd.f32 1.0, %v5999_v35 }
0x1678   :  { %6000 = vrcp.f32 %v1274_v36 }
0x1685   :  { %v6001_v37 = vpop.eup %6000 }
0x1686   :  { %v1278_v40 = vmul.f32 %v6001_v37, %v1183_v1 }
0x16e6   :  { %v1281_v38 = vpop.permute.xlu0 %1280 }
0x16e7   :  { %v1283_v39 = vmul.f32 %v6001_v37, %v1281_v38 }
0x16e9   :  { %1285 = vrot.lane.b32.xlu1 %v1283_v39, %s6122_s2 }
0x175b   :  { %v1286_v41 = vpop.permute.xlu1 %1285 }
0x175c   :  { %v1288_v10 = vadd.f32 %v1286_v41, %v1278_v40 }
0x175e   :  { %6002 = vtanh.f32 %v1288_v10 }
0x176b   :  { %v6003_v42 = vpop.eup %6002 }
0x176c   :  { %1291 = vrot.lane.b32.xlu0 %v6003_v42, %s6121_s6 }
0x17de   :  { %v1292_v43 = vpop.permute.xlu0 %1291 }
0x17df   :  { %v1294_v44 = vmul.f32 %v6001_v37, %v1292_v43 }
0x17e1   :  { %1296 = vrot.lane.b32.xlu1 %v1294_v44, %s6122_s2 }
0x1853   :  { %v1297_v45 = vpop.permute.xlu1 %1296 }
0x1854   :  { %1300 = vst.msk [vmem:[#allocation3 + $0x40] sm:$0xff] %vm357_vm2, %v1297_v45  ;;  %5261 = vmatmul.mubr.msk.f32.vlgmr.msra.gmra.mxu0 %vm357_vm2, %v1297_v45 }
0x1855   :  { %5275 = vmatpush3.msra.mxu0 %v6260_v2  ;;  %5282 = vmatprep.mubr.msk.f32.mxu0 %vm6120_vm1, %v6119_v3 }
0x1856   :  { %5276 = vmatprep.subr.mxu0 %v6119_v3 }
0x1857   :  { %5277 = vmatpush3.msra.mxu0 %v6270_v5 }
0x1858   :  { %5278 = vmatprep.subr.mxu0 %v6119_v3 }
0x1859   :  { %5279 = vmatpush3.msra.mxu0 %v6278_v6 }
0x185a   :  { %5280 = vmatprep.subr.mxu0 %v6119_v3 }
0x185b   :  { %5281 = vmatpush3.msra.mxu0 %v6288_v7 }
0x185c   :  { %5296 = vmatprep.subr.mxu0 %v6119_v3 }
0x1914   :  { %v1371_v47 = vpop.f32.mrf.mxu0 }
0x1915   :  { %v1375_v48 = vadd.f32 %v1371_v47, %v279_v46  ;;  %v6627_v46 = vld [vmem:[%s7855_s0 + $0x18] sm:$0xff]  ;;  %v6636_v47 = vld [vmem:[%s7855_s0 + $0x10] sm:$0xff] }
0x1916   :  { %v5262_v49 = vpop.f32.mrf.mxu0 }
0x1917   :  { %6004 = vtanh.f32 %v1375_v48  ;;  %v4691_v51 = vmul.f32 -1.442695, %v1375_v48  ;;  %v6643_v48 = vld [vmem:[%s7855_s0 + $0x8] sm:$0xff]  ;;  %v6650_v49 = vld [vmem:[%s7855_s0] sm:$0xff]  ;;  %s7859_s0 = sld [smem:[#allocation12_spill]] }
0x1919   :  { %6006 = vpow2.f32 %v4691_v51 }
0x1924   :  { %v6005_v50 = vpop.eup %6004 }
0x1925   :  { %1385 = vrot.lane.b32.xlu0 %v6005_v50, %s6121_s6  ;;  %v294_v50 = vadd.f32 %v6316_v9, %v6494_v14 }
0x1926   :  { %v6007_v52 = vpop.eup %6006 }
0x1927   :  { %v1379_v53 = vadd.f32 1.0, %v6007_v52 }
0x1929   :  { %6008 = vrcp.f32 %v1379_v53 }
0x1936   :  { %v6009_v54 = vpop.eup %6008 }
0x1937   :  { %v1383_v57 = vmul.f32 %v6009_v54, %v1288_v10 }
0x1997   :  { %v1386_v55 = vpop.permute.xlu0 %1385 }
0x1998   :  { %v1388_v56 = vmul.f32 %v6009_v54, %v1386_v55 }
0x199a   :  { %1390 = vrot.lane.b32.xlu1 %v1388_v56, %s6122_s2 }
0x1a0c   :  { %v1391_v58 = vpop.permute.xlu1 %1390 }
0x1a0d   :  { %v1393_v8 = vadd.f32 %v1391_v58, %v1383_v57 }
0x1a0f   :  { %6010 = vtanh.f32 %v1393_v8 }
0x1a1c   :  { %v6011_v59 = vpop.eup %6010 }
0x1a1d   :  { %1396 = vrot.lane.b32.xlu0 %v6011_v59, %s6121_s6 }
0x1a8f   :  { %v1397_v60 = vpop.permute.xlu0 %1396 }
0x1a90   :  { %v1399_v61 = vmul.f32 %v6009_v54, %v1397_v60 }
0x1a92   :  { %1401 = vrot.lane.b32.xlu1 %v1399_v61, %s6122_s2 }
0x1b04   :  { %v1402_v62 = vpop.permute.xlu1 %1401 }
0x1b05   :  { %1405 = vst.msk [vmem:[#allocation3 + $0x48] sm:$0xff] %vm357_vm2, %v1402_v62  ;;  %5272 = vmatmul.mubr.msk.f32.vlgmr.msra.gmra.mxu1 %vm357_vm2, %v1402_v62 }
0x1b06   :  { %5286 = vmatpush3.msra.mxu1 %v6260_v2  ;;  %5293 = vmatprep.mubr.msk.f32.mxu1 %vm6120_vm1, %v6119_v3 }
0x1b07   :  { %5287 = vmatprep.subr.mxu1 %v6119_v3 }
0x1b08   :  { %5288 = vmatpush3.msra.mxu1 %v6270_v5 }
0x1b09   :  { %5289 = vmatprep.subr.mxu1 %v6119_v3 }
0x1b0a   :  { %5290 = vmatpush3.msra.mxu1 %v6278_v6 }
0x1b0b   :  { %5291 = vmatprep.subr.mxu1 %v6119_v3 }
0x1b0c   :  { %5292 = vmatpush3.msra.mxu1 %v6288_v7 }
0x1b0d   :  { %5307 = vmatprep.subr.mxu1 %v6119_v3 }
0x1bc5   :  { %v1476_v0 = vpop.f32.mrf.mxu1 }
0x1bc6   :  { %v1480_v4 = vadd.f32 %v1476_v0, %v284_v63 }
0x1bc7   :  { %v5273_v21 = vpop.f32.mrf.mxu1 }
0x1bc8   :  { %6012 = vtanh.f32 %v1480_v4  ;;  %v4693_v23 = vmul.f32 -1.442695, %v1480_v4  ;;  %v6675_v4 = vld [vmem:[%s7856_s28] ss:$0 sm:$0xff]  ;;  %s7860_s28 = sld [smem:[#allocation15_spill]] }
0x1bc9   :  { %v299_v21 = vadd.f32 %v6675_v4, %v6492_v13 }
0x1bca   :  { %6014 = vpow2.f32 %v4693_v23 }
0x1bd5   :  { %v6013_v22 = vpop.eup %6012 }
0x1bd6   :  { %1490 = vrot.lane.b32.xlu0 %v6013_v22, %s6121_s6 }
0x1bd7   :  { %v6015_v24 = vpop.eup %6014 }
0x1bd8   :  { %v1484_v1 = vadd.f32 1.0, %v6015_v24 }
0x1bda   :  { %6016 = vrcp.f32 %v1484_v1 }
0x1be7   :  { %v6017_v25 = vpop.eup %6016 }
0x1be8   :  { %v1488_v28 = vmul.f32 %v6017_v25, %v1393_v8 }
0x1c48   :  { %v1491_v26 = vpop.permute.xlu0 %1490 }
0x1c49   :  { %v1493_v27 = vmul.f32 %v6017_v25, %v1491_v26 }
0x1c4b   :  { %1495 = vrot.lane.b32.xlu1 %v1493_v27, %s6122_s2 }
0x1cbd   :  { %v1496_v29 = vpop.permute.xlu1 %1495 }
0x1cbe   :  { %v1498_v12 = vadd.f32 %v1496_v29, %v1488_v28 }
0x1cc0   :  { %6018 = vtanh.f32 %v1498_v12 }
0x1ccd   :  { %v6019_v30 = vpop.eup %6018 }
0x1cce   :  { %1501 = vrot.lane.b32.xlu0 %v6019_v30, %s6121_s6 }
0x1d40   :  { %v1502_v32 = vpop.permute.xlu0 %1501 }
0x1d41   :  { %v1504_v33 = vmul.f32 %v6017_v25, %v1502_v32 }
0x1d43   :  { %1506 = vrot.lane.b32.xlu1 %v1504_v33, %s6122_s2 }
0x1db5   :  { %v1507_v31 = vpop.permute.xlu1 %1506 }
0x1db6   :  { %1510 = vst.msk [vmem:[#allocation3 + $0x50] sm:$0xff] %vm357_vm2, %v1507_v31  ;;  %5283 = vmatmul.mubr.msk.f32.vlgmr.msra.gmra.mxu0 %vm357_vm2, %v1507_v31 }
0x1db7   :  { %5297 = vmatpush3.msra.mxu0 %v6260_v2  ;;  %5304 = vmatprep.mubr.msk.f32.mxu0 %vm6120_vm1, %v6119_v3  ;;  %v289_v2 = vadd.f32 %v6488_v11, %v6316_v9 }
0x1db8   :  { %5298 = vmatprep.subr.mxu0 %v6119_v3 }
0x1db9   :  { %5299 = vmatpush3.msra.mxu0 %v6270_v5 }
0x1dba   :  { %5300 = vmatprep.subr.mxu0 %v6119_v3 }
0x1dbb   :  { %5301 = vmatpush3.msra.mxu0 %v6278_v6 }
0x1dbc   :  { %5302 = vmatprep.subr.mxu0 %v6119_v3 }
0x1dbd   :  { %5303 = vmatpush3.msra.mxu0 %v6288_v7 }
0x1dbe   :  { %5318 = vmatprep.subr.mxu0 %v6119_v3 }
0x1e76   :  { %v1581_v34 = vpop.f32.mrf.mxu0 }
0x1e77   :  { %v1585_v35 = vadd.f32 %v1581_v34, %v289_v2 }
0x1e78   :  { %v5284_v36 = vpop.f32.mrf.mxu0 }
0x1e79   :  { %6020 = vtanh.f32 %v1585_v35  ;;  %v4695_v5 = vmul.f32 -1.442695, %v1585_v35  ;;  %v304_v35 = vadd.f32 %v6675_v4, %v6498_v16 }
0x1e7b   :  { %6022 = vpow2.f32 %v4695_v5 }
0x1e86   :  { %v6021_v37 = vpop.eup %6020 }
0x1e87   :  { %1595 = vrot.lane.b32.xlu0 %v6021_v37, %s6121_s6 }
0x1e88   :  { %v6023_v38 = vpop.eup %6022 }
0x1e89   :  { %v1589_v6 = vadd.f32 1.0, %v6023_v38 }
0x1e8b   :  { %6024 = vrcp.f32 %v1589_v6 }
0x1e98   :  { %v6025_v39 = vpop.eup %6024 }
0x1e99   :  { %v1593_v41 = vmul.f32 %v6025_v39, %v1498_v12 }
0x1ef9   :  { %v1596_v40 = vpop.permute.xlu0 %1595 }
0x1efa   :  { %v1598_v7 = vmul.f32 %v6025_v39, %v1596_v40 }
0x1efc   :  { %1600 = vrot.lane.b32.xlu1 %v1598_v7, %s6122_s2 }
0x1f6e   :  { %v1601_v10 = vpop.permute.xlu1 %1600 }
0x1f6f   :  { %v1603_v11 = vadd.f32 %v1601_v10, %v1593_v41 }
0x1f71   :  { %6026 = vtanh.f32 %v1603_v11 }
0x1f7e   :  { %v6027_v42 = vpop.eup %6026 }
0x1f7f   :  { %1606 = vrot.lane.b32.xlu0 %v6027_v42, %s6121_s6 }
0x1ff1   :  { %v1607_v43 = vpop.permute.xlu0 %1606 }
0x1ff2   :  { %v1609_v44 = vmul.f32 %v6025_v39, %v1607_v43 }
0x1ff4   :  { %1611 = vrot.lane.b32.xlu1 %v1609_v44, %s6122_s2 }
0x2066   :  { %v1612_v45 = vpop.permute.xlu1 %1611 }
0x2067   :  { %1615 = vst.msk [vmem:[#allocation3 + $0x58] sm:$0xff] %vm357_vm2, %v1612_v45  ;;  %5294 = vmatmul.mubr.msk.f32.vlgmr.msra.gmra.mxu1 %vm357_vm2, %v1612_v45 }
0x2068   :  { %5308 = vmatpush3.msra.mxu1 %v6627_v46  ;;  %5315 = vmatprep.mubr.msk.f32.mxu1 %vm6120_vm1, %v6119_v3 }
0x2069   :  { %5309 = vmatprep.subr.mxu1 %v6119_v3 }
0x206a   :  { %5310 = vmatpush3.msra.mxu1 %v6636_v47 }
0x206b   :  { %5311 = vmatprep.subr.mxu1 %v6119_v3 }
0x206c   :  { %5312 = vmatpush3.msra.mxu1 %v6643_v48 }
0x206d   :  { %5313 = vmatprep.subr.mxu1 %v6119_v3 }
0x206e   :  { %5314 = vmatpush3.msra.mxu1 %v6650_v49 }
0x206f   :  { %5329 = vmatprep.subr.mxu1 %v6119_v3 }
0x2127   :  { %v1686_v51 = vpop.f32.mrf.mxu1 }
0x2128   :  { %v1690_v52 = vadd.f32 %v1686_v51, %v294_v50  ;;  %v309_v51 = vadd.f32 %v6675_v4, %v6496_v15 }
0x2129   :  { %v5295_v53 = vpop.f32.mrf.mxu1 }
0x212a   :  { %6028 = vtanh.f32 %v1690_v52  ;;  %v4697_v55 = vmul.f32 -1.442695, %v1690_v52 }
0x212c   :  { %6030 = vpow2.f32 %v4697_v55 }
0x2137   :  { %v6029_v54 = vpop.eup %6028 }
0x2138   :  { %1700 = vrot.lane.b32.xlu0 %v6029_v54, %s6121_s6 }
0x2139   :  { %v6031_v56 = vpop.eup %6030 }
0x213a   :  { %v1694_v57 = vadd.f32 1.0, %v6031_v56 }
0x213c   :  { %6032 = vrcp.f32 %v1694_v57 }
0x2149   :  { %v6033_v58 = vpop.eup %6032 }
0x214a   :  { %v1698_v60 = vmul.f32 %v6033_v58, %v1603_v11 }
0x21aa   :  { %v1701_v8 = vpop.permute.xlu0 %1700 }
0x21ab   :  { %v1703_v59 = vmul.f32 %v6033_v58, %v1701_v8 }
0x21ad   :  { %1705 = vrot.lane.b32.xlu1 %v1703_v59, %s6122_s2 }
0x221f   :  { %v1706_v61 = vpop.permute.xlu1 %1705 }
0x2220   :  { %v1708_v9 = vadd.f32 %v1706_v61, %v1698_v60 }
0x2222   :  { %6034 = vtanh.f32 %v1708_v9 }
0x222f   :  { %v6035_v14 = vpop.eup %6034 }
0x2230   :  { %1711 = vrot.lane.b32.xlu0 %v6035_v14, %s6121_s6 }
0x22a2   :  { %v1712_v62 = vpop.permute.xlu0 %1711 }
0x22a3   :  { %v1714_v63 = vmul.f32 %v6033_v58, %v1712_v62 }
0x22a5   :  { %1716 = vrot.lane.b32.xlu1 %v1714_v63, %s6122_s2 }
0x2317   :  { %v1717_v0 = vpop.permute.xlu1 %1716 }
0x2318   :  { %1720 = vst.msk [vmem:[#allocation3 + $0x60] sm:$0xff] %vm357_vm2, %v1717_v0  ;;  %5305 = vmatmul.mubr.msk.f32.vlgmr.msra.gmra.mxu0 %vm357_vm2, %v1717_v0 }
0x2319   :  { %5319 = vmatpush3.msra.mxu0 %v6627_v46  ;;  %5326 = vmatprep.mubr.msk.f32.mxu0 %vm6120_vm1, %v6119_v3 }
0x231a   :  { %5320 = vmatprep.subr.mxu0 %v6119_v3 }
0x231b   :  { %5321 = vmatpush3.msra.mxu0 %v6636_v47 }
0x231c   :  { %5322 = vmatprep.subr.mxu0 %v6119_v3 }
0x231d   :  { %5323 = vmatpush3.msra.mxu0 %v6643_v48 }
0x231e   :  { %5324 = vmatprep.subr.mxu0 %v6119_v3 }
0x231f   :  { %5325 = vmatpush3.msra.mxu0 %v6650_v49 }
0x2320   :  { %5340 = vmatprep.subr.mxu0 %v6119_v3 }
0x23d8   :  { %v1791_v22 = vpop.f32.mrf.mxu0 }
0x23d9   :  { %v1795_v23 = vadd.f32 %v1791_v22, %v299_v21  ;;  %v314_v21 = vadd.f32 %v6675_v4, %v6502_v18 }
0x23da   :  { %v5306_v24 = vpop.f32.mrf.mxu0 }
0x23db   :  { %6036 = vtanh.f32 %v1795_v23  ;;  %v4699_v25 = vmul.f32 -1.442695, %v1795_v23 }
0x23dd   :  { %6038 = vpow2.f32 %v4699_v25 }
0x23e8   :  { %v6037_v1 = vpop.eup %6036 }
0x23e9   :  { %1805 = vrot.lane.b32.xlu0 %v6037_v1, %s6121_s6 }
0x23ea   :  { %v6039_v26 = vpop.eup %6038 }
0x23eb   :  { %v1799_v27 = vadd.f32 1.0, %v6039_v26 }
0x23ed   :  { %6040 = vrcp.f32 %v1799_v27 }
0x23fa   :  { %v6041_v28 = vpop.eup %6040 }
0x23fb   :  { %v1803_v30 = vmul.f32 %v6041_v28, %v1708_v9 }
0x245b   :  { %v1806_v29 = vpop.permute.xlu0 %1805 }
0x245c   :  { %v1808_v12 = vmul.f32 %v6041_v28, %v1806_v29 }
0x245e   :  { %1810 = vrot.lane.b32.xlu1 %v1808_v12, %s6122_s2 }
0x24d0   :  { %v1811_v32 = vpop.permute.xlu1 %1810 }
0x24d1   :  { %v1813_v13 = vadd.f32 %v1811_v32, %v1803_v30 }
0x24d3   :  { %6042 = vtanh.f32 %v1813_v13 }
0x24e0   :  { %v6043_v33 = vpop.eup %6042 }
0x24e1   :  { %1816 = vrot.lane.b32.xlu0 %v6043_v33, %s6121_s6 }
0x2553   :  { %v1817_v31 = vpop.permute.xlu0 %1816 }
0x2554   :  { %v1819_v2 = vmul.f32 %v6041_v28, %v1817_v31 }
0x2556   :  { %1821 = vrot.lane.b32.xlu1 %v1819_v2, %s6122_s2 }
0x25c8   :  { %v1822_v34 = vpop.permute.xlu1 %1821 }
0x25c9   :  { %1825 = vst.msk [vmem:[#allocation3 + $0x68] sm:$0xff] %vm357_vm2, %v1822_v34  ;;  %5316 = vmatmul.mubr.msk.f32.vlgmr.msra.gmra.mxu1 %vm357_vm2, %v1822_v34  ;;  %v319_v34 = vadd.f32 %v6675_v4, %v6500_v17 }
0x25ca   :  { %5330 = vmatpush3.msra.mxu1 %v6627_v46  ;;  %5337 = vmatprep.mubr.msk.f32.mxu1 %vm6120_vm1, %v6119_v3 }
0x25cb   :  { %5331 = vmatprep.subr.mxu1 %v6119_v3 }
0x25cc   :  { %5332 = vmatpush3.msra.mxu1 %v6636_v47 }
0x25cd   :  { %5333 = vmatprep.subr.mxu1 %v6119_v3 }
0x25ce   :  { %5334 = vmatpush3.msra.mxu1 %v6643_v48 }
0x25cf   :  { %5335 = vmatprep.subr.mxu1 %v6119_v3 }
0x25d0   :  { %5336 = vmatpush3.msra.mxu1 %v6650_v49 }
0x25d1   :  { %5351 = vmatprep.subr.mxu1 %v6119_v3 }
0x2689   :  { %v1896_v36 = vpop.f32.mrf.mxu1 }
0x268a   :  { %v1900_v37 = vadd.f32 %v1896_v36, %v304_v35 }
0x268b   :  { %v5317_v5 = vpop.f32.mrf.mxu1 }
0x268c   :  { %6044 = vtanh.f32 %v1900_v37  ;;  %v4701_v6 = vmul.f32 -1.442695, %v1900_v37 }
0x268e   :  { %6046 = vpow2.f32 %v4701_v6 }
0x2699   :  { %v6045_v38 = vpop.eup %6044 }
0x269a   :  { %1910 = vrot.lane.b32.xlu0 %v6045_v38, %s6121_s6 }
0x269b   :  { %v6047_v39 = vpop.eup %6046 }
0x269c   :  { %v1904_v40 = vadd.f32 1.0, %v6047_v39 }
0x269e   :  { %6048 = vrcp.f32 %v1904_v40 }
0x26ab   :  { %v6049_v7 = vpop.eup %6048 }
0x26ac   :  { %v1908_v11 = vmul.f32 %v6049_v7, %v1813_v13 }
0x270c   :  { %v1911_v41 = vpop.permute.xlu0 %1910 }
0x270d   :  { %v1913_v10 = vmul.f32 %v6049_v7, %v1911_v41 }
0x270f   :  { %1915 = vrot.lane.b32.xlu1 %v1913_v10, %s6122_s2 }
0x2781   :  { %v1916_v42 = vpop.permute.xlu1 %1915 }
0x2782   :  { %v1918_v16 = vadd.f32 %v1916_v42, %v1908_v11  ;;  %v324_v42 = vadd.f32 %v6675_v4, %v6506_v20 }
0x2784   :  { %6050 = vtanh.f32 %v1918_v16 }
0x2791   :  { %v6051_v43 = vpop.eup %6050 }
0x2792   :  { %1921 = vrot.lane.b32.xlu0 %v6051_v43, %s6121_s6 }
0x2804   :  { %v1922_v44 = vpop.permute.xlu0 %1921 }
0x2805   :  { %v1924_v45 = vmul.f32 %v6049_v7, %v1922_v44 }
0x2807   :  { %1926 = vrot.lane.b32.xlu1 %v1924_v45, %s6122_s2 }
0x2879   :  { %v1927_v50 = vpop.permute.xlu1 %1926 }
0x287a   :  { %1930 = vst.msk [vmem:[#allocation3 + $0x70] sm:$0xff] %vm357_vm2, %v1927_v50  ;;  %5327 = vmatmul.mubr.msk.f32.vlgmr.msra.gmra.mxu0 %vm357_vm2, %v1927_v50 }
0x287b   :  { %5341 = vmatpush3.msra.mxu0 %v6627_v46  ;;  %5348 = vmatprep.mubr.msk.f32.mxu0 %vm6120_vm1, %v6119_v3 }
0x287c   :  { %5342 = vmatprep.subr.mxu0 %v6119_v3 }
0x287d   :  { %5343 = vmatpush3.msra.mxu0 %v6636_v47 }
0x287e   :  { %5344 = vmatprep.subr.mxu0 %v6119_v3 }
0x287f   :  { %5345 = vmatpush3.msra.mxu0 %v6643_v48 }
0x2880   :  { %5346 = vmatprep.subr.mxu0 %v6119_v3 }
0x2881   :  { %5347 = vmatpush3.msra.mxu0 %v6650_v49 }
0x2882   :  { %5362 = vmatprep.subr.mxu0 %v6119_v3 }
0x293a   :  { %v2001_v52 = vpop.f32.mrf.mxu0 }
0x293b   :  { %v2005_v53 = vadd.f32 %v2001_v52, %v309_v51 }
0x293c   :  { %v5328_v54 = vpop.f32.mrf.mxu0 }
0x293d   :  { %6052 = vtanh.f32 %v2005_v53  ;;  %v4703_v56 = vmul.f32 -1.442695, %v2005_v53 }
0x293f   :  { %6054 = vpow2.f32 %v4703_v56 }
0x294a   :  { %v6053_v55 = vpop.eup %6052 }
0x294b   :  { %2015 = vrot.lane.b32.xlu0 %v6053_v55, %s6121_s6 }
0x294c   :  { %v6055_v57 = vpop.eup %6054 }
0x294d   :  { %v2009_v58 = vadd.f32 1.0, %v6055_v57 }
0x294f   :  { %6056 = vrcp.f32 %v2009_v58 }
0x295c   :  { %v6057_v8 = vpop.eup %6056 }
0x295d   :  { %v2013_v61 = vmul.f32 %v6057_v8, %v1918_v16 }
0x29bd   :  { %v2016_v59 = vpop.permute.xlu0 %2015 }
0x29be   :  { %v2018_v60 = vmul.f32 %v6057_v8, %v2016_v59 }
0x29c0   :  { %2020 = vrot.lane.b32.xlu1 %v2018_v60, %s6122_s2 }
0x2a32   :  { %v2021_v9 = vpop.permute.xlu1 %2020 }
0x2a33   :  { %v2023_v15 = vadd.f32 %v2021_v9, %v2013_v61  ;;  %v329_v61 = vadd.f32 %v6675_v4, %v6504_v19  ;;  %v2480_v19 = vld [vmem:[%s7857_s7 + $0x20] sm:$0xff] }
0x2a35   :  { %6058 = vtanh.f32 %v2023_v15 }
0x2a42   :  { %v6059_v14 = vpop.eup %6058 }
0x2a43   :  { %2026 = vrot.lane.b32.xlu0 %v6059_v14, %s6121_s6 }
0x2ab5   :  { %v2027_v62 = vpop.permute.xlu0 %2026 }
0x2ab6   :  { %v2029_v63 = vmul.f32 %v6057_v8, %v2027_v62  ;;  %v2483_v62 = vld [vmem:[%s7857_s7 + $0x38] sm:$0xff] }
0x2ab8   :  { %2031 = vrot.lane.b32.xlu1 %v2029_v63, %s6122_s2  ;;  %v2482_v63 = vld [vmem:[%s7857_s7 + $0x30] sm:$0xff] }
0x2b2a   :  { %v2032_v0 = vpop.permute.xlu1 %2031 }
0x2b2b   :  { %2035 = vst.msk [vmem:[#allocation3 + $0x78] sm:$0xff] %vm357_vm2, %v2032_v0  ;;  %5338 = vmatmul.mubr.msk.f32.vlgmr.msra.gmra.mxu1 %vm357_vm2, %v2032_v0  ;;  %v2481_v0 = vld [vmem:[%s7857_s7 + $0x28] sm:$0xff] }
0x2b2c   :  { %5352 = vmatpush3.msra.mxu1 %v6627_v46  ;;  %5359 = vmatprep.mubr.msk.f32.mxu1 %vm6120_vm1, %v6119_v3 }
0x2b2d   :  { %5353 = vmatprep.subr.mxu1 %v6119_v3 }
0x2b2e   :  { %5354 = vmatpush3.msra.mxu1 %v6636_v47 }
0x2b2f   :  { %5355 = vmatprep.subr.mxu1 %v6119_v3 }
0x2b30   :  { %5356 = vmatpush3.msra.mxu1 %v6643_v48 }
0x2b31   :  { %5357 = vmatprep.subr.mxu1 %v6119_v3 }
0x2b32   :  { %5358 = vmatpush3.msra.mxu1 %v6650_v49 }
0x2b33   :  { %5373 = vmatprep.subr.mxu1 %v6119_v3 }
0x2beb   :  { %v2106_v22 = vpop.f32.mrf.mxu1 }
0x2bec   :  { %v2110_v23 = vadd.f32 %v2106_v22, %v314_v21  ;;  %v2479_v21 = vld [vmem:[%s7857_s7 + $0x18] sm:$0xff] }
0x2bed   :  { %v5339_v24 = vpop.f32.mrf.mxu1 }
0x2bee   :  { %6060 = vtanh.f32 %v2110_v23  ;;  %v4705_v25 = vmul.f32 -1.442695, %v2110_v23 }
0x2bf0   :  { %6062 = vpow2.f32 %v4705_v25  ;;  %v2477_v25 = vld [vmem:[%s7857_s7 + $0x8] sm:$0xff] }
0x2bfb   :  { %v6061_v1 = vpop.eup %6060 }
0x2bfc   :  { %2120 = vrot.lane.b32.xlu0 %v6061_v1, %s6121_s6  ;;  %v2478_v1 = vld [vmem:[%s7857_s7 + $0x10] sm:$0xff] }
0x2bfd   :  { %v6063_v26 = vpop.eup %6062 }
0x2bfe   :  { %v2114_v27 = vadd.f32 1.0, %v6063_v26  ;;  %v2476_v26 = vld [vmem:[%s7857_s7] sm:$0xff] }
0x2c00   :  { %6064 = vrcp.f32 %v2114_v27 }
0x2c0d   :  { %v6065_v28 = vpop.eup %6064 }
0x2c0e   :  { %v2118_v30 = vmul.f32 %v6065_v28, %v2023_v15 }
0x2c6e   :  { %v2121_v29 = vpop.permute.xlu0 %2120 }
0x2c6f   :  { %v2123_v12 = vmul.f32 %v6065_v28, %v2121_v29 }
0x2c71   :  { %2125 = vrot.lane.b32.xlu1 %v2123_v12, %s6122_s2  ;;  %v6801_v12 = vld [vmem:[#allocation3 + $0x8] sm:$0xff] }
0x2ce3   :  { %v2126_v32 = vpop.permute.xlu1 %2125 }
0x2ce4   :  { %v2128_v18 = vadd.f32 %v2126_v32, %v2118_v30 }
0x2ce6   :  { %6066 = vtanh.f32 %v2128_v18 }
0x2cf3   :  { %v6067_v13 = vpop.eup %6066 }
0x2cf4   :  { %2131 = vrot.lane.b32.xlu0 %v6067_v13, %s6121_s6 }
0x2d66   :  { %v2132_v33 = vpop.permute.xlu0 %2131 }
0x2d67   :  { %v2134_v31 = vmul.f32 %v6065_v28, %v2132_v33  ;;  %v2456_v33 = vld [vmem:[#allocation3] sm:$0xff] }
0x2d69   :  { %2136 = vrot.lane.b32.xlu1 %v2134_v31, %s6122_s2 }
0x2ddb   :  { %v2137_v2 = vpop.permute.xlu1 %2136 }
0x2ddc   :  { %2140 = vst.msk [vmem:[#allocation3 + $0x80] sm:$0xff] %vm357_vm2, %v2137_v2  ;;  %5349 = vmatmul.mubr.msk.f32.vlgmr.msra.gmra.mxu0 %vm357_vm2, %v2137_v2 }
0x2ddd   :  { %5363 = vmatpush3.msra.mxu0 %v6627_v46  ;;  %5370 = vmatprep.mubr.msk.f32.mxu0 %vm6120_vm1, %v6119_v3 }
0x2dde   :  { %5364 = vmatprep.subr.mxu0 %v6119_v3 }
0x2ddf   :  { %5365 = vmatpush3.msra.mxu0 %v6636_v47 }
0x2de0   :  { %5366 = vmatprep.subr.mxu0 %v6119_v3 }
0x2de1   :  { %5367 = vmatpush3.msra.mxu0 %v6643_v48 }
0x2de2   :  { %5368 = vmatprep.subr.mxu0 %v6119_v3 }
0x2de3   :  { %5369 = vmatpush3.msra.mxu0 %v6650_v49 }
0x2e9c   :  { %v2211_v35 = vpop.f32.mrf.mxu0 }
0x2e9d   :  { %v2215_v46 = vadd.f32 %v2211_v35, %v319_v34  ;;  %v6810_v34 = vld [vmem:[#allocation3 + $0x10] sm:$0xff]  ;;  %v6814_v35 = vld [vmem:[#allocation3 + $0x18] sm:$0xff] }
0x2e9e   :  { %v5350_v36 = vpop.f32.mrf.mxu0 }
0x2e9f   :  { %6068 = vtanh.f32 %v2215_v46  ;;  %v4707_v5 = vmul.f32 -1.442695, %v2215_v46  ;;  %v6818_v46 = vld [vmem:[#allocation3 + $0x28] sm:$0xff]  ;;  %v6822_v36 = vld [vmem:[#allocation3 + $0x38] sm:$0xff] }
0x2ea1   :  { %6070 = vpow2.f32 %v4707_v5  ;;  %v6830_v5 = vld [vmem:[#allocation3 + $0x58] sm:$0xff] }
0x2eac   :  { %v6069_v37 = vpop.eup %6068 }
0x2ead   :  { %2225 = vrot.lane.b32.xlu0 %v6069_v37, %s6121_s6  ;;  %v6826_v37 = vld [vmem:[#allocation3 + $0x48] sm:$0xff] }
0x2eae   :  { %v6071_v47 = vpop.eup %6070 }
0x2eaf   :  { %v2219_v38 = vadd.f32 1.0, %v6071_v47  ;;  %v6834_v47 = vld [vmem:[#allocation3 + $0x68] sm:$0xff] }
0x2eb1   :  { %6072 = vrcp.f32 %v2219_v38  ;;  %v6838_v38 = vld [vmem:[#allocation3 + $0x78] sm:$0xff] }
0x2ebe   :  { %v6073_v48 = vpop.eup %6072 }
0x2ebf   :  { %v2223_v49 = vmul.f32 %v6073_v48, %v2128_v18 }
0x2f1f   :  { %v2226_v6 = vpop.permute.xlu0 %2225 }
0x2f20   :  { %v2228_v39 = vmul.f32 %v6073_v48, %v2226_v6 }
0x2f22   :  { %2230 = vrot.lane.b32.xlu1 %v2228_v39, %s6122_s2 }
0x2f94   :  { %v2231_v40 = vpop.permute.xlu1 %2230 }
0x2f95   :  { %v2233_v17 = vadd.f32 %v2231_v40, %v2223_v49 }
0x2f97   :  { %6074 = vtanh.f32 %v2233_v17 }
0x2fa4   :  { %v6075_v7 = vpop.eup %6074 }
0x2fa5   :  { %2236 = vrot.lane.b32.xlu0 %v6075_v7, %s6121_s6 }
0x3017   :  { %v2237_v41 = vpop.permute.xlu0 %2236 }
0x3018   :  { %v2239_v10 = vmul.f32 %v6073_v48, %v2237_v41 }
0x301a   :  { %2241 = vrot.lane.b32.xlu1 %v2239_v10, %s6122_s2  ;;  %v6859_v10 = vld [vmem:[#allocation3 + $0x30] sm:$0xff] }
0x308c   :  { %v2242_v11 = vpop.permute.xlu1 %2241 }
0x308d   :  { %2245 = vst.msk [vmem:[#allocation3 + $0x88] sm:$0xff] %vm357_vm2, %v2242_v11  ;;  %5360 = vmatmul.mubr.msk.f32.vlgmr.msra.gmra.mxu1 %vm357_vm2, %v2242_v11  ;;  %v6865_v11 = vld [vmem:[#allocation3 + $0x40] sm:$0xff] }
0x308e   :  { %5389 = vmatprep.mubr.msk.f32.mxu1 %vm6120_vm1, %v6119_v3  ;;  %5374 = vmatpush3.msra.mxu1 %v2483_v62  ;;  %v2492_v62 = vld [vmem:[%s7858_s3 + $0x38] sm:$0xff] }
0x308f   :  { %5375 = vmatprep.subr.mxu1 %v6119_v3 }
0x3090   :  { %5376 = vmatpush3.msra.mxu1 %v2482_v63 }
0x3091   :  { %5377 = vmatprep.subr.mxu1 %v6119_v3 }
0x3092   :  { %5378 = vmatpush3.msra.mxu1 %v2481_v0  ;;  %v2491_v0 = vld [vmem:[%s7858_s3 + $0x30] sm:$0xff] }
0x3093   :  { %5379 = vmatprep.subr.mxu1 %v6119_v3 }
0x3094   :  { %5380 = vmatpush3.msra.mxu1 %v2480_v19  ;;  %v6842_v48 = vld [vmem:[#allocation3 + $0x88] sm:$0xff] }
0x3095   :  { %5381 = vmatprep.subr.mxu1 %v6119_v3 }
0x3096   :  { %5382 = vmatpush3.msra.mxu1 %v2479_v21 }
0x3097   :  { %5383 = vmatprep.subr.mxu1 %v6119_v3 }
0x3098   :  { %5384 = vmatpush3.msra.mxu1 %v2478_v1 }
0x3099   :  { %5385 = vmatprep.subr.mxu1 %v6119_v3 }
0x309a   :  { %5386 = vmatpush3.msra.mxu1 %v2477_v25 }
0x309b   :  { %5387 = vmatprep.subr.mxu1 %v6119_v3 }
0x309c   :  { %5388 = vmatpush3.msra.mxu1 %v2476_v26 }
0x314d   :  { %v2316_v16 = vpop.f32.mrf.mxu1 }
0x314e   :  { %v2320_v43 = vadd.f32 %v2316_v16, %v324_v42  ;;  %v6869_v42 = vld [vmem:[#allocation3 + $0x50] sm:$0xff]  ;;  %v6873_v16 = vld [vmem:[#allocation3 + $0x60] sm:$0xff] }
0x314f   :  { %v5361_v44 = vpop.f32.mrf.mxu1 }
0x3150   :  { %6076 = vtanh.f32 %v2320_v43  ;;  %v4709_v50 = vmul.f32 -1.442695, %v2320_v43  ;;  %v6877_v43 = vld [vmem:[#allocation3 + $0x70] sm:$0xff]  ;;  %v6881_v44 = vld [vmem:[#allocation3 + $0x80] sm:$0xff] }
0x3152   :  { %6078 = vpow2.f32 %v4709_v50 }
0x315d   :  { %v6077_v45 = vpop.eup %6076 }
0x315e   :  { %2330 = vrot.lane.b32.xlu0 %v6077_v45, %s6121_s6 }
0x315f   :  { %v6079_v51 = vpop.eup %6078 }
0x3160   :  { %v2324_v52 = vadd.f32 1.0, %v6079_v51 }
0x3162   :  { %6080 = vrcp.f32 %v2324_v52  ;;  %v2500_v52 = vld [vmem:[%s7858_s3 + $0x78] sm:$0xff] }
0x3163   :  { %5446 = vmatprep.subr.mxu0 %v2500_v52 }
0x316f   :  { %v6081_v53 = vpop.eup %6080 }
0x3170   :  { %v2328_v56 = vmul.f32 %v6081_v53, %v2233_v17  ;;  %v6850_v17 = vld [vmem:[#allocation3 + $0x20] sm:$0xff] }
0x31d0   :  { %v2331_v54 = vpop.permute.xlu0 %2330 }
0x31d1   :  { %v2333_v55 = vmul.f32 %v6081_v53, %v2331_v54  ;;  %v2498_v54 = vld [vmem:[%s7858_s3 + $0x68] sm:$0xff] }
0x31d3   :  { %2335 = vrot.lane.b32.xlu1 %v2333_v55, %s6122_s2 }
0x3245   :  { %v2336_v57 = vpop.permute.xlu1 %2335 }
0x3246   :  { %v2338_v20 = vadd.f32 %v2336_v57, %v2328_v56  ;;  %v2497_v56 = vld [vmem:[%s7858_s3 + $0x60] sm:$0xff]  ;;  %v2496_v57 = vld [vmem:[%s7858_s3 + $0x58] sm:$0xff] }
0x3248   :  { %6082 = vtanh.f32 %v2338_v20 }
0x3255   :  { %v6083_v58 = vpop.eup %6082 }
0x3256   :  { %2341 = vrot.lane.b32.xlu0 %v6083_v58, %s6121_s6 }
0x32c8   :  { %v2342_v8 = vpop.permute.xlu0 %2341 }
0x32c9   :  { %v2344_v59 = vmul.f32 %v6081_v53, %v2342_v8  ;;  %v2499_v53 = vld [vmem:[%s7858_s3 + $0x70] sm:$0xff] }
0x32ca   :  { %v2495_v8 = vld [vmem:[%s7858_s3 + $0x50] sm:$0xff] }
0x32cb   :  { %2346 = vrot.lane.b32.xlu1 %v2344_v59, %s6122_s2 }
0x333d   :  { %v2347_v60 = vpop.permute.xlu1 %2346 }
0x333e   :  { %2350 = vst.msk [vmem:[#allocation3 + $0x90] sm:$0xff] %vm357_vm2, %v2347_v60  ;;  %5371 = vmatmul.mubr.msk.f32.vlgmr.msra.gmra.mxu0 %vm357_vm2, %v2347_v60  ;;  %v2494_v60 = vld [vmem:[%s7858_s3 + $0x48] sm:$0xff] }
0x333f   :  { %5447 = vmatpush3.msra.mxu0 %v2500_v52  ;;  %v2488_v52 = vld [vmem:[%s7858_s3 + $0x18] sm:$0xff] }
0x3340   :  { %5448 = vmatprep.subr.mxu0 %v2499_v53 }
0x3341   :  { %5449 = vmatpush3.msra.mxu0 %v2499_v53  ;;  %v2486_v53 = vld [vmem:[%s7858_s3 + $0x8] sm:$0xff] }
0x3342   :  { %5450 = vmatprep.subr.mxu0 %v2498_v54 }
0x3343   :  { %5451 = vmatpush3.msra.mxu0 %v2498_v54  ;;  %v2485_v54 = vld [vmem:[%s7858_s3] sm:$0xff] }
0x3344   :  { %5452 = vmatprep.subr.mxu0 %v2497_v56 }
0x3345   :  { %v6885_v45 = vld [vmem:[#allocation3 + $0x90] sm:$0xff]  ;;  %5453 = vmatpush3.msra.mxu0 %v2497_v56  ;;  %v7019_v56 = vld [vmem:[%s7859_s0] ss:$0 sm:$0xff] }
0x3346   :  { %5454 = vmatprep.subr.mxu0 %v2496_v57 }
0x3347   :  { %5455 = vmatpush3.msra.mxu0 %v2496_v57 }
0x3348   :  { %5456 = vmatprep.subr.mxu0 %v2495_v8 }
0x3349   :  { %5457 = vmatpush3.msra.mxu0 %v2495_v8 }
0x334a   :  { %5458 = vmatprep.subr.mxu0 %v2494_v60 }
0x334b   :  { %5459 = vmatpush3.msra.mxu0 %v2494_v60 }
0x33fe   :  { %v2421_v9 = vpop.f32.mrf.mxu0 }
0x33ff   :  { %v2425_v15 = vadd.f32 %v2421_v9, %v329_v61 }
0x3400   :  { %v5372_v14 = vpop.f32.mrf.mxu0 }
0x3401   :  { %6084 = vtanh.f32 %v2425_v15  ;;  %v4711_v22 = vmul.f32 -1.442695, %v2425_v15  ;;  %v2493_v15 = vld [vmem:[%s7858_s3 + $0x40] sm:$0xff] }
0x3402   :  { %5460 = vmatprep.subr.mxu0 %v2493_v15 }
0x3403   :  { %6086 = vpow2.f32 %v4711_v22  ;;  %5461 = vmatpush3.msra.mxu0 %v2493_v15 }
0x3404   :  { %5462 = vmatprep.subr.mxu0 %v2492_v62 }
0x3405   :  { %5463 = vmatpush3.msra.mxu0 %v2492_v62 }
0x3406   :  { %5464 = vmatprep.subr.mxu0 %v2491_v0 }
0x3407   :  { %5465 = vmatpush3.msra.mxu0 %v2491_v0 }
0x340e   :  { %v6085_v4 = vpop.eup %6084 }
0x340f   :  { %2435 = vrot.lane.b32.xlu0 %v6085_v4, %s6121_s6 }
0x3410   :  { %v6087_v23 = vpop.eup %6086 }
0x3411   :  { %v2429_v24 = vadd.f32 1.0, %v6087_v23 }
0x3413   :  { %6088 = vrcp.f32 %v2429_v24 }
0x3420   :  { %v6089_v27 = vpop.eup %6088 }
0x3421   :  { %v2433_v30 = vmul.f32 %v6089_v27, %v2338_v20 }
0x3481   :  { %v2436_v28 = vpop.permute.xlu0 %2435 }
0x3482   :  { %v2438_v29 = vmul.f32 %v6089_v27, %v2436_v28 }
0x3484   :  { %2440 = vrot.lane.b32.xlu1 %v2438_v29, %s6122_s2 }
0x3488   :  { %2521 = vrot.lane.b32.xlu1 %v6801_v12, %s6122_s2 }
0x34f6   :  { %v2441_v32 = vpop.permute.xlu1 %2440 }
0x34f7   :  { %v2443_v18 = vadd.f32 %v2441_v32, %v2433_v30 }
0x34f9   :  { %6090 = vtanh.f32 %v2443_v18 }
0x34fa   :  { %v2522_v13 = vpop.permute.xlu1 %2521 }
0x34fb   :  { %v2578_v31 = vsel %vm357_vm2, %v2456_v33, %v2522_v13 }
0x34fc   :  { %5390 = vmatmul.mubr.msk.f32.vlgmr.msra.gmra.mxu1 %vm2603_vm3, %v2578_v31 }
0x34fd   :  { %5392 = vmatprep.mubr.msk.f32.mxu1 %vm6120_vm1, %v6119_v3 }
0x3506   :  { %v6091_v2 = vpop.eup %6090 }
0x3507   :  { %2446 = vrot.lane.b32.xlu0 %v6091_v2, %s6121_s6 }
0x350b   :  { %2523 = vrot.lane.b32.xlu0 %v6810_v34, %s6122_s2 }
0x350f   :  { %2525 = vrot.lane.b32.xlu0 %v6814_v35, %s6122_s2 }
0x3513   :  { %2529 = vrot.lane.b32.xlu0 %v6818_v46, %s6122_s2 }
0x3517   :  { %2533 = vrot.lane.b32.xlu0 %v6822_v36, %s6122_s2 }
0x351b   :  { %2537 = vrot.lane.b32.xlu0 %v6826_v37, %s6122_s2 }
0x351f   :  { %2541 = vrot.lane.b32.xlu0 %v6830_v5, %s6122_s2 }
0x3523   :  { %2545 = vrot.lane.b32.xlu0 %v6834_v47, %s6122_s2 }
0x3527   :  { %2549 = vrot.lane.b32.xlu0 %v6838_v38, %s6122_s2 }
0x352b   :  { %2553 = vrot.lane.b32.xlu0 %v6842_v48, %s6122_s2 }
0x3579   :  { %v2447_v6 = vpop.permute.xlu0 %2446 }
0x357a   :  { %v2449_v39 = vmul.f32 %v6089_v27, %v2447_v6 }
0x357c   :  { %2451 = vrot.lane.b32.xlu1 %v2449_v39, %s6122_s2 }
0x357d   :  { %v2524_v49 = vpop.permute.xlu0 %2523 }
0x357e   :  { %v2579_v40 = vsel %vm357_vm2, %v6801_v12, %v2524_v49 }
0x357f   :  { %5393 = vmatmul.mubr.msk.f32.gmra.mxu1 %vm2603_vm3, %v2579_v40 }
0x3580   :  { %2527 = vrot.lane.b32.xlu1 %v6850_v17, %s6122_s2  ;;  %5395 = vmatprep.mubr.msk.f32.mxu1 %vm6120_vm1, %v6119_v3 }
0x3581   :  { %v2526_v7 = vpop.permute.xlu0 %2525 }
0x3582   :  { %v2580_v41 = vsel %vm357_vm2, %v6810_v34, %v2526_v7 }
0x3583   :  { %5396 = vmatmul.mubr.msk.f32.gmra.mxu1 %vm2603_vm3, %v2580_v41  ;;  %v2490_v41 = vld [vmem:[%s7858_s3 + $0x28] sm:$0xff] }
0x3584   :  { %2531 = vrot.lane.b32.xlu1 %v6859_v10, %s6122_s2  ;;  %5398 = vmatprep.mubr.msk.f32.mxu1 %vm6120_vm1, %v6119_v3 }
0x3585   :  { %v2530_v59 = vpop.permute.xlu0 %2529  ;;  %5466 = vmatprep.subr.mxu0 %v2490_v41 }
0x3586   :  { %v2582_v9 = vsel %vm357_vm2, %v6850_v17, %v2530_v59  ;;  %5467 = vmatpush3.msra.mxu0 %v2490_v41 }
0x3588   :  { %2535 = vrot.lane.b32.xlu1 %v6865_v11, %s6122_s2 }
0x3589   :  { %v2534_v19 = vpop.permute.xlu0 %2533 }
0x358a   :  { %v2584_v4 = vsel %vm357_vm2, %v6859_v10, %v2534_v19 }
0x358c   :  { %2539 = vrot.lane.b32.xlu1 %v6869_v42, %s6122_s2 }
0x358d   :  { %v2538_v23 = vpop.permute.xlu0 %2537 }
0x358e   :  { %v2586_v24 = vsel %vm357_vm2, %v6865_v11, %v2538_v23 }
0x3590   :  { %2543 = vrot.lane.b32.xlu1 %v6873_v16, %s6122_s2 }
0x3591   :  { %v2542_v26 = vpop.permute.xlu0 %2541 }
0x3592   :  { %v2588_v27 = vsel %vm357_vm2, %v6869_v42, %v2542_v26 }
0x3594   :  { %2547 = vrot.lane.b32.xlu1 %v6877_v43, %s6122_s2 }
0x3595   :  { %v2546_v30 = vpop.permute.xlu0 %2545 }
0x3596   :  { %v2590_v32 = vsel %vm357_vm2, %v6873_v16, %v2546_v30 }
0x3598   :  { %2551 = vrot.lane.b32.xlu1 %v6881_v44, %s6122_s2 }
0x3599   :  { %v2550_v33 = vpop.permute.xlu0 %2549 }
0x359a   :  { %v2592_v31 = vsel %vm357_vm2, %v6877_v43, %v2550_v33 }
0x359c   :  { %2555 = vrot.lane.b32.xlu1 %v6885_v45, %s6122_s2 }
0x359d   :  { %v2554_v39 = vpop.permute.xlu0 %2553 }
0x359e   :  { %v2594_v49 = vsel %vm357_vm2, %v6881_v44, %v2554_v39 }
0x35bc   :  { %v6889_v50 = vpop.f32.mrf.mxu1 }
0x35be   :  { %v5391_v51 = vpop.f32.mrf.mxu1 }
0x35bf   :  { %v2489_v51 = vld [vmem:[%s7858_s3 + $0x20] sm:$0xff] }
0x35c0   :  { %5468 = vmatprep.subr.mxu0 %v2489_v51 }
0x35c1   :  { %5469 = vmatpush3.msra.mxu0 %v2489_v51 }
0x35c2   :  { %5470 = vmatprep.subr.mxu0 %v2488_v52 }
0x35c3   :  { %5471 = vmatpush3.msra.mxu0 %v2488_v52 }
0x35ee   :  { %v2452_v55 = vpop.permute.xlu1 %2451 }
0x35ef   :  { %2455 = vst.msk [vmem:[#allocation3 + $0x98] sm:$0xff] %vm357_vm2, %v2452_v55 }
0x35f2   :  { %v2528_v20 = vpop.permute.xlu1 %2527 }
0x35f3   :  { %v2581_v58 = vsel %vm357_vm2, %v6814_v35, %v2528_v20 }
0x35f4   :  { %5399 = vmatmul.mubr.msk.f32.gmra.mxu1 %vm2603_vm3, %v2581_v58 }
0x35f5   :  { %5401 = vmatprep.mubr.msk.f32.mxu1 %vm6120_vm1, %v6119_v3 }
0x35f6   :  { %v2475_v61 = vld [vmem:[#allocation3 + $0x98] sm:$0xff]  ;;  %v2532_v14 = vpop.permute.xlu1 %2531 }
0x35f7   :  { %2557 = vrot.lane.b32.xlu0 %v2475_v61, %s6122_s2  ;;  %v2583_v63 = vsel %vm357_vm2, %v6818_v46, %v2532_v14 }
0x35f8   :  { %5402 = vmatmul.mubr.msk.f32.gmra.mxu1 %vm2603_vm3, %v2582_v9 }
0x35f9   :  { %5404 = vmatprep.mubr.msk.f32.mxu1 %vm6120_vm1, %v6119_v3 }
0x35fa   :  { %v2536_v21 = vpop.permute.xlu1 %2535 }
0x35fb   :  { %v2585_v22 = vsel %vm357_vm2, %v6822_v36, %v2536_v21 }
0x35fc   :  { %5405 = vmatmul.mubr.msk.f32.gmra.mxu1 %vm2603_vm3, %v2583_v63 }
0x35fd   :  { %5407 = vmatprep.mubr.msk.f32.mxu1 %vm6120_vm1, %v6119_v3 }
0x35fe   :  { %v2540_v1 = vpop.permute.xlu1 %2539 }
0x35ff   :  { %v2587_v25 = vsel %vm357_vm2, %v6826_v37, %v2540_v1 }
0x3600   :  { %5408 = vmatmul.mubr.msk.f32.gmra.mxu1 %vm2603_vm3, %v2584_v4  ;;  %v2728_v4 = vadd.f32 %v7019_v56, %v6889_v50 }
0x3601   :  { %5410 = vmatprep.mubr.msk.f32.mxu1 %vm6120_vm1, %v6119_v3 }
0x3602   :  { %v2544_v28 = vpop.permute.xlu1 %2543  ;;  %v2821_v26 = vmax.f32 %v2728_v4, 0.0 }
0x3603   :  { %v2589_v29 = vsel %vm357_vm2, %v6830_v5, %v2544_v28 }
0x3604   :  { %5411 = vmatmul.mubr.msk.f32.gmra.mxu1 %vm2603_vm3, %v2585_v22 }
0x3605   :  { %5413 = vmatprep.mubr.msk.f32.mxu1 %vm6120_vm1, %v6119_v3 }
0x3606   :  { %v2548_v18 = vpop.permute.xlu1 %2547 }
0x3607   :  { %v2591_v13 = vsel %vm357_vm2, %v6834_v47, %v2548_v18 }
0x3608   :  { %5414 = vmatmul.mubr.msk.f32.gmra.mxu1 %vm2603_vm3, %v2586_v24 }
0x3609   :  { %5416 = vmatprep.mubr.msk.f32.mxu1 %vm6120_vm1, %v6119_v3 }
0x360a   :  { %v2552_v2 = vpop.permute.xlu1 %2551 }
0x360b   :  { %v2593_v6 = vsel %vm357_vm2, %v6838_v38, %v2552_v2 }
0x360c   :  { %5417 = vmatmul.mubr.msk.f32.gmra.mxu1 %vm2603_vm3, %v2587_v25 }
0x360d   :  { %5419 = vmatprep.mubr.msk.f32.mxu1 %vm6120_vm1, %v6119_v3 }
0x360e   :  { %v2556_v40 = vpop.permute.xlu1 %2555 }
0x360f   :  { %v2595_v7 = vsel %vm357_vm2, %v6842_v48, %v2556_v40 }
0x3610   :  { %5420 = vmatmul.mubr.msk.f32.gmra.mxu1 %vm2603_vm3, %v2588_v27 }
0x3611   :  { %5422 = vmatprep.mubr.msk.f32.mxu1 %vm6120_vm1, %v6119_v3 }
0x3614   :  { %5423 = vmatmul.mubr.msk.f32.gmra.mxu1 %vm2603_vm3, %v2589_v29 }
0x3615   :  { %5425 = vmatprep.mubr.msk.f32.mxu1 %vm6120_vm1, %v6119_v3 }
0x3618   :  { %5426 = vmatmul.mubr.msk.f32.gmra.mxu1 %vm2603_vm3, %v2590_v32 }
0x3619   :  { %5428 = vmatprep.mubr.msk.f32.mxu1 %vm6120_vm1, %v6119_v3 }
0x361c   :  { %5429 = vmatmul.mubr.msk.f32.gmra.mxu1 %vm2603_vm3, %v2591_v13 }
0x361d   :  { %5431 = vmatprep.mubr.msk.f32.mxu1 %vm6120_vm1, %v6119_v3 }
0x3620   :  { %5432 = vmatmul.mubr.msk.f32.gmra.mxu1 %vm2603_vm3, %v2592_v31 }
0x3621   :  { %5434 = vmatprep.mubr.msk.f32.mxu1 %vm6120_vm1, %v6119_v3 }
0x3624   :  { %5435 = vmatmul.mubr.msk.f32.gmra.mxu1 %vm2603_vm3, %v2593_v6 }
0x3625   :  { %5437 = vmatprep.mubr.msk.f32.mxu1 %vm6120_vm1, %v6119_v3 }
0x3628   :  { %5438 = vmatmul.mubr.msk.f32.gmra.mxu1 %vm2603_vm3, %v2594_v49 }
0x3629   :  { %5440 = vmatprep.mubr.msk.f32.mxu1 %vm6120_vm1, %v6119_v3 }
0x362c   :  { %5441 = vmatmul.mubr.msk.f32.gmra.mxu1 %vm2603_vm3, %v2595_v7 }
0x362d   :  { %5443 = vmatprep.mubr.msk.f32.mxu1 %vm6120_vm1, %v6119_v3  ;;  %v2487_v3 = vld [vmem:[%s7858_s3 + $0x10] sm:$0xff]  ;;  %s7861_s3 = sld [smem:[#allocation14_spill]] }
0x362e   :  { %5472 = vmatprep.subr.mxu0 %v2487_v3 }
0x362f   :  { %5473 = vmatpush3.msra.mxu0 %v2487_v3 }
0x3630   :  { %5474 = vmatprep.subr.mxu0 %v2486_v53 }
0x3631   :  { %5475 = vmatpush3.msra.mxu0 %v2486_v53 }
0x3632   :  { %5476 = vmatprep.subr.mxu0 %v2485_v54 }
0x3633   :  { %5477 = vmatpush3.msra.mxu0 %v2485_v54 }
0x363f   :  { %v2732_v55 = vpop.f32.mrf.mxu1 }
0x3640   :  { %v2733_v20 = vadd.f32 %v7019_v56, %v2732_v55 }
0x3641   :  { %v5394_v57 = vpop.f32.mrf.mxu1 }
0x3642   :  { %v2822_v60 = vmax.f32 %v2733_v20, 0.0 }
0x3643   :  { %v2737_v58 = vpop.f32.mrf.mxu1 }
0x3644   :  { %v7023_v8 = vadd.f32 %v7019_v56, %v2737_v58 }
0x3645   :  { %v5397_v59 = vpop.f32.mrf.mxu1 }
0x3646   :  { %v2823_v61 = vmax.f32 %v7023_v8, 0.0 }
0x3648   :  { %v5787_v9 = vpack.i.bf16 %v2823_v61, %v2822_v60 }
0x364a   :  { %5788 = vrot.lane.b32.xlu1 %v5787_v9, %s6121_s6 }
0x3669   :  { %v2558_v15 = vpop.permute.xlu0 %2557 }
0x366a   :  { %v2596_v14 = vsel %vm357_vm2, %v6885_v45, %v2558_v15 }
0x366b   :  { %5444 = vmatmul.mubr.msk.f32.gmra.mxu1 %vm2603_vm3, %v2596_v14 }
0x36b4   :  { %v2742_v62 = vpop.f32.mrf.mxu1 }
0x36b5   :  { %v7033_v0 = vadd.f32 %v7019_v56, %v2742_v62 }
0x36b6   :  { %v5400_v63 = vpop.f32.mrf.mxu1 }
0x36b7   :  { %v2824_v23 = vmax.f32 %v7033_v0, 0.0 }
0x36b8   :  { %v2747_v19 = vpop.f32.mrf.mxu1 }
0x36b9   :  { %v7038_v21 = vadd.f32 %v7019_v56, %v2747_v19 }
0x36ba   :  { %v5403_v22 = vpop.f32.mrf.mxu1 }
0x36bb   :  { %v2825_v24 = vmax.f32 %v7038_v21, 0.0 }
0x36bc   :  { %v5789_v1 = vpop.permute.xlu1 %5788  ;;  %v2752_v25 = vpop.f32.mrf.mxu1 }
0x36bd   :  { %v5792_v27 = vpack.i.bf16 %v2825_v24, %v2824_v23  ;;  %v5791_v28 = vunpack.i.h.bf16 %v5789_v1  ;;  %v5790_v29 = vunpack.i.l.bf16 %v5789_v1  ;;  %v7047_v50 = vadd.f32 %v7019_v56, %v2752_v25 }
0x36be   :  { %v5406_v30 = vpop.f32.mrf.mxu1 }
0x36bf   :  { %5793 = vrot.lane.b32.xlu0 %v5792_v27, %s6121_s6  ;;  %v2912_v32 = vsel %vm2603_vm3, %v2821_v26, %v5790_v29  ;;  %v2913_v18 = vsel %vm2603_vm3, %v2822_v60, %v5791_v28  ;;  %v2826_v2 = vmax.f32 %v7047_v50, 0.0 }
0x36c0   :  { %v2757_v13 = vpop.f32.mrf.mxu1  ;;  %5478 = vmatprep.mubr.f32.mxu0 %v2912_v32 }
0x36c1   :  { %v7053_v33 = vadd.f32 %v7019_v56, %v2757_v13  ;;  %5479 = vmatmul.mubr.f32.vlgmr.msra.gmra.mxu0 %v2913_v18 }
0x36c2   :  { %v5409_v31 = vpop.f32.mrf.mxu1 }
0x36c3   :  { %v2827_v6 = vmax.f32 %v7053_v33, 0.0 }
0x36c4   :  { %v2762_v39 = vpop.f32.mrf.mxu1 }
0x36c5   :  { %v5797_v49 = vpack.i.bf16 %v2827_v6, %v2826_v2  ;;  %v7062_v7 = vadd.f32 %v7019_v56, %v2762_v39 }
0x36c6   :  { %v5412_v40 = vpop.f32.mrf.mxu1 }
0x36c7   :  { %5798 = vrot.lane.b32.xlu1 %v5797_v49, %s6121_s6  ;;  %v2828_v3 = vmax.f32 %v7062_v7, 0.0 }
0x36c8   :  { %v2767_v41 = vpop.f32.mrf.mxu1 }
0x36c9   :  { %v7066_v51 = vadd.f32 %v7019_v56, %v2767_v41 }
0x36ca   :  { %v5415_v52 = vpop.f32.mrf.mxu1 }
0x36cb   :  { %v2829_v53 = vmax.f32 %v7066_v51, 0.0 }
0x36cc   :  { %v2772_v54 = vpop.f32.mrf.mxu1 }
0x36cd   :  { %v5802_v55 = vpack.i.bf16 %v2829_v53, %v2828_v3  ;;  %v7075_v20 = vadd.f32 %v7019_v56, %v2772_v54 }
0x36ce   :  { %v5418_v57 = vpop.f32.mrf.mxu1 }
0x36cf   :  { %5803 = vrot.lane.b32.xlu0 %v5802_v55, %s6121_s6  ;;  %v2830_v9 = vmax.f32 %v7075_v20, 0.0 }
0x36d0   :  { %v2777_v58 = vpop.f32.mrf.mxu1 }
0x36d1   :  { %v7079_v59 = vadd.f32 %v7019_v56, %v2777_v58 }
0x36d2   :  { %v5421_v60 = vpop.f32.mrf.mxu1 }
0x36d3   :  { %v2831_v15 = vmax.f32 %v7079_v59, 0.0 }
0x36d4   :  { %v2782_v14 = vpop.f32.mrf.mxu1 }
0x36d5   :  { %v5807_v62 = vpack.i.bf16 %v2831_v15, %v2830_v9  ;;  %v7088_v19 = vadd.f32 %v7019_v56, %v2782_v14 }
0x36d6   :  { %v5424_v63 = vpop.f32.mrf.mxu1 }
0x36d7   :  { %5808 = vrot.lane.b32.xlu1 %v5807_v62, %s6121_s6  ;;  %v2832_v25 = vmax.f32 %v7088_v19, 0.0 }
0x36d8   :  { %v2787_v4 = vpop.f32.mrf.mxu1 }
0x36d9   :  { %v7092_v22 = vadd.f32 %v7019_v56, %v2787_v4  ;;  %v3112_v4 = vld [vmem:[%s7860_s28 + $0x18] sm:$0xff] }
0x36da   :  { %v5427_v1 = vpop.f32.mrf.mxu1  ;;  %5505 = vmatprep.subr.mxu0 %v3112_v4 }
0x36db   :  { %v2833_v26 = vmax.f32 %v7092_v22, 0.0  ;;  %v3111_v1 = vld [vmem:[%s7860_s28 + $0x10] sm:$0xff]  ;;  %5506 = vmatpush3.msra.mxu0 %v3112_v4 }
0x36dc   :  { %v2792_v27 = vpop.f32.mrf.mxu1  ;;  %5507 = vmatprep.subr.mxu0 %v3111_v1 }
0x36dd   :  { %v5812_v28 = vpack.i.bf16 %v2833_v26, %v2832_v25  ;;  %v7101_v30 = vadd.f32 %v7019_v56, %v2792_v27  ;;  %v3110_v27 = vld [vmem:[%s7860_s28 + $0x8] sm:$0xff]  ;;  %5508 = vmatpush3.msra.mxu0 %v3111_v1 }
0x36de   :  { %v5430_v29 = vpop.f32.mrf.mxu1  ;;  %5509 = vmatprep.subr.mxu0 %v3110_v27 }
0x36df   :  { %5813 = vrot.lane.b32.xlu0 %v5812_v28, %s6121_s6  ;;  %v2834_v31 = vmax.f32 %v7101_v30, 0.0  ;;  %v3109_v28 = vld [vmem:[%s7860_s28] sm:$0xff]  ;;  %5510 = vmatpush3.msra.mxu0 %v3110_v27 }
0x36e0   :  { %v2797_v32 = vpop.f32.mrf.mxu1  ;;  %5511 = vmatprep.subr.mxu0 %v3109_v28 }
0x36e1   :  { %v7105_v18 = vadd.f32 %v7019_v56, %v2797_v32  ;;  %5512 = vmatpush3.msra.mxu0 %v3109_v28 }
0x36e2   :  { %v5433_v13 = vpop.f32.mrf.mxu1 }
0x36e3   :  { %v2835_v39 = vmax.f32 %v7105_v18, 0.0 }
0x36e4   :  { %v2802_v49 = vpop.f32.mrf.mxu1 }
0x36e5   :  { %v5817_v40 = vpack.i.bf16 %v2835_v39, %v2834_v31  ;;  %v7114_v52 = vadd.f32 %v7019_v56, %v2802_v49 }
0x36e6   :  { %v5436_v41 = vpop.f32.mrf.mxu1 }
0x36e7   :  { %5818 = vrot.lane.b32.xlu1 %v5817_v40, %s6121_s6  ;;  %v2836_v58 = vmax.f32 %v7114_v52, 0.0 }
0x36e8   :  { %v2807_v54 = vpop.f32.mrf.mxu1 }
0x36e9   :  { %v7118_v55 = vadd.f32 %v7019_v56, %v2807_v54 }
0x36ea   :  { %v5439_v57 = vpop.f32.mrf.mxu1 }
0x36eb   :  { %v2837_v60 = vmax.f32 %v7118_v55, 0.0 }
0x36ec   :  { %v2812_v14 = vpop.f32.mrf.mxu1 }
0x36ed   :  { %v5822_v62 = vpack.i.bf16 %v2837_v60, %v2836_v58  ;;  %v7140_v29 = vadd.f32 %v7019_v56, %v2812_v14 }
0x36ee   :  { %v5442_v63 = vpop.f32.mrf.mxu1 }
0x36ef   :  { %5823 = vrot.lane.b32.xlu0 %v5822_v62, %s6121_s6  ;;  %v2838_v40 = vmax.f32 %v7140_v29, 0.0 }
0x372b   :  { %v2817_v32 = vpop.f32.mrf.mxu1 }
0x372c   :  { %v2818_v13 = vadd.f32 %v7019_v56, %v2817_v32 }
0x372d   :  { %v5445_v49 = vpop.f32.mrf.mxu1 }
0x372e   :  { %v2839_v41 = vmax.f32 %v2818_v13, 0.0 }
0x3730   :  { %v5827_v54 = vpack.i.bf16 %v2839_v41, %v2838_v40 }
0x3731   :  { %v5794_v57 = vpop.permute.xlu0 %5793 }
0x3732   :  { %v5796_v62 = vunpack.i.h.bf16 %v5794_v57  ;;  %v5795_v63 = vunpack.i.l.bf16 %v5794_v57  ;;  %5828 = vrot.lane.b32.xlu1 %v5827_v54, %s6121_s6 }
0x3734   :  { %v2914_v4 = vsel %vm2603_vm3, %v2823_v61, %v5795_v63  ;;  %v2915_v14 = vsel %vm2603_vm3, %v2824_v23, %v5796_v62 }
0x3735   :  { %5481 = vmatprep.mubr.f32.mxu0 %v2914_v4 }
0x3736   :  { %5482 = vmatmul.mubr.f32.gmra.mxu0 %v2915_v14 }
0x3739   :  { %v5799_v56 = vpop.permute.xlu1 %5798 }
0x373a   :  { %v5801_v1 = vunpack.i.h.bf16 %v5799_v56  ;;  %v5800_v27 = vunpack.i.l.bf16 %v5799_v56 }
0x373c   :  { %v2916_v28 = vsel %vm2603_vm3, %v2825_v24, %v5800_v27  ;;  %v2917_v29 = vsel %vm2603_vm3, %v2826_v2, %v5801_v1  ;;  %v7286_v27 = vld [vmem:[%s7861_s3] ss:$0 sm:$0xff] }
0x373d   :  { %5484 = vmatprep.mubr.f32.mxu0 %v2916_v28 }
0x373e   :  { %5485 = vmatmul.mubr.f32.gmra.mxu0 %v2917_v29 }
0x3741   :  { %v5804_v8 = vpop.permute.xlu0 %5803 }
0x3742   :  { %v5806_v61 = vunpack.i.h.bf16 %v5804_v8  ;;  %v5805_v0 = vunpack.i.l.bf16 %v5804_v8 }
0x3744   :  { %v2918_v23 = vsel %vm2603_vm3, %v2827_v6, %v5805_v0  ;;  %v2919_v32 = vsel %vm2603_vm3, %v2828_v3, %v5806_v61  ;;  %v7298_v0 = vld [vmem:[%s7821_s9] ss:$0 sm:$0xff] }
0x3745   :  { %5487 = vmatprep.mubr.f32.mxu0 %v2918_v23 }
0x3746   :  { %5488 = vmatmul.mubr.f32.gmra.mxu0 %v2919_v32 }
0x3749   :  { %v5809_v21 = vpop.permute.xlu1 %5808 }
0x374a   :  { %v5811_v24 = vunpack.i.h.bf16 %v5809_v21  ;;  %v5810_v50 = vunpack.i.l.bf16 %v5809_v21 }
0x374c   :  { %v2920_v2 = vsel %vm2603_vm3, %v2829_v53, %v5810_v50  ;;  %v2921_v13 = vsel %vm2603_vm3, %v2830_v9, %v5811_v24 }
0x374d   :  { %5490 = vmatprep.mubr.f32.mxu0 %v2920_v2 }
0x374e   :  { %5491 = vmatmul.mubr.f32.gmra.mxu0 %v2921_v13 }
0x3751   :  { %v5814_v33 = vpop.permute.xlu0 %5813 }
0x3752   :  { %v5816_v6 = vunpack.i.h.bf16 %v5814_v33  ;;  %v5815_v7 = vunpack.i.l.bf16 %v5814_v33 }
0x3754   :  { %v2922_v3 = vsel %vm2603_vm3, %v2831_v15, %v5815_v7  ;;  %v2923_v49 = vsel %vm2603_vm3, %v2832_v25, %v5816_v6 }
0x3755   :  { %5493 = vmatprep.mubr.f32.mxu0 %v2922_v3 }
0x3756   :  { %5494 = vmatmul.mubr.f32.gmra.mxu0 %v2923_v49 }
0x3759   :  { %v5819_v51 = vpop.permute.xlu1 %5818 }
0x375a   :  { %v5821_v53 = vunpack.i.h.bf16 %v5819_v51  ;;  %v5820_v20 = vunpack.i.l.bf16 %v5819_v51 }
0x375c   :  { %v2924_v9 = vsel %vm2603_vm3, %v2833_v26, %v5820_v20  ;;  %v2925_v41 = vsel %vm2603_vm3, %v2834_v31, %v5821_v53 }
0x375d   :  { %5496 = vmatprep.mubr.f32.mxu0 %v2924_v9 }
0x375e   :  { %5497 = vmatmul.mubr.f32.gmra.mxu0 %v2925_v41 }
0x3761   :  { %v5824_v59 = vpop.permute.xlu0 %5823 }
0x3762   :  { %v5826_v15 = vunpack.i.h.bf16 %v5824_v59  ;;  %v5825_v19 = vunpack.i.l.bf16 %v5824_v59 }
0x3764   :  { %v2926_v25 = vsel %vm2603_vm3, %v2835_v39, %v5825_v19  ;;  %v2927_v54 = vsel %vm2603_vm3, %v2836_v58, %v5826_v15 }
0x3765   :  { %5499 = vmatprep.mubr.f32.mxu0 %v2926_v25 }
0x3766   :  { %5500 = vmatmul.mubr.f32.gmra.mxu0 %v2927_v54 }
0x37a4   :  { %v5829_v22 = vpop.permute.xlu1 %5828 }
0x37a5   :  { %v5831_v26 = vunpack.i.h.bf16 %v5829_v22  ;;  %v5830_v30 = vunpack.i.l.bf16 %v5829_v22 }
0x37a7   :  { %v2928_v31 = vsel %vm2603_vm3, %v2837_v60, %v5830_v30  ;;  %v2929_v57 = vsel %vm2603_vm3, %v2838_v40, %v5831_v26 }
0x37a8   :  { %5502 = vmatprep.mubr.f32.mxu0 %v2928_v31 }
0x37a9   :  { %5503 = vmatmul.mubr.f32.gmra.mxu0 %v2929_v57 }
0x37aa   :  { %5513 = vmatprep.mubr.msk.f32.mxu0 %vm357_vm2, %v6801_v12  ;;  %v3362_v12 = vld [vmem:[%s7822_s10 + $0x78] sm:$0xff] }
0x37ab   :  { %5540 = vmatprep.subr.mxu1 %v3362_v12 }
0x37ac   :  { %5541 = vmatpush3.msra.mxu1 %v3362_v12 }
0x37ad   :  { %5514 = vmatmul.mubr.msk.f32.vlgmr.msra.gmra.mxu0 %vm357_vm2, %v6810_v34  ;;  %v3361_v34 = vld [vmem:[%s7822_s10 + $0x70] sm:$0xff] }
0x37ae   :  { %5516 = vmatprep.mubr.msk.f32.mxu0 %vm357_vm2, %v6814_v35  ;;  %v3360_v35 = vld [vmem:[%s7822_s10 + $0x68] sm:$0xff]  ;;  %5542 = vmatprep.subr.mxu1 %v3361_v34 }
0x37af   :  { %5543 = vmatpush3.msra.mxu1 %v3361_v34 }
0x37b0   :  { %5544 = vmatprep.subr.mxu1 %v3360_v35 }
0x37b1   :  { %5517 = vmatmul.mubr.msk.f32.gmra.mxu0 %vm357_vm2, %v6850_v17  ;;  %5545 = vmatpush3.msra.mxu1 %v3360_v35  ;;  %v3352_v17 = vld [vmem:[%s7822_s10 + $0x28] sm:$0xff] }
0x37b2   :  { %5519 = vmatprep.mubr.msk.f32.mxu0 %vm357_vm2, %v6818_v46  ;;  %v3359_v46 = vld [vmem:[%s7822_s10 + $0x60] sm:$0xff] }
0x37b3   :  { %5546 = vmatprep.subr.mxu1 %v3359_v46 }
0x37b4   :  { %5547 = vmatpush3.msra.mxu1 %v3359_v46 }
0x37b5   :  { %5520 = vmatmul.mubr.msk.f32.gmra.mxu0 %vm357_vm2, %v6859_v10  ;;  %v3351_v10 = vld [vmem:[%s7822_s10 + $0x20] sm:$0xff] }
0x37b6   :  { %5522 = vmatprep.mubr.msk.f32.mxu0 %vm357_vm2, %v6822_v36  ;;  %v3358_v36 = vld [vmem:[%s7822_s10 + $0x58] sm:$0xff] }
0x37b7   :  { %5548 = vmatprep.subr.mxu1 %v3358_v36 }
0x37b8   :  { %5549 = vmatpush3.msra.mxu1 %v3358_v36 }
0x37b9   :  { %5523 = vmatmul.mubr.msk.f32.gmra.mxu0 %vm357_vm2, %v6865_v11  ;;  %v3350_v11 = vld [vmem:[%s7822_s10 + $0x18] sm:$0xff] }
0x37ba   :  { %5525 = vmatprep.mubr.msk.f32.mxu0 %vm357_vm2, %v6826_v37  ;;  %v3357_v37 = vld [vmem:[%s7822_s10 + $0x50] sm:$0xff] }
0x37bb   :  { %5550 = vmatprep.subr.mxu1 %v3357_v37 }
0x37bc   :  { %5551 = vmatpush3.msra.mxu1 %v3357_v37 }
0x37bd   :  { %5526 = vmatmul.mubr.msk.f32.gmra.mxu0 %vm357_vm2, %v6869_v42  ;;  %v3349_v42 = vld [vmem:[%s7822_s10 + $0x10] sm:$0xff] }
0x37be   :  { %5528 = vmatprep.mubr.msk.f32.mxu0 %vm357_vm2, %v6830_v5  ;;  %v3356_v5 = vld [vmem:[%s7822_s10 + $0x48] sm:$0xff] }
0x37bf   :  { %5552 = vmatprep.subr.mxu1 %v3356_v5 }
0x37c0   :  { %5553 = vmatpush3.msra.mxu1 %v3356_v5 }
0x37c1   :  { %5529 = vmatmul.mubr.msk.f32.gmra.mxu0 %vm357_vm2, %v6873_v16  ;;  %v3348_v16 = vld [vmem:[%s7822_s10 + $0x8] sm:$0xff] }
0x37c2   :  { %5531 = vmatprep.mubr.msk.f32.mxu0 %vm357_vm2, %v6834_v47  ;;  %v3355_v47 = vld [vmem:[%s7822_s10 + $0x40] sm:$0xff] }
0x37c3   :  { %5554 = vmatprep.subr.mxu1 %v3355_v47 }
0x37c4   :  { %5555 = vmatpush3.msra.mxu1 %v3355_v47 }
0x37c5   :  { %5532 = vmatmul.mubr.msk.f32.gmra.mxu0 %vm357_vm2, %v6877_v43  ;;  %v3347_v43 = vld [vmem:[%s7822_s10] sm:$0xff] }
0x37c6   :  { %5534 = vmatprep.mubr.msk.f32.mxu0 %vm357_vm2, %v6838_v38  ;;  %v3354_v38 = vld [vmem:[%s7822_s10 + $0x38] sm:$0xff] }
0x37c7   :  { %5556 = vmatprep.subr.mxu1 %v3354_v38 }
0x37c8   :  { %5557 = vmatpush3.msra.mxu1 %v3354_v38 }
0x37c9   :  { %5535 = vmatmul.mubr.msk.f32.gmra.mxu0 %vm357_vm2, %v6881_v44  ;;  %v5480_v44 = vpop.f32.mrf.mxu0 }
0x37ca   :  { %5537 = vmatprep.mubr.msk.f32.mxu0 %vm357_vm2, %v6842_v48  ;;  %v3353_v48 = vld [vmem:[%s7822_s10 + $0x30] sm:$0xff]  ;;  %v3008_v8 = vadd.f32 %v5480_v44, %v7286_v27 }
0x37cb   :  { %5558 = vmatprep.subr.mxu1 %v3353_v48 }
0x37cc   :  { %5559 = vmatpush3.msra.mxu1 %v3353_v48  ;;  %v3092_v32 = vmax.f32 %v3008_v8, 0.0 }
0x37cd   :  { %5538 = vmatmul.mubr.msk.f32.gmra.mxu0 %vm357_vm2, %v6885_v45  ;;  %5560 = vmatprep.subr.mxu1 %v3352_v17  ;;  %v7275_v45 = vpop.f32.mrf.mxu0 }
0x37ce   :  { %5561 = vmatpush3.msra.mxu1 %v3352_v17 }
0x37cf   :  { %5562 = vmatprep.subr.mxu1 %v3351_v10 }
0x37d0   :  { %5563 = vmatpush3.msra.mxu1 %v3351_v10 }
0x37d1   :  { %5564 = vmatprep.subr.mxu1 %v3350_v11 }
0x37d2   :  { %5565 = vmatpush3.msra.mxu1 %v3350_v11 }
0x37d3   :  { %5566 = vmatprep.subr.mxu1 %v3349_v42 }
0x37d4   :  { %5567 = vmatpush3.msra.mxu1 %v3349_v42 }
0x37d5   :  { %5568 = vmatprep.subr.mxu1 %v3348_v16 }
0x37d6   :  { %5569 = vmatpush3.msra.mxu1 %v3348_v16 }
0x37d7   :  { %5570 = vmatprep.subr.mxu1 %v3347_v43 }
0x37d8   :  { %5571 = vmatpush3.msra.mxu1 %v3347_v43 }
0x37f6   :  { %v5483_v18 = vpop.f32.mrf.mxu0 }
0x37f7   :  { %v3018_v21 = vadd.f32 %v5483_v18, %v7286_v27 }
0x37f8   :  { %v3012_v39 = vpop.f32.mrf.mxu0 }
0x37f9   :  { %v3013_v2 = vadd.f32 %v7286_v27, %v3012_v39  ;;  %v3094_v7 = vmax.f32 %v3018_v21, 0.0 }
0x37fb   :  { %v3093_v20 = vmax.f32 %v3013_v2, 0.0 }
0x37fe   :  { %v5486_v52 = vpop.f32.mrf.mxu0 }
0x37ff   :  { %v3028_v3 = vadd.f32 %v5486_v52, %v7286_v27 }
0x3800   :  { %v3022_v55 = vpop.f32.mrf.mxu0 }
0x3801   :  { %v3023_v51 = vadd.f32 %v7286_v27, %v3022_v55  ;;  %v3096_v19 = vmax.f32 %v3028_v3, 0.0 }
0x3803   :  { %v3095_v22 = vmax.f32 %v3023_v51, 0.0 }
0x3806   :  { %v5489_v58 = vpop.f32.mrf.mxu0 }
0x3807   :  { %v3038_v59 = vadd.f32 %v5489_v58, %v7286_v27 }
0x3808   :  { %v3032_v60 = vpop.f32.mrf.mxu0 }
0x3809   :  { %v3033_v26 = vadd.f32 %v7286_v27, %v3032_v60  ;;  %v3098_v35 = vmax.f32 %v3038_v59, 0.0 }
0x380b   :  { %v3097_v38 = vmax.f32 %v3033_v26, 0.0 }
0x380e   :  { %v5492_v40 = vpop.f32.mrf.mxu0 }
0x380f   :  { %v3048_v36 = vadd.f32 %v5492_v40, %v7286_v27 }
0x3810   :  { %v3042_v62 = vpop.f32.mrf.mxu0 }
0x3811   :  { %v3043_v48 = vadd.f32 %v7286_v27, %v3042_v62  ;;  %v3100_v18 = vmax.f32 %v3048_v36, 0.0 }
0x3813   :  { %v3099_v58 = vmax.f32 %v3043_v48, 0.0 }
0x3816   :  { %v5495_v63 = vpop.f32.mrf.mxu0 }
0x3817   :  { %v3058_v43 = vadd.f32 %v5495_v63, %v7286_v27 }
0x3818   :  { %v3052_v4 = vpop.f32.mrf.mxu0 }
0x3819   :  { %v3053_v60 = vadd.f32 %v7286_v27, %v3052_v4  ;;  %v3102_v63 = vmax.f32 %v3058_v43, 0.0 }
0x381e   :  { %v7277_v14 = vpop.f32.mrf.mxu0 }
0x3820   :  { %v7279_v56 = vpop.f32.mrf.mxu0 }
0x3826   :  { %v7281_v1 = vpop.f32.mrf.mxu0 }
0x3828   :  { %v7288_v28 = vpop.f32.mrf.mxu0 }
0x3869   :  { %v7290_v29 = vpop.f32.mrf.mxu0 }
0x386b   :  { %v7293_v61 = vpop.f32.mrf.mxu0 }
0x386d   :  { %v5515_v23 = vpop.f32.mrf.mxu0 }
0x386e   :  { %v3228_v24 = vadd.f32 %v5515_v23, %v7298_v0 }
0x386f   :  { %v3222_v50 = vpop.f32.mrf.mxu0 }
0x3870   :  { %v7303_v13 = vadd.f32 %v3228_v24, %v3092_v32  ;;  %v7306_v33 = vadd.f32 %v7298_v0, %v3222_v50  ;;  %v3068_v24 = vadd.f32 %v7277_v14, %v7286_v27  ;;  %v3078_v14 = vadd.f32 %v7281_v1, %v7286_v27 }
0x3871   :  { %v5518_v6 = vpop.f32.mrf.mxu0 }
0x3872   :  { %v3238_v49 = vadd.f32 %v5518_v6, %v7298_v0  ;;  %v3101_v6 = vmax.f32 %v3053_v60, 0.0 }
0x3873   :  { %v3232_v53 = vpop.f32.mrf.mxu0 }
0x3874   :  { %v3314_v9 = vadd.f32 %v3238_v49, %v3094_v7  ;;  %v3233_v41 = vadd.f32 %v7298_v0, %v3232_v53  ;;  %v3063_v7 = vadd.f32 %v7286_v27, %v7279_v56 }
0x3875   :  { %v5521_v15 = vpop.f32.mrf.mxu0 }
0x3876   :  { %v3313_v25 = vadd.f32 %v3233_v41, %v3093_v20  ;;  %v3248_v54 = vadd.f32 %v5521_v15, %v7298_v0  ;;  %v7315_v31 = vmax.f32 %v3314_v9, 0.0  ;;  %v3104_v41 = vmax.f32 %v3068_v24, 0.0 }
0x3877   :  { %v3242_v30 = vpop.f32.mrf.mxu0  ;;  %v3003_v24 = vadd.f32 %v7286_v27, %v7275_v45 }
0x3878   :  { %v7317_v57 = vmax.f32 %v3313_v25, 0.0  ;;  %v3316_v12 = vadd.f32 %v3248_v54, %v3096_v19  ;;  %v3243_v34 = vadd.f32 %v7298_v0, %v3242_v30  ;;  %v3103_v19 = vmax.f32 %v3063_v7, 0.0 }
0x3879   :  { %v5524_v46 = vpop.f32.mrf.mxu0  ;;  %v3073_v25 = vadd.f32 %v7286_v27, %v7288_v28 }
0x387a   :  { %v3315_v37 = vadd.f32 %v3243_v34, %v3095_v22  ;;  %v3258_v5 = vadd.f32 %v5524_v46, %v7298_v0  ;;  %v5832_v47 = vpack.i.bf16 %v7315_v31, %v7317_v57  ;;  %v7325_v10 = vmax.f32 %v3316_v12, 0.0 }
0x387b   :  { %v3252_v17 = vpop.f32.mrf.mxu0  ;;  %v3106_v12 = vmax.f32 %v3078_v14, 0.0 }
0x387c   :  { %v7327_v11 = vmax.f32 %v3315_v37, 0.0  ;;  %v3318_v42 = vadd.f32 %v3258_v5, %v3098_v35  ;;  %v3253_v16 = vadd.f32 %v7298_v0, %v3252_v17  ;;  %5833 = vrot.lane.b32.xlu0 %v5832_v47, %s6121_s6  ;;  %v3088_v35 = vadd.f32 %v7290_v29, %v7286_v27 }
0x387d   :  { %v5527_v44 = vpop.f32.mrf.mxu0  ;;  %v3105_v37 = vmax.f32 %v3073_v25, 0.0  ;;  %v3083_v5 = vadd.f32 %v7286_v27, %v7293_v61 }
0x387e   :  { %v3317_v39 = vadd.f32 %v3253_v16, %v3097_v38  ;;  %v3268_v52 = vadd.f32 %v5527_v44, %v7298_v0  ;;  %v5837_v55 = vpack.i.bf16 %v7325_v10, %v7327_v11  ;;  %v7336_v62 = vmax.f32 %v3318_v42, 0.0 }
0x387f   :  { %v3262_v40 = vpop.f32.mrf.mxu0  ;;  %v3108_v16 = vmax.f32 %v3088_v35, 0.0 }
0x3880   :  { %v7338_v8 = vmax.f32 %v3317_v39, 0.0  ;;  %v3320_v23 = vadd.f32 %v3268_v52, %v3100_v18  ;;  %v3263_v32 = vadd.f32 %v7298_v0, %v3262_v40  ;;  %5838 = vrot.lane.b32.xlu1 %v5837_v55, %s6121_s6  ;;  %v3107_v39 = vmax.f32 %v3083_v5, 0.0 }
0x3881   :  { %v5530_v21 = vpop.f32.mrf.mxu0 }
0x3882   :  { %v3319_v50 = vadd.f32 %v3263_v32, %v3099_v58  ;;  %v3278_v2 = vadd.f32 %v5530_v21, %v7298_v0  ;;  %v5842_v4 = vpack.i.bf16 %v7336_v62, %v7338_v8  ;;  %v7349_v49 = vmax.f32 %v3320_v23, 0.0 }
0x3883   :  { %v3272_v3 = vpop.f32.mrf.mxu0 }
0x3884   :  { %v7351_v51 = vmax.f32 %v3319_v50, 0.0  ;;  %v3322_v53 = vadd.f32 %v3278_v2, %v3102_v63  ;;  %v3273_v20 = vadd.f32 %v7298_v0, %v3272_v3  ;;  %5843 = vrot.lane.b32.xlu0 %v5842_v4, %s6121_s6  ;;  %v3091_v50 = vmax.f32 %v3003_v24, 0.0  ;;  %v3374_v24 = vld [vmem:[%s7824_s12 + $0x50] sm:$0xff] }
0x3885   :  { %v5533_v9 = vpop.f32.mrf.mxu0  ;;  %v3330_v4 = vmax.f32 %v7303_v13, 0.0 }
0x3886   :  { %v3321_v59 = vadd.f32 %v3273_v20, %v3101_v6  ;;  %v3288_v15 = vadd.f32 %v5533_v9, %v7298_v0  ;;  %v5847_v56 = vpack.i.bf16 %v7349_v49, %v7351_v51  ;;  %v7362_v22 = vmax.f32 %v3322_v53, 0.0 }
0x3887   :  { %v3282_v54 = vpop.f32.mrf.mxu0  ;;  %v3311_v2 = vadd.f32 %v7306_v33, %v3091_v50  ;;  %v3373_v50 = vld [vmem:[%s7824_s12 + $0x48] sm:$0xff] }
0x3888   :  { %v7364_v26 = vmax.f32 %v3321_v59, 0.0  ;;  %v3324_v30 = vadd.f32 %v3288_v15, %v3104_v41  ;;  %v3283_v1 = vadd.f32 %v7298_v0, %v3282_v54  ;;  %5848 = vrot.lane.b32.xlu1 %v5847_v56, %s6121_s6 }
0x3889   :  { %v5536_v34 = vpop.f32.mrf.mxu0  ;;  %v3329_v6 = vmax.f32 %v3311_v2, 0.0  ;;  %v3372_v2 = vld [vmem:[%s7824_s12 + $0x40] sm:$0xff] }
0x388a   :  { %v3323_v46 = vadd.f32 %v3283_v1, %v3103_v19  ;;  %v3298_v36 = vadd.f32 %v5536_v34, %v7298_v0  ;;  %v5852_v28 = vpack.i.bf16 %v7362_v22, %v7364_v26  ;;  %v7375_v38 = vmax.f32 %v3324_v30, 0.0 }
0x388b   :  { %v3292_v47 = vpop.f32.mrf.mxu0 }
0x388c   :  { %v7377_v48 = vmax.f32 %v3323_v46, 0.0  ;;  %v3326_v17 = vadd.f32 %v3298_v36, %v3106_v12  ;;  %v3293_v42 = vadd.f32 %v7298_v0, %v3292_v47  ;;  %5853 = vrot.lane.b32.xlu0 %v5852_v28, %s6121_s6 }
0x388d   :  { %v5539_v29 = vpop.f32.mrf.mxu0 }
0x388e   :  { %v3325_v43 = vadd.f32 %v3293_v42, %v3105_v37  ;;  %v3308_v44 = vadd.f32 %v5539_v29, %v7298_v0  ;;  %v5857_v18 = vpack.i.bf16 %v7375_v38, %v7377_v48  ;;  %v7384_v52 = vmax.f32 %v3326_v17, 0.0 }
0x388f   :  { %v3302_v61 = vpop.f32.mrf.mxu0 }
0x3890   :  { %v7386_v55 = vmax.f32 %v3325_v43, 0.0  ;;  %v3328_v58 = vadd.f32 %v3308_v44, %v3108_v16  ;;  %v3303_v60 = vadd.f32 %v7298_v0, %v3302_v61  ;;  %5858 = vrot.lane.b32.xlu1 %v5857_v18, %s6121_s6 }
0x3892   :  { %v3327_v40 = vadd.f32 %v3303_v60, %v3107_v39  ;;  %v5862_v23 = vpack.i.bf16 %v7384_v52, %v7386_v55  ;;  %v3346_v32 = vmax.f32 %v3328_v58, 0.0 }
0x3894   :  { %v3345_v63 = vmax.f32 %v3327_v40, 0.0  ;;  %5863 = vrot.lane.b32.xlu0 %v5862_v23, %s6121_s6  ;;  %v3379_v40 = vld [vmem:[%s7824_s12 + $0x78] sm:$0xff]  ;;  %v3378_v23 = vld [vmem:[%s7824_s12 + $0x70] sm:$0xff] }
0x3895   :  { %5596 = vmatprep.subr.mxu0 %v3379_v40 }
0x3896   :  { %v5867_v21 = vpack.i.bf16 %v3346_v32, %v3345_v63  ;;  %5597 = vmatpush3.msra.mxu0 %v3379_v40  ;;  %v3377_v32 = vld [vmem:[%s7824_s12 + $0x68] sm:$0xff]  ;;  %v3376_v63 = vld [vmem:[%s7824_s12 + $0x60] sm:$0xff] }
0x3897   :  { %5598 = vmatprep.subr.mxu0 %v3378_v23 }
0x3898   :  { %5868 = vrot.lane.b32.xlu1 %v5867_v21, %s6121_s6  ;;  %5599 = vmatpush3.msra.mxu0 %v3378_v23  ;;  %v3375_v21 = vld [vmem:[%s7824_s12 + $0x58] sm:$0xff] }
0x3899   :  { %5600 = vmatprep.subr.mxu0 %v3377_v32 }
0x389a   :  { %5601 = vmatpush3.msra.mxu0 %v3377_v32 }
0x389b   :  { %5602 = vmatprep.subr.mxu0 %v3376_v63 }
0x389c   :  { %5603 = vmatpush3.msra.mxu0 %v3376_v63 }
0x389d   :  { %5604 = vmatprep.subr.mxu0 %v3375_v21 }
0x389e   :  { %5605 = vmatpush3.msra.mxu0 %v3375_v21 }
0x389f   :  { %5606 = vmatprep.subr.mxu0 %v3374_v24 }
0x38a0   :  { %5607 = vmatpush3.msra.mxu0 %v3374_v24 }
0x38a1   :  { %5608 = vmatprep.subr.mxu0 %v3373_v50 }
0x38a2   :  { %5609 = vmatpush3.msra.mxu0 %v3373_v50 }
0x38a3   :  { %5610 = vmatprep.subr.mxu0 %v3372_v2 }
0x38a4   :  { %5611 = vmatpush3.msra.mxu0 %v3372_v2 }
0x38ee   :  { %v5834_v0 = vpop.permute.xlu0 %5833 }
0x38ef   :  { %v5836_v7 = vunpack.i.h.bf16 %v5834_v0  ;;  %v5835_v3 = vunpack.i.l.bf16 %v5834_v0  ;;  %v3371_v0 = vld [vmem:[%s7824_s12 + $0x38] sm:$0xff] }
0x38f0   :  { %5612 = vmatprep.subr.mxu0 %v3371_v0 }
0x38f1   :  { %v3445_v53 = vsel %vm2603_vm3, %v3329_v6, %v5835_v3  ;;  %v3446_v20 = vsel %vm2603_vm3, %v3330_v4, %v5836_v7  ;;  %v3370_v4 = vld [vmem:[%s7824_s12 + $0x30] sm:$0xff]  ;;  %5613 = vmatpush3.msra.mxu0 %v3371_v0  ;;  %v3369_v6 = vld [vmem:[%s7824_s12 + $0x28] sm:$0xff]  ;;  %v3368_v7 = vld [vmem:[%s7824_s12 + $0x20] sm:$0xff] }
0x38f2   :  { %v5839_v14 = vpop.permute.xlu1 %5838  ;;  %5572 = vmatprep.mubr.f32.mxu1 %v3445_v53  ;;  %5614 = vmatprep.subr.mxu0 %v3370_v4  ;;  %v3367_v3 = vld [vmem:[%s7824_s12 + $0x18] sm:$0xff]  ;;  %v3366_v53 = vld [vmem:[%s7824_s12 + $0x10] sm:$0xff] }
0x38f3   :  { %v5841_v9 = vunpack.i.h.bf16 %v5839_v14  ;;  %v5840_v41 = vunpack.i.l.bf16 %v5839_v14  ;;  %5573 = vmatmul.mubr.f32.vlgmr.msra.gmra.mxu1 %v3446_v20  ;;  %5615 = vmatpush3.msra.mxu0 %v3370_v4  ;;  %v3365_v20 = vld [vmem:[%s7824_s12 + $0x8] sm:$0xff]  ;;  %v4752_v14 = vld [vmem:[%s7823_s11] ss:$0 sm:$0xff]  ;;  %s4641_s11 = sshll.u32 %s6123_s29, 4  ;;  %s4642_s11 = int_to_ptr.vmem [resolvable:$true] %s4641_s11 }
0x38f4   :  { %5616 = vmatprep.subr.mxu0 %v3369_v6  ;;  %p6102_p1 = scmp.lt.s32.totalorder %s4642_s11, %s4642_s11 }
0x38f5   :  { %v3447_v45 = vsel %vm2603_vm3, %v7317_v57, %v5840_v41  ;;  %v3448_v27 = vsel %vm2603_vm3, %v7315_v31, %v5841_v9  ;;  %5617 = vmatpush3.msra.mxu0 %v3369_v6  ;;  %v3364_v41 = vld [vmem:[%s7824_s12] sm:$0xff] }
0x38f6   :  { %v5844_v33 = vpop.permute.xlu0 %5843  ;;  %5575 = vmatprep.mubr.f32.mxu1 %v3447_v45  ;;  %5618 = vmatprep.subr.mxu0 %v3368_v7 }
0x38f7   :  { %v5846_v13 = vunpack.i.h.bf16 %v5844_v33  ;;  %v5845_v59 = vunpack.i.l.bf16 %v5844_v33  ;;  %5576 = vmatmul.mubr.f32.gmra.mxu1 %v3448_v27  ;;  %5619 = vmatpush3.msra.mxu0 %v3368_v7 }
0x38f8   :  { %5620 = vmatprep.subr.mxu0 %v3367_v3 }
0x38f9   :  { %v3449_v15 = vsel %vm2603_vm3, %v7327_v11, %v5845_v59  ;;  %v3450_v56 = vsel %vm2603_vm3, %v7325_v10, %v5846_v13  ;;  %5621 = vmatpush3.msra.mxu0 %v3367_v3 }
0x38fa   :  { %v5849_v19 = vpop.permute.xlu1 %5848  ;;  %5578 = vmatprep.mubr.f32.mxu1 %v3449_v15  ;;  %5622 = vmatprep.subr.mxu0 %v3366_v53 }
0x38fb   :  { %v5851_v25 = vunpack.i.h.bf16 %v5849_v19  ;;  %v5850_v54 = vunpack.i.l.bf16 %v5849_v19  ;;  %5579 = vmatmul.mubr.f32.gmra.mxu1 %v3450_v56  ;;  %5623 = vmatpush3.msra.mxu0 %v3366_v53 }
0x38fc   :  { %5624 = vmatprep.subr.mxu0 %v3365_v20 }
0x38fd   :  { %v3451_v30 = vsel %vm2603_vm3, %v7338_v8, %v5850_v54  ;;  %v3452_v1 = vsel %vm2603_vm3, %v7336_v62, %v5851_v25  ;;  %5625 = vmatpush3.msra.mxu0 %v3365_v20 }
0x38fe   :  { %v5854_v12 = vpop.permute.xlu0 %5853  ;;  %5581 = vmatprep.mubr.f32.mxu1 %v3451_v30  ;;  %5626 = vmatprep.subr.mxu0 %v3364_v41 }
0x38ff   :  { %v5856_v34 = vunpack.i.h.bf16 %v5854_v12  ;;  %v5855_v35 = vunpack.i.l.bf16 %v5854_v12  ;;  %5582 = vmatmul.mubr.f32.gmra.mxu1 %v3452_v1  ;;  %5627 = vmatpush3.msra.mxu0 %v3364_v41 }
0x3901   :  { %v3453_v46 = vsel %vm2603_vm3, %v7351_v51, %v5855_v35  ;;  %v3454_v36 = vsel %vm2603_vm3, %v7349_v49, %v5856_v34 }
0x3902   :  { %v5859_v28 = vpop.permute.xlu1 %5858  ;;  %5584 = vmatprep.mubr.f32.mxu1 %v3453_v46 }
0x3903   :  { %v5861_v37 = vunpack.i.h.bf16 %v5859_v28  ;;  %v5860_v5 = vunpack.i.l.bf16 %v5859_v28  ;;  %5585 = vmatmul.mubr.f32.gmra.mxu1 %v3454_v36 }
0x3905   :  { %v3455_v47 = vsel %vm2603_vm3, %v7364_v26, %v5860_v5  ;;  %v3456_v17 = vsel %vm2603_vm3, %v7362_v22, %v5861_v37 }
0x3906   :  { %v5864_v42 = vpop.permute.xlu0 %5863  ;;  %5587 = vmatprep.mubr.f32.mxu1 %v3455_v47 }
0x3907   :  { %v5866_v29 = vunpack.i.h.bf16 %v5864_v42  ;;  %v5865_v16 = vunpack.i.l.bf16 %v5864_v42  ;;  %5588 = vmatmul.mubr.f32.gmra.mxu1 %v3456_v17 }
0x3909   :  { %v3457_v43 = vsel %vm2603_vm3, %v7377_v48, %v5865_v16  ;;  %v3458_v44 = vsel %vm2603_vm3, %v7375_v38, %v5866_v29 }
0x390a   :  { %5590 = vmatprep.mubr.f32.mxu1 %v3457_v43  ;;  %v5869_v18 = vpop.permute.xlu1 %5868 }
0x390b   :  { %v5871_v39 = vunpack.i.h.bf16 %v5869_v18  ;;  %v5870_v61 = vunpack.i.l.bf16 %v5869_v18  ;;  %5591 = vmatmul.mubr.f32.gmra.mxu1 %v3458_v44 }
0x390d   :  { %v3459_v58 = vsel %vm2603_vm3, %v7386_v55, %v5870_v61  ;;  %v3460_v60 = vsel %vm2603_vm3, %v7384_v52, %v5871_v39 }
0x390e   :  { %5593 = vmatprep.mubr.f32.mxu1 %v3459_v58 }
0x390f   :  { %5594 = vmatmul.mubr.f32.gmra.mxu1 %v3460_v60 }
0x39b3   :  { %v5574_v9 = vpop.f32.mrf.mxu1 }
0x39b4   :  { %v7479_v45 = vadd.f32 %v5574_v9, %v4752_v14 }
0x39b5   :  { %v3533_v27 = vpop.f32.mrf.mxu1 }
0x39b6   :  { %v7481_v33 = vadd.f32 %v4752_v14, %v3533_v27 }
0x39b7   :  { %v5577_v13 = vpop.f32.mrf.mxu1 }
0x39b8   :  { %v7483_v59 = vadd.f32 %v5577_v13, %v4752_v14 }
0x39b9   :  { %v3543_v15 = vpop.f32.mrf.mxu1 }
0x39ba   :  { %v7485_v56 = vadd.f32 %v4752_v14, %v3543_v15  ;;  %v3615_v25 = vmax.f32 %v7483_v59, 0.0 }
0x39bb   :  { %v5580_v19 = vpop.f32.mrf.mxu1 }
0x39bc   :  { %v3614_v54 = vmax.f32 %v7485_v56, 0.0  ;;  %v7489_v30 = vadd.f32 %v5580_v19, %v4752_v14 }
0x39bd   :  { %v3553_v1 = vpop.f32.mrf.mxu1 }
0x39be   :  { %v5872_v12 = vpack.i.bf16 %v3615_v25, %v3614_v54  ;;  %v7495_v34 = vadd.f32 %v4752_v14, %v3553_v1  ;;  %v3617_v46 = vmax.f32 %v7489_v30, 0.0  ;;  %v3613_v1 = vmax.f32 %v7479_v45, 0.0 }
0x39bf   :  { %v5583_v35 = vpop.f32.mrf.mxu1 }
0x39c0   :  { %v3616_v36 = vmax.f32 %v7495_v34, 0.0  ;;  %v7499_v28 = vadd.f32 %v5583_v35, %v4752_v14  ;;  %5873 = vrot.lane.b32.xlu0 %v5872_v12, %s6121_s6  ;;  %v3612_v12 = vmax.f32 %v7481_v33, 0.0 }
0x39c1   :  { %v3563_v37 = vpop.f32.mrf.mxu1 }
0x39c2   :  { %v5877_v5 = vpack.i.bf16 %v3617_v46, %v3616_v36  ;;  %v7506_v47 = vadd.f32 %v4752_v14, %v3563_v37  ;;  %v3619_v42 = vmax.f32 %v7499_v28, 0.0 }
0x39c3   :  { %v5586_v17 = vpop.f32.mrf.mxu1 }
0x39c4   :  { %v3618_v29 = vmax.f32 %v7506_v47, 0.0  ;;  %v7510_v16 = vadd.f32 %v5586_v17, %v4752_v14  ;;  %5878 = vrot.lane.b32.xlu1 %v5877_v5, %s6121_s6 }
0x39c5   :  { %v3573_v43 = vpop.f32.mrf.mxu1 }
0x39c6   :  { %v5882_v44 = vpack.i.bf16 %v3619_v42, %v3618_v29  ;;  %v7515_v18 = vadd.f32 %v4752_v14, %v3573_v43  ;;  %v3621_v61 = vmax.f32 %v7510_v16, 0.0 }
0x39c7   :  { %v5589_v39 = vpop.f32.mrf.mxu1 }
0x39c8   :  { %v3620_v58 = vmax.f32 %v7515_v18, 0.0  ;;  %v7519_v60 = vadd.f32 %v5589_v39, %v4752_v14  ;;  %5883 = vrot.lane.b32.xlu0 %v5882_v44, %s6121_s6 }
0x39c9   :  { %v3583_v40 = vpop.f32.mrf.mxu1 }
0x39ca   :  { %v5887_v23 = vpack.i.bf16 %v3621_v61, %v3620_v58  ;;  %v7524_v32 = vadd.f32 %v4752_v14, %v3583_v40  ;;  %v3623_v21 = vmax.f32 %v7519_v60, 0.0 }
0x39cb   :  { %v5592_v63 = vpop.f32.mrf.mxu1 }
0x39cc   :  { %v3622_v24 = vmax.f32 %v7524_v32, 0.0  ;;  %v7528_v50 = vadd.f32 %v5592_v63, %v4752_v14  ;;  %5888 = vrot.lane.b32.xlu1 %v5887_v23, %s6121_s6 }
0x39cd   :  { %v3593_v2 = vpop.f32.mrf.mxu1 }
0x39ce   :  { %v5892_v0 = vpack.i.bf16 %v3623_v21, %v3622_v24  ;;  %v7531_v4 = vadd.f32 %v4752_v14, %v3593_v2  ;;  %v3625_v7 = vmax.f32 %v7528_v50, 0.0 }
0x39cf   :  { %v5595_v6 = vpop.f32.mrf.mxu1 }
0x39d0   :  { %v3624_v3 = vmax.f32 %v7531_v4, 0.0  ;;  %v3609_v53 = vadd.f32 %v5595_v6, %v4752_v14  ;;  %5893 = vrot.lane.b32.xlu0 %v5892_v0, %s6121_s6  ;;  %v3893_v6 = vld [vmem:[%s7826_s14 + $0x60] sm:$0xff] }
0x39d1   :  { %v3603_v20 = vpop.f32.mrf.mxu1 }
0x39d2   :  { %v5897_v9 = vpack.i.bf16 %v3625_v7, %v3624_v3  ;;  %v3604_v41 = vadd.f32 %v4752_v14, %v3603_v20  ;;  %v3627_v27 = vmax.f32 %v3609_v53, 0.0  ;;  %v3890_v53 = vld [vmem:[%s7826_s14 + $0x48] sm:$0xff]  ;;  %v3889_v20 = vld [vmem:[%s7826_s14 + $0x40] sm:$0xff] }
0x39d4   :  { %v3626_v13 = vmax.f32 %v3604_v41, 0.0  ;;  %5898 = vrot.lane.b32.xlu1 %v5897_v9, %s6121_s6  ;;  %v3888_v9 = vld [vmem:[%s7826_s14 + $0x38] sm:$0xff]  ;;  %v3887_v41 = vld [vmem:[%s7826_s14 + $0x30] sm:$0xff] }
0x39d6   :  { %v5902_v15 = vpack.i.bf16 %v3627_v27, %v3626_v13  ;;  %v3886_v27 = vld [vmem:[%s7826_s14 + $0x28] sm:$0xff]  ;;  %v3885_v13 = vld [vmem:[%s7826_s14 + $0x20] sm:$0xff] }
0x39d8   :  { %5903 = vrot.lane.b32.xlu0 %v5902_v15, %s6121_s6  ;;  %v3884_v15 = vld [vmem:[%s7826_s14 + $0x18] sm:$0xff] }
0x3a32   :  { %v5874_v19 = vpop.permute.xlu0 %5873 }
0x3a33   :  { %v5876_v35 = vunpack.i.h.bf16 %v5874_v19  ;;  %v5875_v37 = vunpack.i.l.bf16 %v5874_v19  ;;  %v3883_v19 = vld [vmem:[%s7826_s14 + $0x10] sm:$0xff] }
0x3a35   :  { %v3684_v5 = vsel %vm2603_vm3, %v3612_v12, %v5875_v37  ;;  %v3685_v47 = vsel %vm2603_vm3, %v3613_v1, %v5876_v35  ;;  %v3882_v1 = vld [vmem:[%s7826_s14 + $0x8] sm:$0xff]  ;;  %v4753_v12 = vld [vmem:[%s7825_s13] ss:$0 sm:$0xff] }
0x3a36   :  { %v5879_v17 = vpop.permute.xlu1 %5878  ;;  %5628 = vmatprep.mubr.f32.mxu0 %v3684_v5 }
0x3a37   :  { %v5881_v14 = vunpack.i.h.bf16 %v5879_v17  ;;  %v5880_v43 = vunpack.i.l.bf16 %v5879_v17  ;;  %5629 = vmatmul.mubr.f32.vlgmr.msra.gmra.mxu0 %v3685_v47 }
0x3a39   :  { %v3686_v44 = vsel %vm2603_vm3, %v3614_v54, %v5880_v43  ;;  %v3687_v45 = vsel %vm2603_vm3, %v3615_v25, %v5881_v14 }
0x3a3a   :  { %v5884_v33 = vpop.permute.xlu0 %5883  ;;  %5631 = vmatprep.mubr.f32.mxu0 %v3686_v44 }
0x3a3b   :  { %v5886_v18 = vunpack.i.h.bf16 %v5884_v33  ;;  %v5885_v39 = vunpack.i.l.bf16 %v5884_v33  ;;  %5632 = vmatmul.mubr.f32.gmra.mxu0 %v3687_v45 }
0x3a3d   :  { %v3688_v60 = vsel %vm2603_vm3, %v3616_v36, %v5885_v39  ;;  %v3689_v40 = vsel %vm2603_vm3, %v3617_v46, %v5886_v18  ;;  %v3881_v18 = vld [vmem:[%s7826_s14] sm:$0xff] }
0x3a3e   :  { %v5889_v56 = vpop.permute.xlu1 %5888  ;;  %5634 = vmatprep.mubr.f32.mxu0 %v3688_v60 }
0x3a3f   :  { %v5891_v54 = vunpack.i.h.bf16 %v5889_v56  ;;  %v5890_v23 = vunpack.i.l.bf16 %v5889_v56  ;;  %5635 = vmatmul.mubr.f32.gmra.mxu0 %v3689_v40 }
0x3a41   :  { %v3690_v59 = vsel %vm2603_vm3, %v3618_v29, %v5890_v23  ;;  %v3691_v25 = vsel %vm2603_vm3, %v3619_v42, %v5891_v54 }
0x3a42   :  { %v5894_v32 = vpop.permute.xlu0 %5893  ;;  %5637 = vmatprep.mubr.f32.mxu0 %v3690_v59 }
0x3a43   :  { %v5896_v34 = vunpack.i.h.bf16 %v5894_v32  ;;  %v5895_v63 = vunpack.i.l.bf16 %v5894_v32  ;;  %5638 = vmatmul.mubr.f32.gmra.mxu0 %v3691_v25 }
0x3a45   :  { %v3692_v30 = vsel %vm2603_vm3, %v3620_v58, %v5895_v63  ;;  %v3693_v46 = vsel %vm2603_vm3, %v3621_v61, %v5896_v34  ;;  %v3896_v61 = vld [vmem:[%s7826_s14 + $0x78] sm:$0xff] }
0x3a46   :  { %v5899_v36 = vpop.permute.xlu1 %5898  ;;  %5640 = vmatprep.mubr.f32.mxu0 %v3692_v30  ;;  %5649 = vmatprep.subr.mxu1 %v3896_v61 }
0x3a47   :  { %v5901_v50 = vunpack.i.h.bf16 %v5899_v36  ;;  %v5900_v2 = vunpack.i.l.bf16 %v5899_v36  ;;  %5641 = vmatmul.mubr.f32.gmra.mxu0 %v3693_v46  ;;  %5650 = vmatpush3.msra.mxu1 %v3896_v61  ;;  %v7630_v46 = vld [vmem:[%s7830_s18 + $0x38] sm:$0xff] }
0x3a49   :  { %v3694_v28 = vsel %vm2603_vm3, %v3622_v24, %v5900_v2  ;;  %v3695_v42 = vsel %vm2603_vm3, %v3623_v21, %v5901_v50  ;;  %v3895_v24 = vld [vmem:[%s7826_s14 + $0x70] sm:$0xff]  ;;  %v3894_v21 = vld [vmem:[%s7826_s14 + $0x68] sm:$0xff] }
0x3a4a   :  { %v5904_v29 = vpop.permute.xlu0 %5903  ;;  %5643 = vmatprep.mubr.f32.mxu0 %v3694_v28  ;;  %5651 = vmatprep.subr.mxu1 %v3895_v24 }
0x3a4b   :  { %v5906_v0 = vunpack.i.h.bf16 %v5904_v29  ;;  %v5905_v4 = vunpack.i.l.bf16 %v5904_v29  ;;  %5644 = vmatmul.mubr.f32.gmra.mxu0 %v3695_v42  ;;  %5652 = vmatpush3.msra.mxu1 %v3895_v24 }
0x3a4c   :  { %5653 = vmatprep.subr.mxu1 %v3894_v21 }
0x3a4d   :  { %v3696_v58 = vsel %vm2603_vm3, %v3624_v3, %v5905_v4  ;;  %v3697_v16 = vsel %vm2603_vm3, %v3625_v7, %v5906_v0  ;;  %5654 = vmatpush3.msra.mxu1 %v3894_v21  ;;  %v3892_v7 = vld [vmem:[%s7826_s14 + $0x58] sm:$0xff]  ;;  %v3891_v3 = vld [vmem:[%s7826_s14 + $0x50] sm:$0xff] }
0x3a4e   :  { %5646 = vmatprep.mubr.f32.mxu0 %v3696_v58  ;;  %5655 = vmatprep.subr.mxu1 %v3893_v6 }
0x3a4f   :  { %5647 = vmatmul.mubr.f32.gmra.mxu0 %v3697_v16  ;;  %5656 = vmatpush3.msra.mxu1 %v3893_v6 }
0x3a50   :  { %5657 = vmatprep.subr.mxu1 %v3892_v7 }
0x3a51   :  { %5658 = vmatpush3.msra.mxu1 %v3892_v7 }
0x3a52   :  { %5659 = vmatprep.subr.mxu1 %v3891_v3 }
0x3a53   :  { %5660 = vmatpush3.msra.mxu1 %v3891_v3 }
0x3a54   :  { %5661 = vmatprep.subr.mxu1 %v3890_v53 }
0x3a55   :  { %5662 = vmatpush3.msra.mxu1 %v3890_v53 }
0x3a56   :  { %5663 = vmatprep.subr.mxu1 %v3889_v20 }
0x3a57   :  { %5664 = vmatpush3.msra.mxu1 %v3889_v20 }
0x3a58   :  { %5665 = vmatprep.subr.mxu1 %v3888_v9 }
0x3a59   :  { %5666 = vmatpush3.msra.mxu1 %v3888_v9 }
0x3a5a   :  { %5667 = vmatprep.subr.mxu1 %v3887_v41 }
0x3a5b   :  { %5668 = vmatpush3.msra.mxu1 %v3887_v41 }
0x3a5c   :  { %5669 = vmatprep.subr.mxu1 %v3886_v27 }
0x3a5d   :  { %5670 = vmatpush3.msra.mxu1 %v3886_v27 }
0x3a5e   :  { %5671 = vmatprep.subr.mxu1 %v3885_v13 }
0x3a5f   :  { %5672 = vmatpush3.msra.mxu1 %v3885_v13 }
0x3a60   :  { %5673 = vmatprep.subr.mxu1 %v3884_v15 }
0x3a61   :  { %5674 = vmatpush3.msra.mxu1 %v3884_v15 }
0x3a62   :  { %5675 = vmatprep.subr.mxu1 %v3883_v19 }
0x3a63   :  { %5676 = vmatpush3.msra.mxu1 %v3883_v19 }
0x3a64   :  { %5677 = vmatprep.subr.mxu1 %v3882_v1 }
0x3a65   :  { %5678 = vmatpush3.msra.mxu1 %v3882_v1 }
0x3a66   :  { %5679 = vmatprep.subr.mxu1 %v3881_v18 }
0x3a67   :  { %5680 = vmatpush3.msra.mxu1 %v3881_v18 }
0x3a68   :  { %5721 = vmatprep.subr.mxu1 %v7630_v46 }
0x3af7   :  { %v5630_v35 = vpop.f32.mrf.mxu0 }
0x3af8   :  { %v7614_v37 = vadd.f32 %v5630_v35, %v4753_v12 }
0x3af9   :  { %v3770_v5 = vpop.f32.mrf.mxu0 }
0x3afa   :  { %v7616_v47 = vadd.f32 %v4753_v12, %v3770_v5 }
0x3afb   :  { %v5633_v17 = vpop.f32.mrf.mxu0 }
0x3afc   :  { %v7618_v14 = vadd.f32 %v5633_v17, %v4753_v12 }
0x3afd   :  { %v3780_v43 = vpop.f32.mrf.mxu0 }
0x3afe   :  { %v7620_v44 = vadd.f32 %v4753_v12, %v3780_v43 }
0x3aff   :  { %v5636_v45 = vpop.f32.mrf.mxu0 }
0x3b00   :  { %v3796_v33 = vadd.f32 %v5636_v45, %v4753_v12 }
0x3b01   :  { %v3790_v39 = vpop.f32.mrf.mxu0 }
0x3b02   :  { %v3844_v60 = vmax.f32 %v3796_v33, 0.0  ;;  %v3791_v40 = vadd.f32 %v4753_v12, %v3790_v39 }
0x3b03   :  { %v5639_v56 = vpop.f32.mrf.mxu0 }
0x3b04   :  { %v3843_v54 = vmax.f32 %v3791_v40, 0.0  ;;  %v3806_v23 = vadd.f32 %v5639_v56, %v4753_v12  ;;  %v3858_v59 = vadd.f32 %v3844_v60, %v7336_v62  ;;  %v3839_v60 = vmax.f32 %v7616_v47, 0.0 }
0x3b05   :  { %v3800_v25 = vpop.f32.mrf.mxu0  ;;  %v3842_v56 = vmax.f32 %v7618_v14, 0.0 }
0x3b06   :  { %v3857_v32 = vadd.f32 %v3843_v54, %v7338_v8  ;;  %v3846_v34 = vmax.f32 %v3806_v23, 0.0  ;;  %v3801_v63 = vadd.f32 %v4753_v12, %v3800_v25  ;;  %v7635_v28 = vmax.f32 %v3858_v59, 0.0 }
0x3b07   :  { %v5642_v30 = vpop.f32.mrf.mxu0  ;;  %v3841_v54 = vmax.f32 %v7620_v44, 0.0  ;;  %v3856_v25 = vadd.f32 %v3842_v56, %v7325_v10  ;;  %v4248_v10 = vld [vmem:[%s7830_s18 + $0x28] sm:$0xff] }
0x3b08   :  { %v7632_v36 = vmax.f32 %v3857_v32, 0.0  ;;  %v3845_v50 = vmax.f32 %v3801_v63, 0.0  ;;  %v3816_v2 = vadd.f32 %v5642_v30, %v4753_v12  ;;  %v3860_v62 = vadd.f32 %v3846_v34, %v7349_v49 }
0x3b09   :  { %v3810_v42 = vpop.f32.mrf.mxu0  ;;  %v3855_v32 = vadd.f32 %v3841_v54, %v7327_v11  ;;  %v3870_v14 = vmax.f32 %v3856_v25, 0.0 }
0x3b0a   :  { %v3859_v8 = vadd.f32 %v3845_v50, %v7351_v51  ;;  %v3848_v29 = vmax.f32 %v3816_v2, 0.0  ;;  %v3811_v0 = vadd.f32 %v4753_v12, %v3810_v42  ;;  %v5907_v58 = vpack.i.bf16 %v7635_v28, %v7632_v36  ;;  %v4247_v42 = vld [vmem:[%s7830_s18 + $0x20] sm:$0xff] }
0x3b0b   :  { %v5645_v4 = vpop.f32.mrf.mxu0  ;;  %v7643_v21 = vmax.f32 %v3860_v62, 0.0  ;;  %v3869_v44 = vmax.f32 %v3855_v32, 0.0 }
0x3b0c   :  { %v7641_v16 = vmax.f32 %v3859_v8, 0.0  ;;  %v3847_v61 = vmax.f32 %v3811_v0, 0.0  ;;  %v3826_v24 = vadd.f32 %v5645_v4, %v4753_v12  ;;  %v3862_v6 = vadd.f32 %v3848_v29, %v7362_v22  ;;  %5908 = vrot.lane.b32.xlu1 %v5907_v58, %s6121_s6 }
0x3b0d   :  { %v3820_v49 = vpop.f32.mrf.mxu0 }
0x3b0e   :  { %v3861_v7 = vadd.f32 %v3847_v61, %v7364_v26  ;;  %v3850_v51 = vmax.f32 %v3826_v24, 0.0  ;;  %v3821_v3 = vadd.f32 %v4753_v12, %v3820_v49  ;;  %v5912_v20 = vpack.i.bf16 %v7643_v21, %v7641_v16 }
0x3b0f   :  { %v5648_v53 = vpop.f32.mrf.mxu0  ;;  %v7653_v15 = vmax.f32 %v3862_v6, 0.0  ;;  %v4245_v6 = vld [vmem:[%s7830_s18 + $0x10] sm:$0xff] }
0x3b10   :  { %v7650_v9 = vmax.f32 %v3861_v7, 0.0  ;;  %v3864_v41 = vadd.f32 %v3850_v51, %v7375_v38  ;;  %v3849_v27 = vmax.f32 %v3821_v3, 0.0  ;;  %v3836_v13 = vadd.f32 %v5648_v53, %v4753_v12  ;;  %5913 = vrot.lane.b32.xlu0 %v5912_v20, %s6121_s6  ;;  %v4244_v51 = vld [vmem:[%s7830_s18 + $0x8] sm:$0xff] }
0x3b11   :  { %v3830_v22 = vpop.f32.mrf.mxu0 }
0x3b12   :  { %v3863_v19 = vadd.f32 %v3849_v27, %v7377_v48  ;;  %v3852_v26 = vmax.f32 %v3836_v13, 0.0  ;;  %v3831_v1 = vadd.f32 %v4753_v12, %v3830_v22  ;;  %v5917_v35 = vpack.i.bf16 %v7653_v15, %v7650_v9  ;;  %v3905_v22 = vld [vmem:[%s7828_s16 + $0x38] sm:$0xff] }
0x3b13   :  { %v3878_v5 = vmax.f32 %v3864_v41, 0.0  ;;  %v3840_v12 = vmax.f32 %v7614_v37, 0.0  ;;  %v4243_v41 = vld [vmem:[%s7830_s18] sm:$0xff]  ;;  %5696 = vmatprep.subr.mxu0 %v3905_v22 }
0x3b14   :  { %v3877_v17 = vmax.f32 %v3863_v19, 0.0  ;;  %v3866_v43 = vadd.f32 %v3852_v26, %v7384_v52  ;;  %v3851_v45 = vmax.f32 %v3831_v1, 0.0  ;;  %5918 = vrot.lane.b32.xlu1 %v5917_v35, %s6121_s6  ;;  %v3853_v52 = vadd.f32 %v3839_v60, %v7317_v57  ;;  %v4249_v57 = vld [vmem:[%s7830_s18 + $0x30] sm:$0xff]  ;;  %5697 = vmatpush3.msra.mxu0 %v3905_v22  ;;  %v4754_v19 = vld [vmem:[%s7827_s15] ss:$0 sm:$0xff] }
0x3b15   :  { %v3854_v40 = vadd.f32 %v3840_v12, %v7315_v31  ;;  %v3898_v1 = vld [vmem:[%s7828_s16] sm:$0xff] }
0x3b16   :  { %v5922_v38 = vpack.i.bf16 %v3878_v5, %v3877_v17  ;;  %v3865_v33 = vadd.f32 %v3851_v45, %v7386_v55  ;;  %v3880_v18 = vmax.f32 %v3866_v43, 0.0  ;;  %v3867_v23 = vmax.f32 %v3853_v52, 0.0  ;;  %v4380_v52 = vld [vmem:[%s7832_s20 + $0x18] sm:$0xff] }
0x3b17   :  { %v3868_v55 = vmax.f32 %v3854_v40, 0.0 }
0x3b18   :  { %v3879_v39 = vmax.f32 %v3865_v33, 0.0  ;;  %5923 = vrot.lane.b32.xlu0 %v5922_v38, %s6121_s6 }
0x3b1a   :  { %v5927_v48 = vpack.i.bf16 %v3880_v18, %v3879_v39 }
0x3b1c   :  { %5928 = vrot.lane.b32.xlu1 %v5927_v48, %s6121_s6 }
0x3b7e   :  { %v5909_v59 = vpop.permute.xlu1 %5908 }
0x3b7f   :  { %v5911_v34 = vunpack.i.h.bf16 %v5909_v59  ;;  %v5910_v63 = vunpack.i.l.bf16 %v5909_v59 }
0x3b81   :  { %v3947_v37 = vsel %vm2603_vm3, %v3867_v23, %v5910_v63  ;;  %v3948_v47 = vsel %vm2603_vm3, %v3868_v55, %v5911_v34 }
0x3b82   :  { %v5914_v31 = vpop.permute.xlu0 %5913  ;;  %5681 = vmatprep.mubr.f32.mxu1 %v3947_v37 }
0x3b83   :  { %v5916_v30 = vunpack.i.h.bf16 %v5914_v31  ;;  %v5915_v50 = vunpack.i.l.bf16 %v5914_v31  ;;  %5682 = vmatmul.mubr.f32.vlgmr.msra.gmra.mxu1 %v3948_v47 }
0x3b84   :  { %5722 = vmatpush3.msra.mxu1 %v7630_v46  ;;  %v4246_v46 = vld [vmem:[%s7830_s18 + $0x18] sm:$0xff] }
0x3b85   :  { %v3949_v11 = vsel %vm2603_vm3, %v3869_v44, %v5915_v50  ;;  %v3950_v2 = vsel %vm2603_vm3, %v3870_v14, %v5916_v30  ;;  %5723 = vmatprep.subr.mxu1 %v4249_v57 }
0x3b86   :  { %v5919_v62 = vpop.permute.xlu1 %5918  ;;  %5684 = vmatprep.mubr.f32.mxu1 %v3949_v11  ;;  %5724 = vmatpush3.msra.mxu1 %v4249_v57 }
0x3b87   :  { %v5921_v8 = vunpack.i.h.bf16 %v5919_v62  ;;  %v5920_v29 = vunpack.i.l.bf16 %v5919_v62  ;;  %5685 = vmatmul.mubr.f32.gmra.mxu1 %v3950_v2  ;;  %5725 = vmatprep.subr.mxu1 %v4248_v10 }
0x3b88   :  { %5726 = vmatpush3.msra.mxu1 %v4248_v10 }
0x3b89   :  { %v3951_v4 = vsel %vm2603_vm3, %v7632_v36, %v5920_v29  ;;  %v3952_v58 = vsel %vm2603_vm3, %v7635_v28, %v5921_v8  ;;  %5727 = vmatprep.subr.mxu1 %v4247_v42 }
0x3b8a   :  { %v5924_v0 = vpop.permute.xlu0 %5923  ;;  %5687 = vmatprep.mubr.f32.mxu1 %v3951_v4  ;;  %5728 = vmatpush3.msra.mxu1 %v4247_v42 }
0x3b8b   :  { %v5926_v61 = vunpack.i.h.bf16 %v5924_v0  ;;  %v5925_v24 = vunpack.i.l.bf16 %v5924_v0  ;;  %5688 = vmatmul.mubr.f32.gmra.mxu1 %v3952_v58  ;;  %5729 = vmatprep.subr.mxu1 %v4246_v46 }
0x3b8c   :  { %5730 = vmatpush3.msra.mxu1 %v4246_v46 }
0x3b8d   :  { %v3953_v49 = vsel %vm2603_vm3, %v7641_v16, %v5925_v24  ;;  %v3954_v7 = vsel %vm2603_vm3, %v7643_v21, %v5926_v61  ;;  %5731 = vmatprep.subr.mxu1 %v4245_v6  ;;  %v4379_v61 = vld [vmem:[%s7832_s20 + $0x10] sm:$0xff]  ;;  %v4378_v24 = vld [vmem:[%s7832_s20 + $0x8] sm:$0xff] }
0x3b8e   :  { %v5929_v3 = vpop.permute.xlu1 %5928  ;;  %5690 = vmatprep.mubr.f32.mxu1 %v3953_v49  ;;  %5732 = vmatpush3.msra.mxu1 %v4245_v6  ;;  %v4377_v6 = vld [vmem:[%s7832_s20] sm:$0xff]  ;;  %v4382_v49 = vld [vmem:[%s7834_s22 + $0x8] sm:$0xff]  ;;  %s7862_s20 = sld [smem:[#allocation16_spill]] }
0x3b8f   :  { %v5931_v53 = vunpack.i.h.bf16 %v5929_v3  ;;  %v5930_v20 = vunpack.i.l.bf16 %v5929_v3  ;;  %5691 = vmatmul.mubr.f32.gmra.mxu1 %v3954_v7  ;;  %5733 = vmatprep.subr.mxu1 %v4244_v51 }
0x3b90   :  { %5734 = vmatpush3.msra.mxu1 %v4244_v51 }
0x3b91   :  { %v3955_v27 = vsel %vm2603_vm3, %v7650_v9, %v5930_v20  ;;  %v3956_v13 = vsel %vm2603_vm3, %v7653_v15, %v5931_v53  ;;  %5735 = vmatprep.subr.mxu1 %v4243_v41  ;;  %v4755_v53 = vld [vmem:[%s7829_s17] ss:$0 sm:$0xff] }
0x3b92   :  { %5693 = vmatprep.mubr.f32.mxu1 %v3955_v27  ;;  %5736 = vmatpush3.msra.mxu1 %v4243_v41 }
0x3b93   :  { %5694 = vmatmul.mubr.f32.gmra.mxu1 %v3956_v13  ;;  %5776 = vmatprep.subr.mxu1 %v4382_v49 }
0x3b94   :  { %5737 = vmatprep.mubr.msk.f32.mxu1 %vm2603_vm3, %v7632_v36  ;;  %v3904_v36 = vld [vmem:[%s7828_s16 + $0x30] sm:$0xff]  ;;  %v4762_v41 = vld [vmem:[%s7862_s20] ss:$0 sm:$0xff] }
0x3b95   :  { %5698 = vmatprep.subr.mxu0 %v3904_v36 }
0x3b96   :  { %5699 = vmatpush3.msra.mxu0 %v3904_v36 }
0x3b97   :  { %5738 = vmatmul.mubr.msk.f32.vlgmr.msra.gmra.mxu1 %vm2603_vm3, %v7635_v28  ;;  %v3903_v28 = vld [vmem:[%s7828_s16 + $0x28] sm:$0xff] }
0x3b98   :  { %5740 = vmatprep.mubr.msk.f32.mxu1 %vm2603_vm3, %v7641_v16  ;;  %v3902_v16 = vld [vmem:[%s7828_s16 + $0x20] sm:$0xff]  ;;  %5700 = vmatprep.subr.mxu0 %v3903_v28 }
0x3b99   :  { %5701 = vmatpush3.msra.mxu0 %v3903_v28  ;;  %5778 = vmatpush3.msra.mxu1 %v4382_v49 }
0x3b9a   :  { %5702 = vmatprep.subr.mxu0 %v3902_v16 }
0x3b9b   :  { %5741 = vmatmul.mubr.msk.f32.gmra.mxu1 %vm2603_vm3, %v7643_v21  ;;  %v3901_v21 = vld [vmem:[%s7828_s16 + $0x18] sm:$0xff]  ;;  %5703 = vmatpush3.msra.mxu0 %v3902_v16 }
0x3b9c   :  { %5743 = vmatprep.mubr.msk.f32.mxu1 %vm2603_vm3, %v7650_v9  ;;  %v3900_v9 = vld [vmem:[%s7828_s16 + $0x10] sm:$0xff]  ;;  %5704 = vmatprep.subr.mxu0 %v3901_v21 }
0x3b9d   :  { %5705 = vmatpush3.msra.mxu0 %v3901_v21 }
0x3b9e   :  { %5706 = vmatprep.subr.mxu0 %v3900_v9 }
0x3b9f   :  { %5744 = vmatmul.mubr.msk.f32.gmra.mxu1 %vm2603_vm3, %v7653_v15  ;;  %v3899_v15 = vld [vmem:[%s7828_s16 + $0x8] sm:$0xff]  ;;  %5707 = vmatpush3.msra.mxu0 %v3900_v9 }
0x3ba0   :  { %5708 = vmatprep.subr.mxu0 %v3899_v15 }
0x3ba1   :  { %5709 = vmatpush3.msra.mxu0 %v3899_v15 }
0x3ba2   :  { %5710 = vmatprep.subr.mxu0 %v3898_v1 }
0x3ba3   :  { %5711 = vmatpush3.msra.mxu0 %v3898_v1 }
0x3ba4   :  { %5746 = vmatprep.subr.mxu0 %v4380_v52 }
0x3c43   :  { %v5683_v26 = vpop.f32.mrf.mxu1 }
0x3c44   :  { %v4035_v35 = vadd.f32 %v5683_v26, %v4754_v19 }
0x3c45   :  { %v4029_v5 = vpop.f32.mrf.mxu1 }
0x3c46   :  { %v4030_v17 = vadd.f32 %v4754_v19, %v4029_v5  ;;  %v4079_v44 = vmax.f32 %v4035_v35, 0.0 }
0x3c47   :  { %v5686_v43 = vpop.f32.mrf.mxu1 }
0x3c48   :  { %v4045_v45 = vadd.f32 %v5686_v43, %v4754_v19  ;;  %v4078_v14 = vmax.f32 %v4030_v17, 0.0 }
0x3c49   :  { %v4039_v38 = vpop.f32.mrf.mxu1 }
0x3c4a   :  { %v4040_v33 = vadd.f32 %v4754_v19, %v4039_v38  ;;  %v4081_v62 = vmax.f32 %v4045_v45, 0.0 }
0x3c4b   :  { %v5689_v18 = vpop.f32.mrf.mxu1 }
0x3c4c   :  { %v4055_v39 = vadd.f32 %v5689_v18, %v4754_v19  ;;  %v4080_v2 = vmax.f32 %v4040_v33, 0.0 }
0x3c4d   :  { %v4049_v48 = vpop.f32.mrf.mxu1 }
0x3c4e   :  { %v4083_v12 = vmax.f32 %v4055_v39, 0.0  ;;  %v4050_v60 = vadd.f32 %v4754_v19, %v4049_v48 }
0x3c4f   :  { %v5692_v40 = vpop.f32.mrf.mxu1 }
0x3c50   :  { %v4082_v56 = vmax.f32 %v4050_v60, 0.0  ;;  %v4065_v54 = vadd.f32 %v5692_v40, %v4754_v19  ;;  %4096 = vrot.lane.b32.xlu1 %v4083_v12, %s6122_s2 }
0x3c51   :  { %v4059_v55 = vpop.f32.mrf.mxu1 }
0x3c52   :  { %v4085_v23 = vmax.f32 %v4065_v54, 0.0  ;;  %v4060_v59 = vadd.f32 %v4754_v19, %v4059_v55  ;;  %4094 = vrot.lane.b32.xlu0 %v4082_v56, %s6122_s2 }
0x3c53   :  { %v5695_v25 = vpop.f32.mrf.mxu1 }
0x3c54   :  { %v4084_v32 = vmax.f32 %v4060_v59, 0.0  ;;  %v4075_v34 = vadd.f32 %v5695_v25, %v4754_v19  ;;  %4100 = vrot.lane.b32.xlu1 %v4085_v23, %s6122_s2 }
0x3c55   :  { %v4069_v63 = vpop.f32.mrf.mxu1 }
0x3c56   :  { %v4087_v37 = vmax.f32 %v4075_v34, 0.0  ;;  %v4070_v47 = vadd.f32 %v4754_v19, %v4069_v63  ;;  %4098 = vrot.lane.b32.xlu0 %v4084_v32, %s6122_s2 }
0x3c57   :  { %v5739_v7 = vpop.f32.mrf.mxu1 }
0x3c58   :  { %v4086_v31 = vmax.f32 %v4070_v47, 0.0  ;;  %4104 = vrot.lane.b32.xlu1 %v4087_v37, %s6122_s2  ;;  %v4342_v16 = vadd.f32 %v5739_v7, %v4762_v41  ;;  %v4776_v7 = vld [vmem:[%s7835_s23] ss:$0 sm:$0xff]  ;;  %s6097_s23 = scalar_lea.vmem %s4642_s11, 768 }
0x3c59   :  { %v4336_v51 = vpop.f32.mrf.mxu1  ;;  %p6098_p0 = scmp.ne.s32.totalorder %s4642_s11, %s6097_s23  ;;  %p6103_p2 = scmp.lt.s32.totalorder %s6097_s23, %s6097_s23 }
0x3c5a   :  { %4102 = vrot.lane.b32.xlu0 %v4086_v31, %s6122_s2  ;;  %v4337_v9 = vadd.f32 %v4762_v41, %v4336_v51 }
0x3c5b   :  { %v5742_v3 = vpop.f32.mrf.mxu1  ;;  %p6104_p3 = por %p6103_p2, %p6102_p1 }
0x3c5c   :  { %v4352_v45 = vadd.f32 %v5742_v3, %v4762_v41 }
0x3c5d   :  { %v4346_v13 = vpop.f32.mrf.mxu1  ;;  %p6105_p4 = pnand %p6104_p3, %p6098_p0 }
0x3c5e   :  { %v4347_v33 = vadd.f32 %v4762_v41, %v4346_v13 }
0x3c5f   :  { %v5745_v26 = vpop.f32.mrf.mxu1 }
0x3c60   :  { %v4362_v23 = vadd.f32 %v5745_v26, %v4762_v41 }
0x3cc2   :  { %v4097_v57 = vpop.permute.xlu1 %4096 }
0x3cc3   :  { %v4113_v10 = vsel %vm357_vm2, %v4079_v44, %v4097_v57  ;;  %v4381_v57 = vld [vmem:[%s7834_s22] sm:$0xff] }
0x3cc4   :  { %v4095_v30 = vpop.permute.xlu0 %4094  ;;  %5777 = vmatprep.subr.mxu1 %v4381_v57 }
0x3cc5   :  { %v4112_v50 = vsel %vm357_vm2, %v4078_v14, %v4095_v30  ;;  %5779 = vmatpush3.msra.mxu1 %v4381_v57  ;;  %v4769_v14 = vld [vmem:[%s7833_s21] ss:$0 sm:$0xff] }
0x3cc6   :  { %v4101_v11 = vpop.permute.xlu1 %4100  ;;  %5712 = vmatprep.mubr.msk.f32.mxu0 %vm2603_vm3, %v4112_v50 }
0x3cc7   :  { %5713 = vmatmul.mubr.msk.f32.vlgmr.msra.gmra.mxu0 %vm2603_vm3, %v4113_v10  ;;  %v4115_v29 = vsel %vm357_vm2, %v4081_v62, %v4101_v11 }
0x3cc8   :  { %v4099_v42 = vpop.permute.xlu0 %4098  ;;  %5747 = vmatpush3.msra.mxu0 %v4380_v52 }
0x3cc9   :  { %v4114_v8 = vsel %vm357_vm2, %v4080_v2, %v4099_v42  ;;  %5748 = vmatprep.subr.mxu0 %v4379_v61 }
0x3cca   :  { %5715 = vmatprep.mubr.msk.f32.mxu0 %vm2603_vm3, %v4114_v8  ;;  %v4105_v46 = vpop.permute.xlu1 %4104  ;;  %5749 = vmatpush3.msra.mxu0 %v4379_v61 }
0x3ccb   :  { %5716 = vmatmul.mubr.msk.f32.gmra.mxu0 %vm2603_vm3, %v4115_v29  ;;  %v4117_v58 = vsel %vm357_vm2, %v4083_v12, %v4105_v46  ;;  %5750 = vmatprep.subr.mxu0 %v4378_v24  ;;  %v4356_v12 = vpop.f32.mrf.mxu1 }
0x3ccc   :  { %v4103_v0 = vpop.permute.xlu0 %4102  ;;  %5751 = vmatpush3.msra.mxu0 %v4378_v24  ;;  %v4357_v59 = vadd.f32 %v4762_v41, %v4356_v12 }
0x3ccd   :  { %v4116_v4 = vsel %vm357_vm2, %v4082_v56, %v4103_v0  ;;  %5752 = vmatprep.subr.mxu0 %v4377_v6 }
0x3cce   :  { %5718 = vmatprep.mubr.msk.f32.mxu0 %vm2603_vm3, %v4116_v4  ;;  %5753 = vmatpush3.msra.mxu0 %v4377_v6 }
0x3ccf   :  { %5719 = vmatmul.mubr.msk.f32.gmra.mxu0 %vm2603_vm3, %v4117_v58  ;;  %5763 = vmatprep.subr.mxu0 %v4382_v49 }
0x3d87   :  { %v5714_v20 = vpop.f32.mrf.mxu0 }
0x3d88   :  { %v4214_v27 = vadd.f32 %v5714_v20, %v4755_v53 }
0x3d89   :  { %v4208_v22 = vpop.f32.mrf.mxu0 }
0x3d8a   :  { %v4238_v36 = vmax.f32 %v4214_v27, 0.0  ;;  %v4209_v28 = vadd.f32 %v4755_v53, %v4208_v22 }
0x3d8b   :  { %v5717_v21 = vpop.f32.mrf.mxu0 }
0x3d8c   :  { %v4237_v15 = vmax.f32 %v4209_v28, 0.0  ;;  %v4224_v19 = vadd.f32 %v5717_v21, %v4755_v53  ;;  %v4366_v1 = vadd.f32 %v4342_v16, %v4238_v36 }
0x3d8d   :  { %v4218_v35 = vpop.f32.mrf.mxu0 }
0x3d8e   :  { %v4365_v5 = vadd.f32 %v4337_v9, %v4237_v15  ;;  %v4240_v17 = vmax.f32 %v4224_v19, 0.0  ;;  %v4219_v43 = vadd.f32 %v4755_v53, %v4218_v35  ;;  %v4372_v60 = vmax.f32 %v4366_v1, 0.0 }
0x3d8f   :  { %v5720_v38 = vpop.f32.mrf.mxu0 }
0x3d90   :  { %v4371_v18 = vmax.f32 %v4365_v5, 0.0  ;;  %v4239_v39 = vmax.f32 %v4219_v43, 0.0  ;;  %v4234_v48 = vadd.f32 %v5720_v38, %v4755_v53  ;;  %v4368_v40 = vadd.f32 %v4352_v45, %v4240_v17 }
0x3d91   :  { %v4228_v52 = vpop.f32.mrf.mxu0 }
0x3d92   :  { %v4367_v56 = vadd.f32 %v4347_v33, %v4239_v39  ;;  %v4242_v54 = vmax.f32 %v4234_v48, 0.0  ;;  %v4229_v55 = vadd.f32 %v4755_v53, %v4228_v52  ;;  %5754 = vmatprep.mubr.msk.f32.mxu0 %vm357_vm2, %v4371_v18  ;;  %v4374_v34 = vmax.f32 %v4368_v40, 0.0 }
0x3d93   :  { %5755 = vmatmul.mubr.msk.f32.vlgmr.msra.gmra.mxu0 %vm357_vm2, %v4372_v60 }
0x3d94   :  { %v4373_v25 = vmax.f32 %v4367_v56, 0.0  ;;  %v4241_v32 = vmax.f32 %v4229_v55, 0.0  ;;  %5764 = vmatpush3.msra.mxu0 %v4382_v49  ;;  %v4370_v63 = vadd.f32 %v4362_v23, %v4242_v54 }
0x3d95   :  { %5765 = vmatprep.subr.mxu0 %v4381_v57 }
0x3d96   :  { %v4369_v37 = vadd.f32 %v4357_v59, %v4241_v32  ;;  %5757 = vmatprep.mubr.msk.f32.mxu0 %vm357_vm2, %v4373_v25  ;;  %v4376_v31 = vmax.f32 %v4370_v63, 0.0  ;;  %5766 = vmatpush3.msra.mxu0 %v4381_v57 }
0x3d97   :  { %5758 = vmatmul.mubr.msk.f32.gmra.mxu0 %vm357_vm2, %v4374_v34 }
0x3d98   :  { %v4375_v47 = vmax.f32 %v4369_v37, 0.0 }
0x3d9a   :  { %5760 = vmatprep.mubr.msk.f32.mxu0 %vm357_vm2, %v4375_v47 }
0x3d9b   :  { %5761 = vmatmul.mubr.msk.f32.gmra.mxu0 %vm357_vm2, %v4376_v31 }
0x3e53   :  { %v5756_v44 = vpop.f32.mrf.mxu0 }
0x3e54   :  { %v4480_v30 = vadd.f32 %v5756_v44, %v4769_v14 }
0x3e55   :  { %v4474_v50 = vpop.f32.mrf.mxu0 }
0x3e56   :  { %v4475_v10 = vadd.f32 %v4769_v14, %v4474_v50  ;;  %v4504_v62 = vmax.f32 %v4480_v30, 0.0 }
0x3e57   :  { %v5759_v11 = vpop.f32.mrf.mxu0 }
0x3e58   :  { %v4503_v2 = vmax.f32 %v4475_v10, 0.0  ;;  %v4490_v42 = vadd.f32 %v5759_v11, %v4769_v14 }
0x3e59   :  { %v4484_v8 = vpop.f32.mrf.mxu0 }
0x3e5a   :  { %v4485_v29 = vadd.f32 %v4769_v14, %v4484_v8  ;;  %5767 = vmatprep.mubr.msk.f32.mxu0 %vm4516_vm4, %v4503_v2  ;;  %v4506_v4 = vmax.f32 %v4490_v42, 0.0 }
0x3e5b   :  { %v5762_v46 = vpop.f32.mrf.mxu0  ;;  %5768 = vmatmul.mubr.msk.f32.vlgmr.msra.gmra.mxu0 %vm4516_vm4, %v4504_v62 }
0x3e5c   :  { %v4505_v0 = vmax.f32 %v4485_v29, 0.0  ;;  %v4500_v58 = vadd.f32 %v5762_v46, %v4769_v14 }
0x3e5d   :  { %v4494_v61 = vpop.f32.mrf.mxu0 }
0x3e5e   :  { %v4495_v24 = vadd.f32 %v4769_v14, %v4494_v61  ;;  %5770 = vmatprep.mubr.msk.f32.mxu1 %vm4516_vm4, %v4505_v0  ;;  %v4508_v49 = vmax.f32 %v4500_v58, 0.0 }
0x3e5f   :  { %5771 = vmatmul.mubr.msk.f32.vlgmr.msra.gmra.mxu1 %vm4516_vm4, %v4506_v4 }
0x3e60   :  { %v4507_v6 = vmax.f32 %v4495_v24, 0.0 }
0x3e62   :  { %5773 = vmatprep.mubr.msk.f32.mxu1 %vm4516_vm4, %v4507_v6 }
0x3e63   :  { %5774 = vmatmul.mubr.msk.f32.gmra.mxu1 %vm4516_vm4, %v4508_v49 }
0x3f1b   :  { %v5769_v51 = vpop.f32.mrf.mxu0 }
0x3f1c   :  { %v4607_v3 = vadd.f32 %v5769_v51, %v4776_v7 }
0x3f1d   :  { %v4601_v53 = vpop.f32.mrf.mxu0 }
0x3f1e   :  { %4631 = vst [vmem:[#allocation4 + $0x8] sm:$0xff] %v4607_v3  ;;  %v4602_v20 = vadd.f32 %v4776_v7, %v4601_v53 }
0x3f1f   :  { %v5772_v41 = vpop.f32.mrf.mxu1 }
0x3f20   :  { %4630 = vst [vmem:[#allocation4] sm:$0xff] %v4602_v20  ;;  %v4617_v27 = vadd.f32 %v5772_v41, %v4776_v7 }
0x3f21   :  { %v4611_v13 = vpop.f32.mrf.mxu1 }
0x3f22   :  { %4633 = vst [vmem:[#allocation4 + $0x18] sm:$0xff] %v4617_v27  ;;  %v4612_v22 = vadd.f32 %v4776_v7, %v4611_v13 }
0x3f23   :  { %v5775_v36 = vpop.f32.mrf.mxu1 }
0x3f24   :  { %4632 = vst [vmem:[#allocation4 + $0x10] sm:$0xff] %v4612_v22  ;;  %v4627_v28 = vadd.f32 %v5775_v36, %v4776_v7 }
0x3f25   :  { %v4621_v16 = vpop.f32.mrf.mxu1 }
0x3f26   :  { %4635 = vst [vmem:[#allocation4 + $0x28] sm:$0xff] %v4627_v28  ;;  %v4622_v21 = vadd.f32 %v4776_v7, %v4621_v16 }
0x3f28   :  { %4634 = vst [vmem:[#allocation4 + $0x20] sm:$0xff] %v4622_v21 }
0x3f29   :  { %6108 = shalt.err (!%p6105_p4)
}
0x3f2a   :  { %s6124_s12 = smov 128   ;;  %s6125_s30 = smov 8  }
0x3f2b   :  { %4647 = dma.vmem_to_hbm [thread:$0]  %s4642_s11, 768, %s7836_s24, [#allocation5], %s6124_s12, %s6124_s12, %s6125_s30  }
0x3f2c   :  { %6117 = dma.done.wait [#allocation5], 768  }
0x3f2d   :  { %6118 = vsyncadd [#allocation5], 4294966528 }
0x3f2e   :  { %4651 = vsyncpa [#allocation5], 1 }

</bundles_post_ra>
